<compile_context>
chip_gen: v5e
topology: v5e:2x2
jax: 0.10.0
libtpu: 0.0.40
codegen_flags: <defaults>
</compile_context>

<pallas_src>
import jax
import jax.numpy as jnp
from jax.experimental import pallas as pl
from jax.experimental.pallas import tpu as pltpu

# Layer widths straight from the PyTorch module definition.
DIMS = [1, 16, 64, 128, 64, 16, 1]
PAD = 128  # every layer width is zero-padded to 128 (>= max width, lane/sublane friendly)


def _mlp_kernel(x_ref, w_ref, b_ref, o_ref):
    # x_ref: (1, tb) f32, batch in lanes.
    # w_ref: (6, PAD, PAD) zero-padded weights; layers 0..4 stored as (out, in),
    #        layer 5 stored transposed as (in, out=1) so its column broadcasts.
    # b_ref: (6, PAD, 1) zero-padded biases (column vectors).
    # o_ref: (1, tb) f32.
    x = x_ref[...]                                                   # (1, tb)

    # Layer 1 (in_features == 1): outer product on the VPU, no MXU pass needed.
    w0 = w_ref[0]                                                    # (PAD, PAD)
    h = w0[:, 0:1].astype(jnp.float32) * x                           # (PAD, tb)
    h = jnp.maximum(h + b_ref[0].astype(jnp.float32), 0.0)

    # Layers 2..5: full padded (PAD,PAD) @ (PAD,tb) MXU matmuls, f32 accumulation.
    # Zero-padded weight rows/cols + zero bias padding keep padded rows exactly 0.
    for i in range(1, 5):
        wi = w_ref[i]                                                # (PAD, PAD)
        h = jnp.dot(wi, h.astype(wi.dtype), preferred_element_type=jnp.float32)
        h = jnp.maximum(h + b_ref[i].astype(jnp.float32), 0.0)

    # Layer 6 (out_features == 1): elementwise multiply + sublane (XLU) reduce,
    # avoiding a matmul that would only produce a masked single-row result.
    w5 = w_ref[5]                                                    # (PAD, PAD), col 0 = W6^T
    out = jnp.sum(w5[:, 0:1].astype(jnp.float32) * h, axis=0, keepdims=True)  # (1, tb)
    out = out + b_ref[5][0:1, 0:1].astype(jnp.float32)
    o_ref[...] = out.astype(o_ref.dtype)


def _pack_params(params, dtype):
    """Pack per-layer (W, b) in PyTorch nn.Linear layout (out,in)/(out,) into padded slabs."""
    n = len(params)
    w_slab = jnp.zeros((n, PAD, PAD), dtype)
    b_slab = jnp.zeros((n, PAD, 1), dtype)
    for i, (w, b) in enumerate(params):
        w = jnp.asarray(w, dtype)
        b = jnp.asarray(b, dtype).reshape(-1)
        if i == n - 1:
            w = w.T                    # last layer stored as (in, out=1): column broadcasts
        r, c = w.shape
        w_slab = w_slab.at[i, :r, :c].set(w)
        b_slab = b_slab.at[i, : b.shape[0], 0].set(b)
    return w_slab, b_slab


def sin_regressor_forward(x, params, *, tb=512, param_dtype=jnp.float32):
    """x: (B, 1) or (B,) f32. params: [(W, b)] with W (out,in), b (out,) (PyTorch layout)."""
    assert tb % 128 == 0, "batch tile must be a multiple of 128 lanes"
    x = jnp.asarray(x, jnp.float32)
    B = x.shape[0]
    xr = x.reshape(1, B)                                 # batch -> lane dimension
    n_tiles = pl.cdiv(B, tb)
    b_pad = n_tiles * tb
    if b_pad != B:
        xr = jnp.pad(xr, ((0, 0), (0, b_pad - B)))       # pad instead of B % tb == 0

    w_slab, b_slab = _pack_params(params, param_dtype)

    out = pl.pallas_call(
        _mlp_kernel,
        out_shape=jax.ShapeDtypeStruct((1, b_pad), jnp.float32),
        grid_spec=pltpu.PrefetchScalarGridSpec(
            num_scalar_prefetch=0,
            grid=(n_tiles,),
            in_specs=[
                pl.BlockSpec((1, tb), lambda i: (0, i)),          # batch-tiled, lane-dense
                pl.BlockSpec(w_slab.shape, lambda i: (0, 0, 0)),  # resident weight slab
                pl.BlockSpec(b_slab.shape, lambda i: (0, 0, 0)),  # resident bias slab
            ],
            out_specs=pl.BlockSpec((1, tb), lambda i: (0, i)),    # lane-dense output
        ),
        compiler_params=pltpu.CompilerParams(
            dimension_semantics=("parallel",)),          # shards batch tiles across TCs (v7x)
    )(xr, w_slab, b_slab)

    return out[0, :B].reshape(B, 1)


def init_params(key):
    """nn.Linear default init: W,b ~ U[-1/sqrt(fan_in), 1/sqrt(fan_in)], PyTorch layout."""
    params = []
    for i in range(len(DIMS) - 1):
        fan_in, fan_out = DIMS[i], DIMS[i + 1]
        key, kw, kb = jax.random.split(key, 3)
        bound = 1.0 / (fan_in ** 0.5)
        w = jax.random.uniform(kw, (fan_out, fan_in), jnp.float32, -bound, bound)
        b = jax.random.uniform(kb, (fan_out,), jnp.float32, -bound, bound)
        params.append((w, b))
    return params


def reference_forward(x, params):
    h = jnp.asarray(x, jnp.float32).reshape(x.shape[0], 1)
    for i, (w, b) in enumerate(params):
        h = h @ w.T + b
        if i < len(params) - 1:
            h = jnp.maximum(h, 0.0)
    return h


if __name__ == "__main__":
    key = jax.random.PRNGKey(0)
    key, kx = jax.random.split(key)

    # B=1000 exercises the pad+slice path (pads to 1024) and gives 2 grid steps at tb=512.
    B = 1000
    x = jax.random.uniform(kx, (B, 1), jnp.float32, -3.14159, 3.14159)
    params = init_params(key)

    ref = reference_forward(x, params)

    out = jax.block_until_ready(sin_regressor_forward(x, params, tb=512))
    assert out.shape == (B, 1)
    assert jnp.allclose(out, ref, atol=1e-4, rtol=1e-4), float(jnp.max(jnp.abs(out - ref)))

    # bf16 weights (bf16-native MXU path for v6e / v7x), f32 accumulate -> loose tolerance.
    out_bf16 = jax.block_until_ready(
        sin_regressor_forward(x, params, tb=512, param_dtype=jnp.bfloat16))
    assert float(jnp.max(jnp.abs(out_bf16 - ref))) < 0.1

    print("KERNEL_OK")
</pallas_src>

<mosaic_0001>
module attributes {stable_mosaic.version = 11 : i64} {
  func.func @_mlp_kernel(%arg0: i32, %arg1: memref<1x512xf32, #tpu.memory_space<vmem>>, %arg2: memref<6x128x128xf32, #tpu.memory_space<vmem>>, %arg3: memref<6x128x1xf32, #tpu.memory_space<vmem>>, %arg4: memref<1x512xf32, #tpu.memory_space<vmem>>) attributes {dimension_semantics = [#tpu.dimension_semantics<parallel>], iteration_bounds = array<i64: 2>, scalar_prefetch = 0 : i64, scratch_operands = 0 : i64, tpu.core_type = #tpu.core_type<tc>, window_params = [{transform_indices = @transform_0, window_bounds = array<i64: 1, 512>}, {pipeline_mode = #tpu.pipeline_mode<synchronous>, transform_indices = @transform_1, window_bounds = array<i64: 6, 128, 128>}, {pipeline_mode = #tpu.pipeline_mode<synchronous>, transform_indices = @transform_2, window_bounds = array<i64: 6, 128, 1>}, {transform_indices = @transform_3, window_bounds = array<i64: 1, 512>}]} {
    %c0 = arith.constant 0 : index
    %c0_0 = arith.constant 0 : index
    %0 = vector.load %arg1[%c0, %c0_0] : memref<1x512xf32, #tpu.memory_space<vmem>>, vector<1x512xf32>
    %c0_1 = arith.constant 0 : index
    %c0_2 = arith.constant 0 : index
    %c0_3 = arith.constant 0 : index
    %1 = vector.load %arg2[%c0_1, %c0_2, %c0_3] : memref<6x128x128xf32, #tpu.memory_space<vmem>>, vector<1x128x128xf32>
    %2 = vector.shape_cast %1 : vector<1x128x128xf32> to vector<128x128xf32>
    %3 = vector.extract_strided_slice %2 {offsets = [0, 0], sizes = [128, 1], strides = [1, 1]} : vector<128x128xf32> to vector<128x1xf32>
    %4 = vector.broadcast %3 : vector<128x1xf32> to vector<128x512xf32>
    %5 = vector.broadcast %0 : vector<1x512xf32> to vector<128x512xf32>
    %6 = arith.mulf %4, %5 : vector<128x512xf32>
    %c0_4 = arith.constant 0 : index
    %c0_5 = arith.constant 0 : index
    %c0_6 = arith.constant 0 : index
    %7 = vector.load %arg3[%c0_4, %c0_5, %c0_6] : memref<6x128x1xf32, #tpu.memory_space<vmem>>, vector<1x128x1xf32>
    %8 = vector.shape_cast %7 : vector<1x128x1xf32> to vector<128x1xf32>
    %9 = vector.broadcast %8 : vector<128x1xf32> to vector<128x512xf32>
    %10 = arith.addf %6, %9 : vector<128x512xf32>
    %cst = arith.constant 0.000000e+00 : f32
    %11 = vector.broadcast %cst : f32 to vector<128x512xf32>
    %12 = arith.maximumf %10, %11 : vector<128x512xf32>
    %c1 = arith.constant 1 : index
    %c0_7 = arith.constant 0 : index
    %c0_8 = arith.constant 0 : index
    %13 = vector.load %arg2[%c1, %c0_7, %c0_8] : memref<6x128x128xf32, #tpu.memory_space<vmem>>, vector<1x128x128xf32>
    %14 = vector.shape_cast %13 : vector<1x128x128xf32> to vector<128x128xf32>
    %cst_9 = arith.constant dense<0.000000e+00> : vector<128x512xf32>
    %15 = tpu.matmul %14, %12, %cst_9 {dimension_numbers = #tpu.dot_dimension_numbers<[1], [0], [0], [1], [0, 0, 1, 1], [], []>} : vector<128x128xf32>, vector<128x512xf32>, vector<128x512xf32> -> vector<128x512xf32>
    %c1_10 = arith.constant 1 : index
    %c0_11 = arith.constant 0 : index
    %c0_12 = arith.constant 0 : index
    %16 = vector.load %arg3[%c1_10, %c0_11, %c0_12] : memref<6x128x1xf32, #tpu.memory_space<vmem>>, vector<1x128x1xf32>
    %17 = vector.shape_cast %16 : vector<1x128x1xf32> to vector<128x1xf32>
    %18 = vector.broadcast %17 : vector<128x1xf32> to vector<128x512xf32>
    %19 = arith.addf %15, %18 : vector<128x512xf32>
    %cst_13 = arith.constant 0.000000e+00 : f32
    %20 = vector.broadcast %cst_13 : f32 to vector<128x512xf32>
    %21 = arith.maximumf %19, %20 : vector<128x512xf32>
    %c2 = arith.constant 2 : index
    %c0_14 = arith.constant 0 : index
    %c0_15 = arith.constant 0 : index
    %22 = vector.load %arg2[%c2, %c0_14, %c0_15] : memref<6x128x128xf32, #tpu.memory_space<vmem>>, vector<1x128x128xf32>
    %23 = vector.shape_cast %22 : vector<1x128x128xf32> to vector<128x128xf32>
    %cst_16 = arith.constant dense<0.000000e+00> : vector<128x512xf32>
    %24 = tpu.matmul %23, %21, %cst_16 {dimension_numbers = #tpu.dot_dimension_numbers<[1], [0], [0], [1], [0, 0, 1, 1], [], []>} : vector<128x128xf32>, vector<128x512xf32>, vector<128x512xf32> -> vector<128x512xf32>
    %c2_17 = arith.constant 2 : index
    %c0_18 = arith.constant 0 : index
    %c0_19 = arith.constant 0 : index
    %25 = vector.load %arg3[%c2_17, %c0_18, %c0_19] : memref<6x128x1xf32, #tpu.memory_space<vmem>>, vector<1x128x1xf32>
    %26 = vector.shape_cast %25 : vector<1x128x1xf32> to vector<128x1xf32>
    %27 = vector.broadcast %26 : vector<128x1xf32> to vector<128x512xf32>
    %28 = arith.addf %24, %27 : vector<128x512xf32>
    %cst_20 = arith.constant 0.000000e+00 : f32
    %29 = vector.broadcast %cst_20 : f32 to vector<128x512xf32>
    %30 = arith.maximumf %28, %29 : vector<128x512xf32>
    %c3 = arith.constant 3 : index
    %c0_21 = arith.constant 0 : index
    %c0_22 = arith.constant 0 : index
    %31 = vector.load %arg2[%c3, %c0_21, %c0_22] : memref<6x128x128xf32, #tpu.memory_space<vmem>>, vector<1x128x128xf32>
    %32 = vector.shape_cast %31 : vector<1x128x128xf32> to vector<128x128xf32>
    %cst_23 = arith.constant dense<0.000000e+00> : vector<128x512xf32>
    %33 = tpu.matmul %32, %30, %cst_23 {dimension_numbers = #tpu.dot_dimension_numbers<[1], [0], [0], [1], [0, 0, 1, 1], [], []>} : vector<128x128xf32>, vector<128x512xf32>, vector<128x512xf32> -> vector<128x512xf32>
    %c3_24 = arith.constant 3 : index
    %c0_25 = arith.constant 0 : index
    %c0_26 = arith.constant 0 : index
    %34 = vector.load %arg3[%c3_24, %c0_25, %c0_26] : memref<6x128x1xf32, #tpu.memory_space<vmem>>, vector<1x128x1xf32>
    %35 = vector.shape_cast %34 : vector<1x128x1xf32> to vector<128x1xf32>
    %36 = vector.broadcast %35 : vector<128x1xf32> to vector<128x512xf32>
    %37 = arith.addf %33, %36 : vector<128x512xf32>
    %cst_27 = arith.constant 0.000000e+00 : f32
    %38 = vector.broadcast %cst_27 : f32 to vector<128x512xf32>
    %39 = arith.maximumf %37, %38 : vector<128x512xf32>
    %c4 = arith.constant 4 : index
    %c0_28 = arith.constant 0 : index
    %c0_29 = arith.constant 0 : index
    %40 = vector.load %arg2[%c4, %c0_28, %c0_29] : memref<6x128x128xf32, #tpu.memory_space<vmem>>, vector<1x128x128xf32>
    %41 = vector.shape_cast %40 : vector<1x128x128xf32> to vector<128x128xf32>
    %cst_30 = arith.constant dense<0.000000e+00> : vector<128x512xf32>
    %42 = tpu.matmul %41, %39, %cst_30 {dimension_numbers = #tpu.dot_dimension_numbers<[1], [0], [0], [1], [0, 0, 1, 1], [], []>} : vector<128x128xf32>, vector<128x512xf32>, vector<128x512xf32> -> vector<128x512xf32>
    %c4_31 = arith.constant 4 : index
    %c0_32 = arith.constant 0 : index
    %c0_33 = arith.constant 0 : index
    %43 = vector.load %arg3[%c4_31, %c0_32, %c0_33] : memref<6x128x1xf32, #tpu.memory_space<vmem>>, vector<1x128x1xf32>
    %44 = vector.shape_cast %43 : vector<1x128x1xf32> to vector<128x1xf32>
    %45 = vector.broadcast %44 : vector<128x1xf32> to vector<128x512xf32>
    %46 = arith.addf %42, %45 : vector<128x512xf32>
    %cst_34 = arith.constant 0.000000e+00 : f32
    %47 = vector.broadcast %cst_34 : f32 to vector<128x512xf32>
    %48 = arith.maximumf %46, %47 : vector<128x512xf32>
    %c5 = arith.constant 5 : index
    %c0_35 = arith.constant 0 : index
    %c0_36 = arith.constant 0 : index
    %49 = vector.load %arg2[%c5, %c0_35, %c0_36] : memref<6x128x128xf32, #tpu.memory_space<vmem>>, vector<1x128x128xf32>
    %50 = vector.shape_cast %49 : vector<1x128x128xf32> to vector<128x128xf32>
    %51 = vector.extract_strided_slice %50 {offsets = [0, 0], sizes = [128, 1], strides = [1, 1]} : vector<128x128xf32> to vector<128x1xf32>
    %52 = vector.broadcast %51 : vector<128x1xf32> to vector<128x512xf32>
    %53 = arith.mulf %52, %48 : vector<128x512xf32>
    %cst_37 = arith.constant dense<0.000000e+00> : vector<512xf32>
    %54 = vector.multi_reduction <add>, %53, %cst_37 [0] : vector<128x512xf32> to vector<512xf32>
    %55 = vector.shape_cast %54 : vector<512xf32> to vector<1x512xf32>
    %c5_38 = arith.constant 5 : index
    %c0_39 = arith.constant 0 : index
    %c0_40 = arith.constant 0 : index
    %56 = vector.load %arg3[%c5_38, %c0_39, %c0_40] : memref<6x128x1xf32, #tpu.memory_space<vmem>>, vector<1x128x1xf32>
    %57 = vector.shape_cast %56 : vector<1x128x1xf32> to vector<128x1xf32>
    %58 = vector.extract_strided_slice %57 {offsets = [0, 0], sizes = [1, 1], strides = [1, 1]} : vector<128x1xf32> to vector<1x1xf32>
    %59 = vector.broadcast %58 : vector<1x1xf32> to vector<1x512xf32>
    %60 = arith.addf %55, %59 : vector<1x512xf32>
    %c0_41 = arith.constant 0 : index
    %c0_42 = arith.constant 0 : index
    %61 = vector.load %arg4[%c0_41, %c0_42] : memref<1x512xf32, #tpu.memory_space<vmem>>, vector<1x512xf32>
    tpu.vector_store %arg4[%c0_41, %c0_42], %60 {strides = array<i32>} : memref<1x512xf32, #tpu.memory_space<vmem>>, vector<1x512xf32>,
    return
  }
  func.func @transform_0(%arg0: i32) -> (i32, i32) {
    %c0_i32 = arith.constant 0 : i32
    %c0_i32_0 = arith.constant 0 : i32
    return %c0_i32, %arg0 : i32, i32
  }
  func.func @transform_1(%arg0: i32) -> (i32, i32, i32) {
    %c0_i32 = arith.constant 0 : i32
    %c0_i32_0 = arith.constant 0 : i32
    %c0_i32_1 = arith.constant 0 : i32
    %c0_i32_2 = arith.constant 0 : i32
    return %c0_i32, %c0_i32_0, %c0_i32_1 : i32, i32, i32
  }
  func.func @transform_2(%arg0: i32) -> (i32, i32, i32) {
    %c0_i32 = arith.constant 0 : i32
    %c0_i32_0 = arith.constant 0 : i32
    %c0_i32_1 = arith.constant 0 : i32
    %c0_i32_2 = arith.constant 0 : i32
    return %c0_i32, %c0_i32_0, %c0_i32_1 : i32, i32, i32
  }
  func.func @transform_3(%arg0: i32) -> (i32, i32) {
    %c0_i32 = arith.constant 0 : i32
    %c0_i32_0 = arith.constant 0 : i32
    return %c0_i32, %arg0 : i32, i32
  }
}

</mosaic_0001>

<bundles_post_ra>
// kernel: tpu_custom_call.1
= control target key start
LH: loop header
LB: loop body
LE: loop exit
PB: predicated region body
PF: predicated region fallthrough
CT: control target
= control target key end

     0   :  { %8 = vsyncpa [#allocation3], 0  ;;  %s4669_s0 = inlined_call_operand.hbm [shape: f32[1,1024], index: 0, kind: input, shape index: {}]   ;;  %s4670_s1 = inlined_call_operand.vmem [shape: f32[6,128,128], index: 1, kind: input, shape index: {}]   ;;  %s4671_s2 = inlined_call_operand.vmem [shape: f32[6,128,1], index: 2, kind: input, shape index: {}]   ;;  %s4672_s3 = inlined_call_operand.hbm [shape: f32[1,1024], index: 3, kind: output, shape index: {}]  }
   0x1   :  { %10 = vsyncpa [#allocation3 + $0x1], 0 }
   0x2   :  { %11 = vsyncpa [#allocation4], 0 }
   0x3   :  { %13 = vsyncpa [#allocation4 + $0x1], 0  ;;  %s3023_s12 = smov 0   ;;  %s3025_s13 = smov 0  }
   0x4   :  { %s3027_s14 = smov 0   ;;  %s3029_s15 = smov 0  }
   0x5 LB: > { %s3044_s16 = sadd.s32 4294967295, %s3000_s15   ;;  %s2697_s17 = sadd.s32 4294967294, %s3000_s15   ;;  %s3000_s15 = sphi %s3029_s15, %s4784_s15   ;;  %s2996_s14 = sphi %s3027_s14, %s4783_s14   ;;  %s2992_s13 = sphi %s3025_s13, %s4782_s13   ;;  %s2988_s12 = sphi %s3023_s12, %s4781_s12  }
   0x6   : > { %s3048_s18 = sadd.s32 1, %s3000_s15   ;;  %s26_s19 = sadd.s32 1, %s2996_s14 }
   0x7   : > { %s23_s20 = ssub.s32 %s3000_s15, %s3048_s18  ;;  %p33_p0 = scmp.ne.s32.totalorder %s2996_s14, %s2992_s13 }
   0x8   : > { %p24_p1 = scmp.eq.s32.totalorder %s23_s20, 0  ;;  %p34_p2 = scmp.eq.s32.totalorder %s3000_s15, 0 }
   0x9   : > { %p39_p3 = scmp.ne.s32.totalorder %s2992_s13, %s2988_s12  ;;  %p40_p4 = scmp.eq.s32.totalorder %s3044_s16, 0 }
   0xa   : > { %s3060_s21 = scalar_select %p24_p1, %s2996_s14, %s26_s19  }
   0xb   : > { %p3062_p5 = por %p34_p2, %p33_p0  ;;  %p3066_p6 = por %p40_p4, %p39_p3 }
   0xc   : > { %p105_p7 = scmp.eq.s32.totalorder %s3044_s16, 1  ;;  %p111_p8 = scmp.eq.s32.totalorder %s2697_s17, 1 }
   0xd   : > { %p2866_p10 = scmp.lt.s32.totalorder %s3000_s15, 2  ;;  %s137_s26 = sand.u32 1, %s2996_s14  }
   0xe   : > { %p3073_p11 = por %p105_p7, %p33_p0  ;;  %p3077_p12 = por %p111_p8, %p39_p3 }
   0xf   : > { %s2701_s27 = sshll.u32 %s3000_s15, 2  ;;  %s2700_s28 = sshll.u32 %s137_s26, 2 }
  0x10   : > { %s145_s4 = scalar_lea.hbm %s4669_s0, %s2701_s27  ;;  %s141_s6 = scalar_lea.vmem [#allocation2], %s2700_s28 }
  0x11   : > { %s147_s5 = sshll.u32 %s145_s4, 4  ;;  %s149_s7 = sshll.u32 %s141_s6, 4  ;;  %s148_s5 = int_to_ptr.hbm [resolvable:$true] %s147_s5  ;;  %s150_s7 = int_to_ptr.vmem [resolvable:$true] %s149_s7 }
  0x12   : > { %p3088_p13 = pnand %p2866_p10, %p3062_p5  ;;  %p2702_p0 = scmp.ge.s32.totalorder %s3000_s15, 1 }
  0x13   : > { %p154_p1 = scmp.lt.s32.totalorder %s3000_s15, 3  ;;  %s138_s9 = scalar_lea.sflag [#allocation3], %s137_s26 }
  0x14   : > { %s2904_s10 = sshra.s32 %s148_s5, 4  ;;  %p2908_p3 = pneg %p3088_p13  ;;  %s2905_s10 = int_to_ptr.hbm [resolvable:$true] %s2904_s10 }
  0x15   : > { %s2906_s11 = scalar_lea.hbm %s2905_s10, 4  ;;  %s2911_s20 = scalar_lea.hbm %s4669_s0, 8 }
  0x16   : > { %p2907_p2 = scmp.ne.s32.totalorder %s2905_s10, %s2906_s11  ;;  %p2912_p5 = scmp.lt.s32.totalorder %s2905_s10, %s4669_s0 }
  0x17   : > { %p2913_p8 = scmp.lt.s32.totalorder %s2911_s20, %s2906_s11 }
  0x18   : > { %p2909_p4 = pnand %p2908_p3, %p2907_p2 }
  0x19   : > { %p2914_p10 = por %p2913_p8, %p2912_p5 }
  0x1a   : > { %p2910_p7 = pneg %p2909_p4 }
  0x1c   : > { %p2915_p9 = pnand %p2914_p10, %p2910_p7 }
  0x1e   : > { %2918 = shalt.err (!%p2915_p9)
}
  0x1f   : > { %2861 = dma.hbm_to_vmem [thread:$0]  (!%p3088_p13), %s148_s5, 64, %s150_s7, %s138_s9  }
  0x20   : > { %p155_p2 = pnand %p2702_p0, %p154_p1 }
  0x22   : > { %158 = sbr.rel (%p155_p2) target bundleno = 1396 (0x574), region = 32 }
  0x27   : > { %s3109_s26 = sand.u32 1, %s2992_s13  }
  0x28   : > { %s2703_s28 = sshll.u32 %s3109_s26, 2  ;;  %s161_s29 = scalar_lea.sflag [#allocation3], %s3109_s26 }
  0x29   : > { %s3115_s30 = scalar_lea.vmem [#allocation2], %s2703_s28 }
  0x2a   : > { %2979 = dma.done.wait (%p3066_p6), %s161_s29, 64  }
  0x2b   : > { %2981 = vsyncadd (%p3066_p6), %s161_s29, 4294967232  ;;  %v3002_v0 = vmov 0   ;;  %v375_v1 = vld [vmem:[%s4671_s2 + $0x78] sm:$0xff]  ;;  %v374_v2 = vld [vmem:[%s4671_s2 + $0x70] sm:$0xff]  ;;  %vm2599_vm0 = vcmask 1040384   ;;  %s2851_s10 = sshll.u32 %s3044_s16, 2 }
  0x2c   : > { %2903 = vset.pattern.permute.xlu2 %v3002_v0  ;;  %2902 = vset.pattern.permute.xlu1 %v3002_v0  ;;  %v206_v3 = vld [vmem:[%s4670_s1 + $0x78] sm:$0xff]  ;;  %v204_v4 = vld [vmem:[%s4670_s1 + $0x68] sm:$0xff]  ;;  %v203_v5 = vld [vmem:[%s4670_s1 + $0x60] sm:$0xff]  ;;  %s2622_s19 = scalar_lea.hbm %s4672_s3, %s2851_s10  ;;  %vm2601_vm1 = vcmask 1042434   ;;  %s187_s20 = scalar_lea.vmem [#allocation5], %s2703_s28  ;;  %vm2603_vm2 = vcmask 1041408  }
  0x2d   : > { %2901 = vset.pattern.permute.xlu0 %v3002_v0  ;;  %453 = vperm.xlu1 %2902, %v375_v1   ;;  %v205_v6 = vld [vmem:[%s4670_s1 + $0x70] sm:$0xff]  ;;  %v372_v7 = vld [vmem:[%s4671_s2 + $0x60] sm:$0xff]  ;;  %v202_v8 = vld [vmem:[%s4670_s1 + $0x58] sm:$0xff]  ;;  %s2624_s22 = sshll.u32 %s187_s20, 4  ;;  %s2626_s27 = sshll.u32 %s2622_s19, 4  ;;  %s2625_s22 = int_to_ptr.vmem [resolvable:$true] %s2624_s22  ;;  %s2627_s27 = int_to_ptr.hbm [resolvable:$true] %s2626_s27 }
  0x2e   : > { %448 = vperm.xlu2 %2903, %v374_v2   ;;  %284 = vperm.xlu0 %2901, %v206_v3   ;;  %v373_v9 = vld [vmem:[%s4671_s2 + $0x68] sm:$0xff]  ;;  %v371_v10 = vld [vmem:[%s4671_s2 + $0x58] sm:$0xff]  ;;  %v201_v12 = vld [vmem:[%s4670_s1 + $0x50] sm:$0xff]  ;;  %s2612_s16 = scalar_lea.sflag [#allocation4], %s3109_s26  ;;  %s2948_s29 = sshra.s32 %s2627_s27, 4  ;;  %s2949_s29 = int_to_ptr.hbm [resolvable:$true] %s2948_s29 }
  0x2f   : > { %v200_v11 = vld [vmem:[%s4670_s1 + $0x48] sm:$0xff]  ;;  %v199_v14 = vld [vmem:[%s4670_s1 + $0x40] sm:$0xff]  ;;  %v370_v15 = vld [vmem:[%s4671_s2 + $0x50] sm:$0xff]  ;;  %s2954_s5 = scalar_lea.hbm %s4672_s3, 8  ;;  %p2955_p0 = scmp.lt.s32.totalorder %s2949_s29, %s4672_s3 }
  0x30   : > { %v369_v13 = vld [vmem:[%s4671_s2 + $0x48] sm:$0xff]  ;;  %v368_v16 = vld [vmem:[%s4671_s2 + $0x40] sm:$0xff]  ;;  %v197_v17 = vld [vmem:[%s4670_s1 + $0x30] sm:$0xff] }
  0x31   : > { %v198_v18 = vld [vmem:[%s4670_s1 + $0x38] sm:$0xff]  ;;  %v366_v19 = vld [vmem:[%s4671_s2 + $0x30] sm:$0xff]  ;;  %v196_v20 = vld [vmem:[%s4670_s1 + $0x28] sm:$0xff] }
  0x32   : > { %v367_v21 = vld [vmem:[%s4671_s2 + $0x38] sm:$0xff]  ;;  %v365_v22 = vld [vmem:[%s4671_s2 + $0x28] sm:$0xff]  ;;  %v195_v24 = vld [vmem:[%s4670_s1 + $0x20] sm:$0xff] }
  0x33   : > { %v194_v23 = vld [vmem:[%s4670_s1 + $0x18] sm:$0xff]  ;;  %v193_v26 = vld [vmem:[%s4670_s1 + $0x10] sm:$0xff]  ;;  %v364_v27 = vld [vmem:[%s4671_s2 + $0x20] sm:$0xff] }
  0x34   : > { %v363_v25 = vld [vmem:[%s4671_s2 + $0x18] sm:$0xff]  ;;  %v362_v28 = vld [vmem:[%s4671_s2 + $0x10] sm:$0xff]  ;;  %v191_v29 = vld [vmem:[%s4670_s1] sm:$0xff] }
  0x35   : > { %274 = vperm.xlu1 %2902, %v204_v4   ;;  %v192_v30 = vld [vmem:[%s4670_s1 + $0x8] sm:$0xff]  ;;  %v360_v31 = vld [vmem:[%s4671_s2] sm:$0xff]  ;;  %v2736_v32 = vld [vmem:[%s4671_s2 + $0xf8] sm:$0xff] }
  0x36   : > { %269 = vperm.xlu2 %2903, %v203_v5   ;;  %279 = vperm.xlu0 %2901, %v205_v6   ;;  %v361_v33 = vld [vmem:[%s4671_s2 + $0x8] sm:$0xff]  ;;  %v2733_v35 = vld [vmem:[%s4671_s2 + $0xe0] sm:$0xff]  ;;  %v2735_v36 = vld [vmem:[%s4671_s2 + $0xf0] sm:$0xff] }
  0x37   : > { %v2734_v34 = vld [vmem:[%s4671_s2 + $0xe8] sm:$0xff]  ;;  %v2731_v37 = vld [vmem:[%s4671_s2 + $0xd0] sm:$0xff]  ;;  %v2732_v39 = vld [vmem:[%s4671_s2 + $0xd8] sm:$0xff] }
  0x38   : > { %v2730_v38 = vld [vmem:[%s4671_s2 + $0xc8] sm:$0xff]  ;;  %v2728_v41 = vld [vmem:[%s4671_s2 + $0xb8] sm:$0xff]  ;;  %v2727_v42 = vld [vmem:[%s4671_s2 + $0xb0] sm:$0xff] }
  0x39   : > { %v2729_v43 = vld [vmem:[%s4671_s2 + $0xc0] sm:$0xff]  ;;  %v2724_v46 = vld [vmem:[%s4671_s2 + $0x98] sm:$0xff]  ;;  %v2726_v48 = vld [vmem:[%s4671_s2 + $0xa8] sm:$0xff] }
  0x3a   : > { %v2725_v45 = vld [vmem:[%s4671_s2 + $0xa0] sm:$0xff]  ;;  %v2722_v59 = vld [vmem:[%s4671_s2 + $0x88] sm:$0xff]  ;;  %v2723_v62 = vld [vmem:[%s4671_s2 + $0x90] sm:$0xff] }
  0x3b   : > { %v190_v47 = vld [vmem:[%s3115_s30] sm:$0xf]  ;;  %s2950_s30 = scalar_lea.hbm %s2949_s29, 4 }
  0x3c   : > { %v3259_v49 = vperm.slane %v190_v47, 0  ;;  %v3261_v50 = vperm.slane %v190_v47, 1  ;;  %v3263_v51 = vperm.slane %v190_v47, 2  ;;  %v3265_v52 = vperm.slane %v190_v47, 3  ;;  %v2721_v60 = vld [vmem:[%s4671_s2 + $0x80] sm:$0xff]  ;;  %v2764_v47 = vld [vmem:[%s4671_s2 + $0x158] sm:$0xff]  ;;  %p2951_p6 = scmp.ne.s32.totalorder %s2949_s29, %s2950_s30  ;;  %p2956_p1 = scmp.lt.s32.totalorder %s2954_s5, %s2950_s30 }
  0x3d   : > { %264 = vperm.xlu1 %2902, %v202_v8  }
  0x3e   : > { %438 = vperm.xlu2 %2903, %v372_v7   ;;  %443 = vperm.xlu0 %2901, %v373_v9   ;;  %p2952_p9 = pnand %p2951_p6, %p3073_p11  ;;  %p2957_p3 = por %p2956_p1, %p2955_p0 }
  0x40   : > { %p2953_p13 = pneg %p2952_p9 }
  0x42   : > { %p2958_p4 = pnand %p2957_p3, %p2953_p13 }
  0x45   : > { %433 = vperm.xlu1 %2902, %v371_v10  }
  0x46   : > { %254 = vperm.xlu2 %2903, %v200_v11   ;;  %259 = vperm.xlu0 %2901, %v201_v12  }
  0x4d   : > { %249 = vperm.xlu1 %2902, %v199_v14   ;;  %v2766_v14 = vld [vmem:[%s4671_s2 + $0x168] sm:$0xff] }
  0x4e   : > { %423 = vperm.xlu2 %2903, %v369_v13   ;;  %428 = vperm.xlu0 %2901, %v370_v15   ;;  %v2767_v13 = vld [vmem:[%s4671_s2 + $0x170] sm:$0xff]  ;;  %v2768_v15 = vld [vmem:[%s4671_s2 + $0x178] sm:$0xff] }
  0x55   : > { %418 = vperm.xlu1 %2902, %v368_v16  }
  0x56   : > { %239 = vperm.xlu2 %2903, %v197_v17   ;;  %244 = vperm.xlu0 %2901, %v198_v18  }
  0x5d   : > { %234 = vperm.xlu1 %2902, %v196_v20  }
  0x5e   : > { %408 = vperm.xlu2 %2903, %v366_v19   ;;  %413 = vperm.xlu0 %2901, %v367_v21  }
  0x65   : > { %403 = vperm.xlu1 %2902, %v365_v22  }
  0x66   : > { %224 = vperm.xlu2 %2903, %v194_v23   ;;  %229 = vperm.xlu0 %2901, %v195_v24  }
  0x6d   : > { %219 = vperm.xlu1 %2902, %v193_v26  }
  0x6e   : > { %393 = vperm.xlu2 %2903, %v363_v25   ;;  %398 = vperm.xlu0 %2901, %v364_v27  }
  0x75   : > { %388 = vperm.xlu1 %2902, %v362_v28  }
  0x76   : > { %209 = vperm.xlu2 %2903, %v191_v29   ;;  %214 = vperm.xlu0 %2901, %v192_v30  }
  0x7d   : > { %378 = vperm.xlu1 %2902, %v360_v31  }
  0x7e   : > { %695 = vperm.xlu2 %2903, %v2736_v32   ;;  %383 = vperm.xlu0 %2901, %v361_v33  }
  0x85   : > { %685 = vperm.xlu1 %2902, %v2734_v34  }
  0x86   : > { %680 = vperm.xlu2 %2903, %v2733_v35   ;;  %690 = vperm.xlu0 %2901, %v2735_v36  }
  0x88   : > { %v449_v40 = vpop.permute.xlu2 %448 }
  0x8d   : > { %670 = vperm.xlu1 %2902, %v2731_v37  }
  0x8e   : > { %665 = vperm.xlu2 %2903, %v2730_v38   ;;  %675 = vperm.xlu0 %2901, %v2732_v39  }
  0x90   : > { %v3247_v44 = vpop.permute.xlu2 %269 }
  0x91   : > { %v344_v26 = vmul.f32 %v3259_v49, %v3247_v44  ;;  %v345_v27 = vmul.f32 %v3261_v50, %v3247_v44  ;;  %v346_v28 = vmul.f32 %v3263_v51, %v3247_v44  ;;  %v347_v34 = vmul.f32 %v3265_v52, %v3247_v44  ;;  %v2765_v44 = vld [vmem:[%s4671_s2 + $0x160] sm:$0xff] }
  0x95   : > { %655 = vperm.xlu1 %2902, %v2728_v41  }
  0x96   : > { %650 = vperm.xlu2 %2903, %v2727_v42   ;;  %660 = vperm.xlu0 %2901, %v2729_v43  }
  0x98   : > { %v3277_v61 = vpop.permute.xlu2 %438 }
  0x99   : > { %v504_v39 = vadd.f32 %v3277_v61, %v344_v26  ;;  %v506_v41 = vadd.f32 %v3277_v61, %v346_v28 }
  0x9d   : > { %640 = vperm.xlu1 %2902, %v2725_v45  }
  0x9e   : > { %635 = vperm.xlu2 %2903, %v2724_v46   ;;  %645 = vperm.xlu0 %2901, %v2726_v48   ;;  %v507_v48 = vadd.f32 %v3277_v61, %v347_v34 }
  0x9f   : > { %v454_v53 = vpop.permute.xlu1 %453 }
  0xa0   : > { %v285_v54 = vpop.permute.xlu0 %284  ;;  %v3295_v20 = vpop.permute.xlu2 %254 }
  0xa1   : > { %v356_v55 = vmul.f32 %v3259_v49, %v285_v54  ;;  %v357_v56 = vmul.f32 %v3261_v50, %v285_v54  ;;  %v358_v57 = vmul.f32 %v3263_v51, %v285_v54  ;;  %v359_v58 = vmul.f32 %v3265_v52, %v285_v54 }
  0xa2   : > { %v568_v54 = vmax.f32 %v504_v39, 0.0 }
  0xa3   : > { %v516_v63 = vadd.f32 %v454_v53, %v356_v55  ;;  %v517_v0 = vadd.f32 %v454_v53, %v357_v56  ;;  %v518_v1 = vadd.f32 %v454_v53, %v358_v57  ;;  %v519_v2 = vadd.f32 %v454_v53, %v359_v58  ;;  %v2763_v53 = vld [vmem:[%s4671_s2 + $0x150] sm:$0xff] }
  0xa5   : > { %625 = vperm.xlu1 %2902, %v2722_v59   ;;  %v580_v3 = vmax.f32 %v516_v63, 0.0  ;;  %v581_v4 = vmax.f32 %v517_v0, 0.0  ;;  %v582_v5 = vmax.f32 %v518_v1, 0.0  ;;  %v583_v6 = vmax.f32 %v519_v2, 0.0 }
  0xa6   : > { %620 = vperm.xlu2 %2903, %v2721_v60   ;;  %630 = vperm.xlu0 %2901, %v2723_v62   ;;  %v570_v60 = vmax.f32 %v506_v41, 0.0  ;;  %v571_v63 = vmax.f32 %v507_v48, 0.0 }
  0xa7   : > { %698 = vmatpush.msra.mxu0 %v580_v3  ;;  %763 = vmatpush.msra.mxu1 %v581_v4  ;;  %v275_v7 = vpop.permute.xlu1 %274 }
  0xa8   : > { %828 = vmatpush.msra.mxu2 %v582_v5  ;;  %893 = vmatpush.msra.mxu3 %v583_v6  ;;  %v280_v8 = vpop.permute.xlu0 %279  ;;  %v348_v25 = vmul.f32 %v3259_v49, %v275_v7  ;;  %v349_v30 = vmul.f32 %v3261_v50, %v275_v7  ;;  %v350_v31 = vmul.f32 %v3263_v51, %v275_v7  ;;  %v424_v58 = vpop.permute.xlu2 %423 }
  0xa9   : > { %v352_v9 = vmul.f32 %v3259_v49, %v280_v8  ;;  %v353_v10 = vmul.f32 %v3261_v50, %v280_v8  ;;  %v354_v11 = vmul.f32 %v3263_v51, %v280_v8  ;;  %v355_v12 = vmul.f32 %v3265_v52, %v280_v8 }
  0xaa   : > { %v351_v32 = vmul.f32 %v3265_v52, %v275_v7 }
  0xab   : > { %v512_v16 = vadd.f32 %v449_v40, %v352_v9  ;;  %v513_v17 = vadd.f32 %v449_v40, %v353_v10  ;;  %v514_v18 = vadd.f32 %v449_v40, %v354_v11  ;;  %v515_v19 = vadd.f32 %v449_v40, %v355_v12  ;;  %v2761_v9 = vld [vmem:[%s4671_s2 + $0x140] sm:$0xff]  ;;  %v2762_v10 = vld [vmem:[%s4671_s2 + $0x148] sm:$0xff]  ;;  %v2760_v11 = vld [vmem:[%s4671_s2 + $0x138] sm:$0xff] }
  0xac   : > { %v505_v40 = vadd.f32 %v3277_v61, %v345_v27 }
  0xad   : > { %1128 = vperm.xlu1 %2902, %v2767_v13   ;;  %v576_v21 = vmax.f32 %v512_v16, 0.0  ;;  %v577_v22 = vmax.f32 %v513_v17, 0.0  ;;  %v578_v23 = vmax.f32 %v514_v18, 0.0  ;;  %v579_v24 = vmax.f32 %v515_v19, 0.0 }
  0xae   : > { %1123 = vperm.xlu2 %2903, %v2766_v14   ;;  %1133 = vperm.xlu0 %2901, %v2768_v15   ;;  %v569_v59 = vmax.f32 %v505_v40, 0.0  ;;  %v332_v13 = vmul.f32 %v3259_v49, %v3295_v20  ;;  %v333_v14 = vmul.f32 %v3261_v50, %v3295_v20  ;;  %v334_v15 = vmul.f32 %v3263_v51, %v3295_v20 }
  0xaf   : > { %699 = vmatpush.msra.mxu0 %v576_v21  ;;  %764 = vmatpush.msra.mxu1 %v577_v22  ;;  %v265_v29 = vpop.permute.xlu1 %264  ;;  %v335_v22 = vmul.f32 %v3265_v52, %v3295_v20  ;;  %v2759_v20 = vld [vmem:[%s4671_s2 + $0x130] sm:$0xff] }
  0xb0   : > { %829 = vmatpush.msra.mxu2 %v578_v23  ;;  %894 = vmatpush.msra.mxu3 %v579_v24  ;;  %v444_v33 = vpop.permute.xlu0 %443  ;;  %v340_v55 = vmul.f32 %v3259_v49, %v265_v29  ;;  %v341_v56 = vmul.f32 %v3261_v50, %v265_v29  ;;  %v342_v57 = vmul.f32 %v3263_v51, %v265_v29  ;;  %v3347_v23 = vpop.permute.xlu2 %239 }
  0xb1   : > { %v508_v35 = vadd.f32 %v444_v33, %v348_v25  ;;  %v509_v36 = vadd.f32 %v444_v33, %v349_v30  ;;  %v510_v37 = vadd.f32 %v444_v33, %v350_v31  ;;  %v511_v38 = vadd.f32 %v444_v33, %v351_v32 }
  0xb2   : > { %v343_v62 = vmul.f32 %v3265_v52, %v265_v29  ;;  %v492_v28 = vadd.f32 %v424_v58, %v332_v13  ;;  %v493_v29 = vadd.f32 %v424_v58, %v333_v14  ;;  %v494_v30 = vadd.f32 %v424_v58, %v334_v15 }
  0xb3   : > { %v572_v42 = vmax.f32 %v508_v35, 0.0  ;;  %v573_v43 = vmax.f32 %v509_v36, 0.0  ;;  %v574_v45 = vmax.f32 %v510_v37, 0.0  ;;  %v575_v46 = vmax.f32 %v511_v38, 0.0  ;;  %v2758_v35 = vld [vmem:[%s4671_s2 + $0x128] sm:$0xff]  ;;  %v2757_v37 = vld [vmem:[%s4671_s2 + $0x120] sm:$0xff] }
  0xb4   : > { %v495_v36 = vadd.f32 %v424_v58, %v335_v22  ;;  %v556_v38 = vmax.f32 %v492_v28, 0.0  ;;  %v2800_v22 = vld [vmem:[%s4671_s2 + $0x1f8] sm:$0xff] }
  0xb5   : > { %700 = vmatpush.msra.mxu0 %v572_v42  ;;  %765 = vmatpush.msra.mxu1 %v573_v43  ;;  %v557_v42 = vmax.f32 %v493_v29, 0.0  ;;  %v558_v43 = vmax.f32 %v494_v30, 0.0 }
  0xb6   : > { %830 = vmatpush.msra.mxu2 %v574_v45  ;;  %895 = vmatpush.msra.mxu3 %v575_v46 }
  0xb7   : > { %1113 = vperm.xlu1 %2902, %v2764_v47   ;;  %1118 = vperm.xlu0 %2901, %v2765_v44   ;;  %v434_v61 = vpop.permute.xlu1 %433  ;;  %v559_v47 = vmax.f32 %v495_v36, 0.0 }
  0xb8   : > { %1108 = vperm.xlu2 %2903, %v2763_v53   ;;  %701 = vmatpush.msra.mxu0 %v568_v54  ;;  %v260_v0 = vpop.permute.xlu0 %259  ;;  %v500_v1 = vadd.f32 %v434_v61, %v340_v55  ;;  %v501_v2 = vadd.f32 %v434_v61, %v341_v56  ;;  %v502_v3 = vadd.f32 %v434_v61, %v342_v57 }
  0xb9   : > { %766 = vmatpush.msra.mxu1 %v569_v59  ;;  %831 = vmatpush.msra.mxu2 %v570_v60  ;;  %v503_v4 = vadd.f32 %v434_v61, %v343_v62  ;;  %v336_v12 = vmul.f32 %v3259_v49, %v260_v0  ;;  %v337_v17 = vmul.f32 %v3261_v50, %v260_v0  ;;  %v409_v59 = vpop.permute.xlu2 %408  ;;  %v2755_v61 = vld [vmem:[%s4671_s2 + $0x110] sm:$0xff]  ;;  %v2756_v62 = vld [vmem:[%s4671_s2 + $0x118] sm:$0xff] }
  0xba   : > { %896 = vmatpush.msra.mxu3 %v571_v63  ;;  %v564_v5 = vmax.f32 %v500_v1, 0.0  ;;  %v565_v6 = vmax.f32 %v501_v2, 0.0  ;;  %v566_v7 = vmax.f32 %v502_v3, 0.0  ;;  %v338_v18 = vmul.f32 %v3263_v51, %v260_v0  ;;  %v2754_v63 = vld [vmem:[%s4671_s2 + $0x108] sm:$0xff] }
  0xbb   : > { %v567_v8 = vmax.f32 %v503_v4, 0.0  ;;  %v339_v19 = vmul.f32 %v3265_v52, %v260_v0 }
  0xbc   : > { %702 = vmatpush.msra.mxu0 %v564_v5  ;;  %767 = vmatpush.msra.mxu1 %v565_v6  ;;  %v320_v6 = vmul.f32 %v3259_v49, %v3347_v23 }
  0xbd   : > { %832 = vmatpush.msra.mxu2 %v566_v7  ;;  %897 = vmatpush.msra.mxu3 %v567_v8  ;;  %v321_v7 = vmul.f32 %v3261_v50, %v3347_v23  ;;  %v322_v8 = vmul.f32 %v3263_v51, %v3347_v23 }
  0xbe   : > { %v480_v13 = vadd.f32 %v409_v59, %v320_v6 }
  0xbf   : > { %1098 = vperm.xlu1 %2902, %v2761_v9   ;;  %1103 = vperm.xlu0 %2901, %v2762_v10   ;;  %v250_v16 = vpop.permute.xlu1 %249  ;;  %v481_v14 = vadd.f32 %v409_v59, %v321_v7  ;;  %v482_v15 = vadd.f32 %v409_v59, %v322_v8 }
  0xc0   : > { %1093 = vperm.xlu2 %2903, %v2760_v11   ;;  %v429_v21 = vpop.permute.xlu0 %428  ;;  %v328_v39 = vmul.f32 %v3259_v49, %v250_v16  ;;  %v329_v40 = vmul.f32 %v3261_v50, %v250_v16  ;;  %v330_v41 = vmul.f32 %v3263_v51, %v250_v16  ;;  %v331_v46 = vmul.f32 %v3265_v52, %v250_v16 }
  0xc1   : > { %v496_v24 = vadd.f32 %v429_v21, %v336_v12  ;;  %v497_v25 = vadd.f32 %v429_v21, %v337_v17  ;;  %v498_v26 = vadd.f32 %v429_v21, %v338_v18  ;;  %v499_v27 = vadd.f32 %v429_v21, %v339_v19 }
  0xc2   : > { %v323_v16 = vmul.f32 %v3265_v52, %v3347_v23  ;;  %v2799_v23 = vld [vmem:[%s4671_s2 + $0x1f0] sm:$0xff] }
  0xc3   : > { %v560_v31 = vmax.f32 %v496_v24, 0.0  ;;  %v561_v32 = vmax.f32 %v497_v25, 0.0  ;;  %v562_v33 = vmax.f32 %v498_v26, 0.0  ;;  %v563_v34 = vmax.f32 %v499_v27, 0.0  ;;  %v2753_v24 = vld [vmem:[%s4671_s2 + $0x100] sm:$0xff]  ;;  %v225_v26 = vpop.permute.xlu2 %224 }
  0xc4   : > { %v483_v25 = vadd.f32 %v409_v59, %v323_v16  ;;  %v544_v27 = vmax.f32 %v480_v13, 0.0  ;;  %v309_v59 = vmul.f32 %v3261_v50, %v225_v26 }
  0xc5   : > { %703 = vmatpush.msra.mxu0 %v560_v31  ;;  %768 = vmatpush.msra.mxu1 %v561_v32  ;;  %v545_v31 = vmax.f32 %v481_v14, 0.0  ;;  %v546_v32 = vmax.f32 %v482_v15, 0.0 }
  0xc6   : > { %833 = vmatpush.msra.mxu2 %v562_v33  ;;  %898 = vmatpush.msra.mxu3 %v563_v34 }
  0xc7   : > { %1083 = vperm.xlu1 %2902, %v2758_v35   ;;  %1088 = vperm.xlu0 %2901, %v2759_v20   ;;  %v419_v45 = vpop.permute.xlu1 %418  ;;  %v547_v35 = vmax.f32 %v483_v25, 0.0 }
  0xc8   : > { %1078 = vperm.xlu2 %2903, %v2757_v37   ;;  %704 = vmatpush.msra.mxu0 %v556_v38  ;;  %v245_v44 = vpop.permute.xlu0 %244  ;;  %v488_v48 = vadd.f32 %v419_v45, %v328_v39  ;;  %v489_v53 = vadd.f32 %v419_v45, %v329_v40  ;;  %v490_v54 = vadd.f32 %v419_v45, %v330_v41 }
  0xc9   : > { %769 = vmatpush.msra.mxu1 %v557_v42  ;;  %834 = vmatpush.msra.mxu2 %v558_v43  ;;  %v491_v55 = vadd.f32 %v419_v45, %v331_v46  ;;  %v324_v0 = vmul.f32 %v3259_v49, %v245_v44  ;;  %v325_v2 = vmul.f32 %v3261_v50, %v245_v44  ;;  %v2797_v45 = vld [vmem:[%s4671_s2 + $0x1e0] sm:$0xff]  ;;  %v2798_v46 = vld [vmem:[%s4671_s2 + $0x1e8] sm:$0xff] }
  0xca   : > { %899 = vmatpush.msra.mxu3 %v559_v47  ;;  %v552_v56 = vmax.f32 %v488_v48, 0.0  ;;  %v553_v57 = vmax.f32 %v489_v53, 0.0  ;;  %v554_v58 = vmax.f32 %v490_v54, 0.0  ;;  %v326_v3 = vmul.f32 %v3263_v51, %v245_v44  ;;  %v2796_v47 = vld [vmem:[%s4671_s2 + $0x1d8] sm:$0xff] }
  0xcb   : > { %v555_v60 = vmax.f32 %v491_v55, 0.0  ;;  %v327_v4 = vmul.f32 %v3265_v52, %v245_v44  ;;  %v394_v48 = vpop.permute.xlu2 %393 }
  0xcc   : > { %705 = vmatpush.msra.mxu0 %v552_v56  ;;  %770 = vmatpush.msra.mxu1 %v553_v57 }
  0xcd   : > { %835 = vmatpush.msra.mxu2 %v554_v58  ;;  %900 = vmatpush.msra.mxu3 %v555_v60  ;;  %v308_v58 = vmul.f32 %v3259_v49, %v225_v26  ;;  %v310_v60 = vmul.f32 %v3263_v51, %v225_v26 }
  0xcf   : > { %1068 = vperm.xlu1 %2902, %v2755_v61   ;;  %1073 = vperm.xlu0 %2901, %v2756_v62   ;;  %v235_v1 = vpop.permute.xlu1 %234 }
  0xd0   : > { %1063 = vperm.xlu2 %2903, %v2754_v63   ;;  %v414_v5 = vpop.permute.xlu0 %413  ;;  %v316_v28 = vmul.f32 %v3259_v49, %v235_v1  ;;  %v317_v29 = vmul.f32 %v3261_v50, %v235_v1  ;;  %v318_v30 = vmul.f32 %v3263_v51, %v235_v1  ;;  %v319_v34 = vmul.f32 %v3265_v52, %v235_v1 }
  0xd1   : > { %v484_v9 = vadd.f32 %v414_v5, %v324_v0  ;;  %v485_v10 = vadd.f32 %v414_v5, %v325_v2  ;;  %v486_v11 = vadd.f32 %v414_v5, %v326_v3  ;;  %v487_v12 = vadd.f32 %v414_v5, %v327_v4 }
  0xd2   : > { %v468_v1 = vadd.f32 %v394_v48, %v308_v58  ;;  %v469_v2 = vadd.f32 %v394_v48, %v309_v59  ;;  %v470_v3 = vadd.f32 %v394_v48, %v310_v60  ;;  %v311_v4 = vmul.f32 %v3265_v52, %v225_v26  ;;  %v2787_v60 = vld [vmem:[%s4671_s2 + $0x190] sm:$0xff] }
  0xd3   : > { %v548_v17 = vmax.f32 %v484_v9, 0.0  ;;  %v549_v18 = vmax.f32 %v485_v10, 0.0  ;;  %v550_v19 = vmax.f32 %v486_v11, 0.0  ;;  %v551_v21 = vmax.f32 %v487_v12, 0.0  ;;  %v2794_v9 = vld [vmem:[%s4671_s2 + $0x1c8] sm:$0xff]  ;;  %v2795_v10 = vld [vmem:[%s4671_s2 + $0x1d0] sm:$0xff] }
  0xd4   : > { %v471_v11 = vadd.f32 %v394_v48, %v311_v4  ;;  %v2793_v12 = vld [vmem:[%s4671_s2 + $0x1c0] sm:$0xff]  ;;  %v532_v13 = vmax.f32 %v468_v1, 0.0  ;;  %v2706_v4 = vld [vmem:[%s4670_s1 + $0x88] sm:$0xff] }
  0xd5   : > { %706 = vmatpush.msra.mxu0 %v548_v17  ;;  %771 = vmatpush.msra.mxu1 %v549_v18  ;;  %v533_v17 = vmax.f32 %v469_v2, 0.0  ;;  %v534_v18 = vmax.f32 %v470_v3, 0.0  ;;  %v2785_v1 = vld [vmem:[%s4671_s2 + $0x180] sm:$0xff]  ;;  %v2786_v2 = vld [vmem:[%s4671_s2 + $0x188] sm:$0xff] }
  0xd6   : > { %836 = vmatpush.msra.mxu2 %v550_v19  ;;  %901 = vmatpush.msra.mxu3 %v551_v21  ;;  %v2817_v3 = vld [vmem:[%s4671_s2 + $0x200] sm:$0xff] }
  0xd7   : > { %1571 = vperm.xlu1 %2902, %v2800_v22   ;;  %1058 = vperm.xlu0 %2901, %v2753_v24   ;;  %v404_v33 = vpop.permute.xlu1 %403  ;;  %v535_v22 = vmax.f32 %v471_v11, 0.0  ;;  %v2823_v11 = vld [vmem:[%s4671_s2 + $0x230] sm:$0xff] }
  0xd8   : > { %1566 = vperm.xlu2 %2903, %v2799_v23   ;;  %707 = vmatpush.msra.mxu0 %v544_v27  ;;  %v230_v20 = vpop.permute.xlu0 %229  ;;  %v476_v36 = vadd.f32 %v404_v33, %v316_v28  ;;  %v477_v37 = vadd.f32 %v404_v33, %v317_v29  ;;  %v478_v38 = vadd.f32 %v404_v33, %v318_v30 }
  0xd9   : > { %772 = vmatpush.msra.mxu1 %v545_v31  ;;  %837 = vmatpush.msra.mxu2 %v546_v32  ;;  %v479_v39 = vadd.f32 %v404_v33, %v319_v34  ;;  %v312_v44 = vmul.f32 %v3259_v49, %v230_v20  ;;  %v313_v54 = vmul.f32 %v3261_v50, %v230_v20  ;;  %v2791_v32 = vld [vmem:[%s4671_s2 + $0x1b0] sm:$0xff]  ;;  %v2792_v33 = vld [vmem:[%s4671_s2 + $0x1b8] sm:$0xff]  ;;  %v210_v34 = vpop.permute.xlu2 %209 }
  0xda   : > { %902 = vmatpush.msra.mxu3 %v547_v35  ;;  %v540_v40 = vmax.f32 %v476_v36, 0.0  ;;  %v541_v41 = vmax.f32 %v477_v37, 0.0  ;;  %v542_v42 = vmax.f32 %v478_v38, 0.0  ;;  %v314_v55 = vmul.f32 %v3263_v51, %v230_v20  ;;  %v2790_v35 = vld [vmem:[%s4671_s2 + $0x1a8] sm:$0xff] }
  0xdb   : > { %v543_v43 = vmax.f32 %v479_v39, 0.0  ;;  %v315_v56 = vmul.f32 %v3265_v52, %v230_v20 }
  0xdc   : > { %708 = vmatpush.msra.mxu0 %v540_v40  ;;  %773 = vmatpush.msra.mxu1 %v541_v41  ;;  %v296_v41 = vmul.f32 %v3259_v49, %v210_v34 }
  0xdd   : > { %838 = vmatpush.msra.mxu2 %v542_v42  ;;  %903 = vmatpush.msra.mxu3 %v543_v43  ;;  %v297_v42 = vmul.f32 %v3261_v50, %v210_v34  ;;  %v298_v43 = vmul.f32 %v3263_v51, %v210_v34 }
  0xdf   : > { %1556 = vperm.xlu1 %2902, %v2797_v45   ;;  %1561 = vperm.xlu0 %2901, %v2798_v46   ;;  %v220_v53 = vpop.permute.xlu1 %219 }
  0xe0   : > { %1551 = vperm.xlu2 %2903, %v2796_v47   ;;  %v399_v57 = vpop.permute.xlu0 %398  ;;  %v304_v14 = vmul.f32 %v3259_v49, %v220_v53  ;;  %v305_v15 = vmul.f32 %v3261_v50, %v220_v53  ;;  %v306_v16 = vmul.f32 %v3263_v51, %v220_v53  ;;  %v307_v21 = vmul.f32 %v3265_v52, %v220_v53 }
  0xe1   : > { %v472_v61 = vadd.f32 %v399_v57, %v312_v44  ;;  %v473_v62 = vadd.f32 %v399_v57, %v313_v54  ;;  %v474_v63 = vadd.f32 %v399_v57, %v314_v55  ;;  %v475_v0 = vadd.f32 %v399_v57, %v315_v56 }
  0xe2   : > { %v299_v55 = vmul.f32 %v3265_v52, %v210_v34  ;;  %v2840_v34 = vld [vmem:[%s4670_s1 + $0x2b8] sm:$0xff] }
  0xe3   : > { %v536_v5 = vmax.f32 %v472_v61, 0.0  ;;  %v537_v6 = vmax.f32 %v473_v62, 0.0  ;;  %v538_v7 = vmax.f32 %v474_v63, 0.0  ;;  %v539_v8 = vmax.f32 %v475_v0, 0.0  ;;  %v2705_v63 = vld [vmem:[%s4670_s1 + $0x80] sm:$0xff] }
  0xe5   : > { %709 = vmatpush.msra.mxu0 %v536_v5  ;;  %774 = vmatpush.msra.mxu1 %v537_v6  ;;  %v2819_v5 = vld [vmem:[%s4671_s2 + $0x210] sm:$0xff]  ;;  %v2818_v6 = vld [vmem:[%s4671_s2 + $0x208] sm:$0xff] }
  0xe6   : > { %839 = vmatpush.msra.mxu2 %v538_v7  ;;  %904 = vmatpush.msra.mxu3 %v539_v8  ;;  %v2820_v7 = vld [vmem:[%s4671_s2 + $0x218] sm:$0xff]  ;;  %v2707_v8 = vld [vmem:[%s4670_s1 + $0x90] sm:$0xff] }
  0xe7   : > { %1541 = vperm.xlu1 %2902, %v2794_v9   ;;  %1546 = vperm.xlu0 %2901, %v2795_v10   ;;  %v389_v19 = vpop.permute.xlu1 %388  ;;  %v2822_v9 = vld [vmem:[%s4671_s2 + $0x228] sm:$0xff]  ;;  %v2821_v10 = vld [vmem:[%s4671_s2 + $0x220] sm:$0xff] }
  0xe8   : > { %1536 = vperm.xlu2 %2903, %v2793_v12   ;;  %710 = vmatpush.msra.mxu0 %v532_v13  ;;  %v215_v24 = vpop.permute.xlu0 %214  ;;  %v464_v25 = vadd.f32 %v389_v19, %v304_v14  ;;  %v465_v26 = vadd.f32 %v389_v19, %v305_v15  ;;  %v466_v23 = vadd.f32 %v389_v19, %v306_v16  ;;  %v2708_v12 = vld [vmem:[%s4670_s1 + $0x98] sm:$0xff]  ;;  %v2825_v13 = vld [vmem:[%s4671_s2 + $0x240] sm:$0xff]  ;;  %v2826_v15 = vld [vmem:[%s4671_s2 + $0x248] sm:$0xff] }
  0xe9   : > { %775 = vmatpush.msra.mxu1 %v533_v17  ;;  %840 = vmatpush.msra.mxu2 %v534_v18  ;;  %v467_v27 = vadd.f32 %v389_v19, %v307_v21  ;;  %v300_v20 = vmul.f32 %v3259_v49, %v215_v24  ;;  %v301_v37 = vmul.f32 %v3261_v50, %v215_v24  ;;  %v2788_v49 = vld [vmem:[%s4671_s2 + $0x198] sm:$0xff]  ;;  %v2789_v50 = vld [vmem:[%s4671_s2 + $0x1a0] sm:$0xff]  ;;  %v2827_v18 = vld [vmem:[%s4671_s2 + $0x250] sm:$0xff] }
  0xea   : > { %905 = vmatpush.msra.mxu3 %v535_v22  ;;  %v528_v28 = vmax.f32 %v464_v25, 0.0  ;;  %v529_v29 = vmax.f32 %v465_v26, 0.0  ;;  %v530_v30 = vmax.f32 %v466_v23, 0.0  ;;  %v302_v38 = vmul.f32 %v3263_v51, %v215_v24  ;;  %v2824_v14 = vld [vmem:[%s4671_s2 + $0x238] sm:$0xff]  ;;  %v2709_v16 = vld [vmem:[%s4670_s1 + $0xa0] sm:$0xff]  ;;  %v2710_v21 = vld [vmem:[%s4670_s1 + $0xa8] sm:$0xff] }
  0xeb   : > { %v531_v31 = vmax.f32 %v467_v27, 0.0  ;;  %v303_v39 = vmul.f32 %v3265_v52, %v215_v24  ;;  %v2828_v17 = vld [vmem:[%s4671_s2 + $0x258] sm:$0xff]  ;;  %v2829_v19 = vld [vmem:[%s4671_s2 + $0x260] sm:$0xff]  ;;  %v2831_v22 = vld [vmem:[%s4671_s2 + $0x270] sm:$0xff] }
  0xec   : > { %711 = vmatpush.msra.mxu0 %v528_v28  ;;  %776 = vmatpush.msra.mxu1 %v529_v29  ;;  %v2830_v24 = vld [vmem:[%s4671_s2 + $0x268] sm:$0xff]  ;;  %v2832_v25 = vld [vmem:[%s4671_s2 + $0x278] sm:$0xff]  ;;  %v2711_v26 = vld [vmem:[%s4670_s1 + $0xb0] sm:$0xff] }
  0xed   : > { %841 = vmatpush.msra.mxu2 %v530_v30  ;;  %906 = vmatpush.msra.mxu3 %v531_v31  ;;  %v2834_v23 = vld [vmem:[%s4670_s1 + $0x288] sm:$0xff]  ;;  %v2833_v27 = vld [vmem:[%s4670_s1 + $0x280] sm:$0xff]  ;;  %v2835_v28 = vld [vmem:[%s4670_s1 + $0x290] sm:$0xff] }
  0xee   : > { %v2712_v29 = vld [vmem:[%s4670_s1 + $0xb8] sm:$0xff]  ;;  %v2837_v30 = vld [vmem:[%s4670_s1 + $0x2a0] sm:$0xff] }
  0xef   : > { %1526 = vperm.xlu1 %2902, %v2791_v32   ;;  %1531 = vperm.xlu0 %2901, %v2792_v33   ;;  %v379_v36 = vpop.permute.xlu1 %378  ;;  %v2836_v31 = vld [vmem:[%s4670_s1 + $0x298] sm:$0xff]  ;;  %v2838_v32 = vld [vmem:[%s4670_s1 + $0x2a8] sm:$0xff]  ;;  %v2713_v33 = vld [vmem:[%s4670_s1 + $0xc0] sm:$0xff] }
  0xf0   : > { %1521 = vperm.xlu2 %2903, %v2790_v35   ;;  %v384_v40 = vpop.permute.xlu0 %383  ;;  %v456_v48 = vadd.f32 %v379_v36, %v296_v41  ;;  %v457_v53 = vadd.f32 %v379_v36, %v297_v42  ;;  %v458_v54 = vadd.f32 %v379_v36, %v298_v43  ;;  %v459_v51 = vadd.f32 %v379_v36, %v299_v55  ;;  %v2839_v35 = vld [vmem:[%s4670_s1 + $0x2b0] sm:$0xff]  ;;  %v2714_v36 = vld [vmem:[%s4670_s1 + $0xc8] sm:$0xff]  ;;  %v2845_v42 = vld [vmem:[%s4670_s1 + $0x2e0] sm:$0xff] }
  0xf1   : > { %v460_v45 = vadd.f32 %v384_v40, %v300_v20  ;;  %v461_v46 = vadd.f32 %v384_v40, %v301_v37  ;;  %v462_v47 = vadd.f32 %v384_v40, %v302_v38  ;;  %v463_v44 = vadd.f32 %v384_v40, %v303_v39  ;;  %v2841_v20 = vld [vmem:[%s4670_s1 + $0x2c0] sm:$0xff]  ;;  %v2843_v37 = vld [vmem:[%s4670_s1 + $0x2d0] sm:$0xff]  ;;  %v2842_v38 = vld [vmem:[%s4670_s1 + $0x2c8] sm:$0xff] }
  0xf2   : > { %v520_v52 = vmax.f32 %v456_v48, 0.0  ;;  %v521_v61 = vmax.f32 %v457_v53, 0.0  ;;  %v522_v62 = vmax.f32 %v458_v54, 0.0  ;;  %v523_v0 = vmax.f32 %v459_v51, 0.0  ;;  %v2844_v39 = vld [vmem:[%s4670_s1 + $0x2d8] sm:$0xff]  ;;  %v2715_v40 = vld [vmem:[%s4670_s1 + $0xd0] sm:$0xff] }
  0xf3   : > { %v524_v56 = vmax.f32 %v460_v45, 0.0  ;;  %v525_v57 = vmax.f32 %v461_v46, 0.0  ;;  %v526_v58 = vmax.f32 %v462_v47, 0.0  ;;  %v527_v59 = vmax.f32 %v463_v44, 0.0  ;;  %v2846_v41 = vld [vmem:[%s4670_s1 + $0x2e8] sm:$0xff]  ;;  %v2847_v43 = vld [vmem:[%s4670_s1 + $0x2f0] sm:$0xff] }
  0xf4   : > { %v2716_v45 = vld [vmem:[%s4670_s1 + $0xd8] sm:$0xff]  ;;  %v2849_v46 = vld [vmem:[%s4671_s2 + $0x280] sm:$0xff]  ;;  %v2718_v48 = vld [vmem:[%s4670_s1 + $0xe8] sm:$0xff] }
  0xf5   : > { %712 = vmatpush.msra.mxu0 %v524_v56  ;;  %777 = vmatpush.msra.mxu1 %v525_v57  ;;  %v2848_v47 = vld [vmem:[%s4670_s1 + $0x2f8] sm:$0xff]  ;;  %v2717_v44 = vld [vmem:[%s4670_s1 + $0xe0] sm:$0xff]  ;;  %v2719_v53 = vld [vmem:[%s4670_s1 + $0xf0] sm:$0xff] }
  0xf6   : > { %842 = vmatpush.msra.mxu2 %v526_v58  ;;  %907 = vmatpush.msra.mxu3 %v527_v59  ;;  %v2720_v54 = vld [vmem:[%s4670_s1 + $0xf8] sm:$0xff] }
  0xf7   : > { %1511 = vperm.xlu1 %2902, %v2788_v49   ;;  %1516 = vperm.xlu0 %2901, %v2789_v50  }
  0xf8   : > { %1506 = vperm.xlu2 %2903, %v2787_v60   ;;  %713 = vmatpush.msra.mxu0 %v520_v52 }
  0xf9   : > { %778 = vmatpush.msra.mxu1 %v521_v61  ;;  %843 = vmatpush.msra.mxu2 %v522_v62 }
  0xfa   : > { %908 = vmatpush.msra.mxu3 %v523_v0  ;;  %714 = vmatmul.f32.vlgmr.msra.gmra.mxu0 %v2705_v63 }
  0xfb   : > { %779 = vmatmul.f32.vlgmr.msra.gmra.mxu1 %v2705_v63  ;;  %844 = vmatmul.f32.vlgmr.msra.gmra.mxu2 %v2705_v63 }
  0xfc   : > { %909 = vmatmul.f32.vlgmr.msra.gmra.mxu3 %v2705_v63 }
  0xff   : > { %1496 = vperm.xlu1 %2902, %v2785_v1   ;;  %1501 = vperm.xlu0 %2901, %v2786_v2  }
 0x100   : > { %1934 = vperm.xlu2 %2903, %v2817_v3  }
 0x102   : > { %717 = vmatmul.f32.gmra.mxu0 %v2706_v4 }
 0x103   : > { %782 = vmatmul.f32.gmra.mxu1 %v2706_v4  ;;  %847 = vmatmul.f32.gmra.mxu2 %v2706_v4 }
 0x104   : > { %912 = vmatmul.f32.gmra.mxu3 %v2706_v4 }
 0x107   : > { %1944 = vperm.xlu1 %2902, %v2819_v5   ;;  %1939 = vperm.xlu0 %2901, %v2818_v6  }
 0x108   : > { %1949 = vperm.xlu2 %2903, %v2820_v7  }
 0x10a   : > { %720 = vmatmul.f32.gmra.mxu0 %v2707_v8 }
 0x10b   : > { %785 = vmatmul.f32.gmra.mxu1 %v2707_v8  ;;  %850 = vmatmul.f32.gmra.mxu2 %v2707_v8 }
 0x10c   : > { %915 = vmatmul.f32.gmra.mxu3 %v2707_v8 }
 0x10f   : > { %1959 = vperm.xlu1 %2902, %v2822_v9   ;;  %1954 = vperm.xlu0 %2901, %v2821_v10  }
 0x110   : > { %1964 = vperm.xlu2 %2903, %v2823_v11  }
 0x112   : > { %723 = vmatmul.f32.gmra.mxu0 %v2708_v12 }
 0x113   : > { %788 = vmatmul.f32.gmra.mxu1 %v2708_v12  ;;  %853 = vmatmul.f32.gmra.mxu2 %v2708_v12 }
 0x114   : > { %918 = vmatmul.f32.gmra.mxu3 %v2708_v12 }
 0x117   : > { %1974 = vperm.xlu1 %2902, %v2825_v13   ;;  %1969 = vperm.xlu0 %2901, %v2824_v14  }
 0x118   : > { %1979 = vperm.xlu2 %2903, %v2826_v15  }
 0x11a   : > { %726 = vmatmul.f32.gmra.mxu0 %v2709_v16 }
 0x11b   : > { %791 = vmatmul.f32.gmra.mxu1 %v2709_v16  ;;  %856 = vmatmul.f32.gmra.mxu2 %v2709_v16 }
 0x11c   : > { %921 = vmatmul.f32.gmra.mxu3 %v2709_v16 }
 0x11f   : > { %1989 = vperm.xlu1 %2902, %v2828_v17   ;;  %1984 = vperm.xlu0 %2901, %v2827_v18  }
 0x120   : > { %1994 = vperm.xlu2 %2903, %v2829_v19  }
 0x122   : > { %729 = vmatmul.f32.gmra.mxu0 %v2710_v21 }
 0x123   : > { %794 = vmatmul.f32.gmra.mxu1 %v2710_v21  ;;  %859 = vmatmul.f32.gmra.mxu2 %v2710_v21 }
 0x124   : > { %924 = vmatmul.f32.gmra.mxu3 %v2710_v21 }
 0x127   : > { %2004 = vperm.xlu1 %2902, %v2831_v22   ;;  %1999 = vperm.xlu0 %2901, %v2830_v24  }
 0x128   : > { %2009 = vperm.xlu2 %2903, %v2832_v25  }
 0x12a   : > { %732 = vmatmul.f32.gmra.mxu0 %v2711_v26 }
 0x12b   : > { %797 = vmatmul.f32.gmra.mxu1 %v2711_v26  ;;  %862 = vmatmul.f32.gmra.mxu2 %v2711_v26 }
 0x12c   : > { %927 = vmatmul.f32.gmra.mxu3 %v2711_v26 }
 0x12f   : > { %2360 = vperm.xlu1 %2902, %v2834_v23   ;;  %2355 = vperm.xlu0 %2901, %v2833_v27  }
 0x130   : > { %2365 = vperm.xlu2 %2903, %v2835_v28  }
 0x132   : > { %735 = vmatmul.f32.gmra.mxu0 %v2712_v29 }
 0x133   : > { %800 = vmatmul.f32.gmra.mxu1 %v2712_v29  ;;  %865 = vmatmul.f32.gmra.mxu2 %v2712_v29 }
 0x134   : > { %930 = vmatmul.f32.gmra.mxu3 %v2712_v29 }
 0x137   : > { %2375 = vperm.xlu1 %2902, %v2837_v30   ;;  %2370 = vperm.xlu0 %2901, %v2836_v31  }
 0x138   : > { %2380 = vperm.xlu2 %2903, %v2838_v32  }
 0x13a   : > { %738 = vmatmul.f32.gmra.mxu0 %v2713_v33 }
 0x13b   : > { %803 = vmatmul.f32.gmra.mxu1 %v2713_v33  ;;  %868 = vmatmul.f32.gmra.mxu2 %v2713_v33 }
 0x13c   : > { %933 = vmatmul.f32.gmra.mxu3 %v2713_v33 }
 0x13f   : > { %2390 = vperm.xlu1 %2902, %v2840_v34   ;;  %2385 = vperm.xlu0 %2901, %v2839_v35  }
 0x140   : > { %2395 = vperm.xlu2 %2903, %v2841_v20  }
 0x142   : > { %741 = vmatmul.f32.gmra.mxu0 %v2714_v36 }
 0x143   : > { %806 = vmatmul.f32.gmra.mxu1 %v2714_v36  ;;  %871 = vmatmul.f32.gmra.mxu2 %v2714_v36 }
 0x144   : > { %936 = vmatmul.f32.gmra.mxu3 %v2714_v36 }
 0x147   : > { %2405 = vperm.xlu1 %2902, %v2843_v37   ;;  %2400 = vperm.xlu0 %2901, %v2842_v38   ;;  %v696_v37 = vpop.permute.xlu2 %695  ;;  %v691_v38 = vpop.permute.xlu0 %690 }
 0x148   : > { %2410 = vperm.xlu2 %2903, %v2844_v39  }
 0x14a   : > { %744 = vmatmul.f32.gmra.mxu0 %v2715_v40 }
 0x14b   : > { %809 = vmatmul.f32.gmra.mxu1 %v2715_v40  ;;  %874 = vmatmul.f32.gmra.mxu2 %v2715_v40 }
 0x14c   : > { %939 = vmatmul.f32.gmra.mxu3 %v2715_v40 }
 0x14f   : > { %2420 = vperm.xlu1 %2902, %v2846_v41   ;;  %2415 = vperm.xlu0 %2901, %v2845_v42  }
 0x150   : > { %2425 = vperm.xlu2 %2903, %v2847_v43   ;;  %v686_v43 = vpop.permute.xlu1 %685 }
 0x152   : > { %747 = vmatmul.f32.gmra.mxu0 %v2716_v45 }
 0x153   : > { %812 = vmatmul.f32.gmra.mxu1 %v2716_v45  ;;  %877 = vmatmul.f32.gmra.mxu2 %v2716_v45 }
 0x154   : > { %942 = vmatmul.f32.gmra.mxu3 %v2716_v45  ;;  %v681_v45 = vpop.permute.xlu2 %680 }
 0x157   : > { %2585 = vperm.xlu1 %2902, %v2849_v46   ;;  %2430 = vperm.xlu0 %2901, %v2848_v47  }
 0x15a   : > { %750 = vmatmul.f32.gmra.mxu0 %v2717_v44 }
 0x15b   : > { %815 = vmatmul.f32.gmra.mxu1 %v2717_v44  ;;  %880 = vmatmul.f32.gmra.mxu2 %v2717_v44 }
 0x15c   : > { %945 = vmatmul.f32.gmra.mxu3 %v2717_v44 }
 0x162   : > { %753 = vmatmul.f32.gmra.mxu0 %v2718_v48 }
 0x163   : > { %818 = vmatmul.f32.gmra.mxu1 %v2718_v48  ;;  %883 = vmatmul.f32.gmra.mxu2 %v2718_v48 }
 0x164   : > { %948 = vmatmul.f32.gmra.mxu3 %v2718_v48 }
 0x16a   : > { %756 = vmatmul.f32.gmra.mxu0 %v2719_v53 }
 0x16b   : > { %821 = vmatmul.f32.gmra.mxu1 %v2719_v53  ;;  %886 = vmatmul.f32.gmra.mxu2 %v2719_v53 }
 0x16c   : > { %951 = vmatmul.f32.gmra.mxu3 %v2719_v53  ;;  %v3695_v53 = vpop.permute.xlu0 %675 }
 0x172   : > { %759 = vmatmul.f32.gmra.mxu0 %v2720_v54 }
 0x173   : > { %824 = vmatmul.f32.gmra.mxu1 %v2720_v54  ;;  %889 = vmatmul.f32.gmra.mxu2 %v2720_v54 }
 0x174   : > { %954 = vmatmul.f32.gmra.mxu3 %v2720_v54  ;;  %v3697_v54 = vpop.permute.xlu1 %670 }
 0x177   : > { %v3605_v55 = vpop.f32.mrf.mxu0 }
 0x178   : > { %4678 = vst [vmem:[#allocation8_spill] sm:$0xff] %v3605_v55  ;;  %v3607_v56 = vpop.f32.mrf.mxu1 }
 0x179   : > { %4679 = vst [vmem:[#allocation9_spill] sm:$0xff] %v3607_v56 }
 0x17e   : > { %v3609_v57 = vpop.f32.mrf.mxu2 }
 0x17f   : > { %4680 = vst [vmem:[#allocation10_spill] sm:$0xff] %v3609_v57  ;;  %v3611_v58 = vpop.f32.mrf.mxu3  ;;  %v3613_v59 = vpop.f32.mrf.mxu0 }
 0x180   : > { %4681 = vst [vmem:[#allocation11_spill] sm:$0xff] %v3611_v58  ;;  %v3615_v49 = vpop.f32.mrf.mxu1  ;;  %v3699_v58 = vpop.permute.xlu2 %665 }
 0x181   : > { %4682 = vst [vmem:[#allocation12_spill] sm:$0xff] %v3613_v59 }
 0x182   : > { %4683 = vst [vmem:[#allocation13_spill] sm:$0xff] %v3615_v49 }
 0x186   : > { %v3617_v50 = vpop.f32.mrf.mxu2 }
 0x187   : > { %4684 = vst [vmem:[#allocation14_spill] sm:$0xff] %v3617_v50  ;;  %v3619_v51 = vpop.f32.mrf.mxu3  ;;  %v3621_v60 = vpop.f32.mrf.mxu0 }
 0x188   : > { %4685 = vst [vmem:[#allocation15_spill] sm:$0xff] %v3619_v51  ;;  %v3623_v52 = vpop.f32.mrf.mxu1 }
 0x189   : > { %4686 = vst [vmem:[#allocation16_spill] sm:$0xff] %v3621_v60 }
 0x18a   : > { %4687 = vst [vmem:[#allocation17_spill] sm:$0xff] %v3623_v52  ;;  %v3703_v52 = vpop.permute.xlu1 %655 }
 0x18e   : > { %v3625_v61 = vpop.f32.mrf.mxu2 }
 0x18f   : > { %4688 = vst [vmem:[#allocation18_spill] sm:$0xff] %v3625_v61  ;;  %v3627_v62 = vpop.f32.mrf.mxu3  ;;  %v3629_v63 = vpop.f32.mrf.mxu0 }
 0x190   : > { %4689 = vst [vmem:[#allocation19_spill] sm:$0xff] %v3627_v62  ;;  %v3631_v0 = vpop.f32.mrf.mxu1 }
 0x196   : > { %v3633_v1 = vpop.f32.mrf.mxu2 }
 0x197   : > { %4690 = vst [vmem:[#allocation20_spill] sm:$0xff] %v3633_v1  ;;  %v3635_v2 = vpop.f32.mrf.mxu3  ;;  %v3637_v3 = vpop.f32.mrf.mxu0 }
 0x198   : > { %4691 = vst [vmem:[#allocation21_spill] sm:$0xff] %v3635_v2  ;;  %v3639_v4 = vpop.f32.mrf.mxu1 }
 0x19e   : > { %v3641_v5 = vpop.f32.mrf.mxu2 }
 0x19f   : > { %4692 = vst [vmem:[#allocation22_spill] sm:$0xff] %v3641_v5  ;;  %v3643_v6 = vpop.f32.mrf.mxu3  ;;  %v3645_v7 = vpop.f32.mrf.mxu0 }
 0x1a0   : > { %4693 = vst [vmem:[#allocation23_spill] sm:$0xff] %v3643_v6  ;;  %v3647_v8 = vpop.f32.mrf.mxu1  ;;  %v3701_v5 = vpop.permute.xlu0 %660 }
 0x1a6   : > { %v3649_v9 = vpop.f32.mrf.mxu2 }
 0x1a7   : > { %4694 = vst [vmem:[#allocation24_spill] sm:$0xff] %v3649_v9  ;;  %v3651_v10 = vpop.f32.mrf.mxu3  ;;  %v3653_v11 = vpop.f32.mrf.mxu0 }
 0x1a8   : > { %4695 = vst [vmem:[#allocation25_spill] sm:$0xff] %v3651_v10  ;;  %v3655_v12 = vpop.f32.mrf.mxu1 }
 0x1ae   : > { %v3657_v13 = vpop.f32.mrf.mxu2 }
 0x1af   : > { %v3659_v14 = vpop.f32.mrf.mxu3  ;;  %v3661_v15 = vpop.f32.mrf.mxu0 }
 0x1b0   : > { %4696 = vst [vmem:[#allocation26_spill] sm:$0xff] %v3659_v14  ;;  %v3663_v16 = vpop.f32.mrf.mxu1 }
 0x1b6   : > { %v3665_v17 = vpop.f32.mrf.mxu2 }
 0x1b7   : > { %v3667_v18 = vpop.f32.mrf.mxu3  ;;  %v3669_v19 = vpop.f32.mrf.mxu0 }
 0x1b8   : > { %v3671_v21 = vpop.f32.mrf.mxu1 }
 0x1be   : > { %v3673_v22 = vpop.f32.mrf.mxu2 }
 0x1bf   : > { %v3675_v24 = vpop.f32.mrf.mxu3  ;;  %v3677_v25 = vpop.f32.mrf.mxu0 }
 0x1c0   : > { %v3679_v26 = vpop.f32.mrf.mxu1 }
 0x1c6   : > { %v3681_v23 = vpop.f32.mrf.mxu2 }
 0x1c7   : > { %v3683_v27 = vpop.f32.mrf.mxu3  ;;  %v745_v28 = vpop.f32.mrf.mxu0 }
 0x1c8   : > { %v810_v29 = vpop.f32.mrf.mxu1 }
 0x1ce   : > { %v3685_v30 = vpop.f32.mrf.mxu2 }
 0x1cf   : > { %v3687_v31 = vpop.f32.mrf.mxu3  ;;  %v748_v32 = vpop.f32.mrf.mxu0 }
 0x1d0   : > { %v813_v33 = vpop.f32.mrf.mxu1 }
 0x1d6   : > { %v3689_v34 = vpop.f32.mrf.mxu2 }
 0x1d7   : > { %v3691_v35 = vpop.f32.mrf.mxu3  ;;  %v751_v20 = vpop.f32.mrf.mxu0 }
 0x1d8   : > { %v816_v36 = vpop.f32.mrf.mxu1  ;;  %v752_v59 = vadd.f32 %v751_v20, %v681_v45 }
 0x1d9   : > { %v817_v14 = vadd.f32 %v816_v36, %v681_v45 }
 0x1de   : > { %v881_v39 = vpop.f32.mrf.mxu2 }
 0x1df   : > { %v3693_v40 = vpop.f32.mrf.mxu3  ;;  %v754_v41 = vpop.f32.mrf.mxu0 }
 0x1e0   : > { %v819_v42 = vpop.f32.mrf.mxu1  ;;  %v755_v6 = vadd.f32 %v754_v41, %v686_v43 }
 0x1e1   : > { %v820_v49 = vadd.f32 %v819_v42, %v686_v43 }
 0x1e6   : > { %v884_v46 = vpop.f32.mrf.mxu2 }
 0x1e7   : > { %v949_v47 = vpop.f32.mrf.mxu3  ;;  %v757_v44 = vpop.f32.mrf.mxu0 }
 0x1e8   : > { %v822_v48 = vpop.f32.mrf.mxu1  ;;  %v758_v62 = vadd.f32 %v757_v44, %v691_v38  ;;  %v749_v44 = vadd.f32 %v748_v32, %v3695_v53  ;;  %v885_v32 = vadd.f32 %v884_v46, %v686_v43 }
 0x1e9   : > { %v823_v1 = vadd.f32 %v822_v48, %v691_v38  ;;  %v1010_v48 = vmax.f32 %v755_v6, 0.0  ;;  %v1007_v6 = vmax.f32 %v817_v14, 0.0  ;;  %v947_v14 = vadd.f32 %v3693_v40, %v681_v45 }
 0x1ea   : > { %v1014_v9 = vmax.f32 %v758_v62, 0.0  ;;  %v746_v62 = vadd.f32 %v745_v28, %v3697_v54  ;;  %v1012_v46 = vmax.f32 %v885_v32, 0.0  ;;  %v944_v40 = vadd.f32 %v3691_v35, %v3695_v53 }
 0x1eb   : > { %v1015_v60 = vmax.f32 %v823_v1, 0.0  ;;  %v1006_v1 = vmax.f32 %v752_v59, 0.0  ;;  %v941_v35 = vadd.f32 %v3687_v31, %v3697_v54  ;;  %v938_v31 = vadd.f32 %v3683_v27, %v3699_v58 }
 0x1ed   : > { %v1001_v27 = vmax.f32 %v941_v35, 0.0 }
 0x1ee   : > { %v887_v57 = vpop.f32.mrf.mxu2 }
 0x1ef   : > { %v952_v51 = vpop.f32.mrf.mxu3  ;;  %v760_v50 = vpop.f32.mrf.mxu0  ;;  %v888_v41 = vadd.f32 %v887_v57, %v691_v38  ;;  %v950_v57 = vadd.f32 %v949_v47, %v686_v43  ;;  %v805_v43 = vadd.f32 %v3671_v21, %v3701_v5  ;;  %v802_v21 = vadd.f32 %v3663_v16, %v3703_v52 }
 0x1f0   : > { %v761_v61 = vadd.f32 %v760_v50, %v696_v37  ;;  %v825_v2 = vpop.f32.mrf.mxu1  ;;  %v953_v20 = vadd.f32 %v952_v51, %v691_v38  ;;  %v882_v51 = vadd.f32 %v881_v39, %v681_v45  ;;  %v3718_v38 = vpop.permute.xlu0 %645 }
 0x1f1   : > { %v826_v56 = vadd.f32 %v825_v2, %v696_v37  ;;  %v3706_v2 = vpop.permute.xlu2 %650  ;;  %v1016_v28 = vmax.f32 %v888_v41, 0.0  ;;  %v1013_v45 = vmax.f32 %v950_v57, 0.0 }
 0x1f2   : > { %v1018_v55 = vmax.f32 %v761_v61, 0.0  ;;  %v814_v61 = vadd.f32 %v813_v33, %v3695_v53  ;;  %v743_v33 = vadd.f32 %v3677_v25, %v3699_v58  ;;  %v1017_v25 = vmax.f32 %v953_v20, 0.0 }
 0x1f3   : > { %v1019_v10 = vmax.f32 %v826_v56, 0.0  ;;  %v799_v16 = vadd.f32 %v3655_v12, %v3706_v2  ;;  %v796_v12 = vadd.f32 %v3647_v8, %v3718_v38  ;;  %v987_v20 = vmax.f32 %v802_v21, 0.0 }
 0x1f4   : > { %1136 = vmatpush.msrb.mxu0 %v1018_v55  ;;  %v1011_v55 = vmax.f32 %v820_v49, 0.0  ;;  %v808_v49 = vadd.f32 %v3679_v26, %v3699_v58  ;;  %v1003_v59 = vmax.f32 %v814_v61, 0.0  ;;  %v879_v26 = vadd.f32 %v3689_v34, %v3695_v53 }
 0x1f5   : > { %1201 = vmatpush.msrb.mxu1 %v1019_v10  ;;  %v811_v10 = vadd.f32 %v810_v29, %v3697_v54  ;;  %v740_v29 = vadd.f32 %v3669_v19, %v3701_v5  ;;  %v737_v19 = vadd.f32 %v3661_v15, %v3703_v52  ;;  %v994_v47 = vmax.f32 %v743_v33, 0.0 }
 0x1f6   : > { %v890_v50 = vpop.f32.mrf.mxu2  ;;  %1137 = vmatpush.msrb.mxu0 %v1014_v9  ;;  %v876_v34 = vadd.f32 %v3685_v30, %v3697_v54  ;;  %v1008_v61 = vmax.f32 %v882_v51, 0.0  ;;  %v734_v15 = vadd.f32 %v3653_v11, %v3706_v2  ;;  %v1009_v53 = vmax.f32 %v947_v14, 0.0 }
 0x1f7   : > { %v891_v42 = vadd.f32 %v890_v50, %v696_v37  ;;  %v955_v56 = vpop.f32.mrf.mxu3  ;;  %1202 = vmatpush.msrb.mxu1 %v1015_v60  ;;  %v1002_v60 = vmax.f32 %v749_v44, 0.0  ;;  %v999_v39 = vmax.f32 %v811_v10, 0.0  ;;  %v3728_v44 = vpop.permute.xlu1 %640  ;;  %v990_v41 = vmax.f32 %v740_v29, 0.0 }
 0x1f8   : > { %v956_v36 = vadd.f32 %v955_v56, %v696_v37  ;;  %1138 = vmatpush.msrb.mxu0 %v1010_v48  ;;  %v998_v37 = vmax.f32 %v746_v62, 0.0  ;;  %v995_v48 = vmax.f32 %v808_v49, 0.0  ;;  %v873_v30 = vadd.f32 %v3681_v23, %v3699_v58 }
 0x1f9   : > { %1203 = vmatpush.msrb.mxu1 %v1011_v55  ;;  %v1020_v9 = vmax.f32 %v891_v42, 0.0  ;;  %v3738_v42 = vpop.permute.xlu2 %635  ;;  %v991_v56 = vmax.f32 %v805_v43, 0.0  ;;  %v1004_v55 = vmax.f32 %v879_v26, 0.0  ;;  %v731_v11 = vadd.f32 %v3645_v7, %v3718_v38  ;;  %v4702_v43 = vld [vmem:[#allocation25_spill] sm:$0xff] }
 0x1fa   : > { %1139 = vmatpush.msrb.mxu0 %v1006_v1  ;;  %v1021_v50 = vmax.f32 %v956_v36, 0.0  ;;  %v1005_v54 = vmax.f32 %v944_v40, 0.0  ;;  %v986_v62 = vmax.f32 %v737_v19, 0.0  ;;  %v870_v23 = vadd.f32 %v3673_v22, %v3701_v5  ;;  %v4703_v19 = vld [vmem:[#allocation13_spill] sm:$0xff] }
 0x1fb   : > { %1204 = vmatpush.msrb.mxu1 %v1007_v6  ;;  %1266 = vmatpush.msrb.mxu2 %v1020_v9  ;;  %v1000_v36 = vmax.f32 %v876_v34, 0.0  ;;  %v728_v7 = vadd.f32 %v3637_v3, %v3728_v44  ;;  %v935_v58 = vadd.f32 %v3675_v24, %v3701_v5  ;;  %v982_v1 = vmax.f32 %v734_v15, 0.0  ;;  %v631_v9 = vpop.permute.xlu0 %630  ;;  %v4706_v15 = vld [vmem:[#allocation23_spill] sm:$0xff] }
 0x1fc   : > { %1331 = vmatpush.msrb.mxu3 %v1021_v50  ;;  %1140 = vmatpush.msrb.mxu0 %v1002_v60  ;;  %v793_v8 = vadd.f32 %v3639_v4, %v3728_v44  ;;  %v867_v22 = vadd.f32 %v3665_v17, %v3703_v52  ;;  %v983_v10 = vmax.f32 %v799_v16, 0.0  ;;  %v996_v32 = vmax.f32 %v873_v30, 0.0  ;;  %v4697_v50 = vld [vmem:[#allocation16_spill] sm:$0xff]  ;;  %v4698_v60 = vld [vmem:[#allocation26_spill] sm:$0xff] }
 0x1fd   : > { %1205 = vmatpush.msrb.mxu1 %v1003_v59  ;;  %1267 = vmatpush.msrb.mxu2 %v1016_v28  ;;  %v725_v3 = vadd.f32 %v3629_v63, %v3738_v42  ;;  %v932_v5 = vadd.f32 %v3667_v18, %v3703_v52  ;;  %v997_v24 = vmax.f32 %v938_v31, 0.0  ;;  %v978_v6 = vmax.f32 %v731_v11, 0.0  ;;  %v4699_v59 = vld [vmem:[#allocation17_spill] sm:$0xff]  ;;  %v4708_v30 = vld [vmem:[#allocation20_spill] sm:$0xff] }
 0x1fe   : > { %1332 = vmatpush.msrb.mxu3 %v1017_v25  ;;  %1141 = vmatpush.msrb.mxu0 %v998_v37  ;;  %v790_v4 = vadd.f32 %v3631_v0, %v3738_v42  ;;  %v864_v17 = vadd.f32 %v3657_v13, %v3706_v2  ;;  %v979_v33 = vmax.f32 %v796_v12, 0.0  ;;  %v992_v57 = vmax.f32 %v870_v23, 0.0  ;;  %v4700_v0 = vld [vmem:[#allocation24_spill] sm:$0xff]  ;;  %v4709_v31 = vld [vmem:[#allocation21_spill] sm:$0xff]  ;;  %v4710_v12 = vld [vmem:[#allocation18_spill] sm:$0xff] }
 0x1ff   : > { %1206 = vmatpush.msrb.mxu1 %v999_v39  ;;  %1268 = vmatpush.msrb.mxu2 %v1012_v46  ;;  %v722_v63 = vadd.f32 %v4697_v50, %v631_v9  ;;  %v929_v52 = vadd.f32 %v4698_v60, %v3706_v2  ;;  %v993_v18 = vmax.f32 %v935_v58, 0.0  ;;  %v974_v49 = vmax.f32 %v728_v7, 0.0  ;;  %v626_v51 = vpop.permute.xlu1 %625  ;;  %v4701_v25 = vld [vmem:[#allocation12_spill] sm:$0xff]  ;;  %v4711_v7 = vld [vmem:[#allocation19_spill] sm:$0xff] }
 0x200   : > { %1333 = vmatpush.msrb.mxu3 %v1013_v45  ;;  %1142 = vmatpush.msrb.mxu0 %v994_v47  ;;  %v787_v28 = vadd.f32 %v4699_v59, %v631_v9  ;;  %v861_v29 = vadd.f32 %v4700_v0, %v3718_v38  ;;  %v975_v13 = vmax.f32 %v793_v8, 0.0  ;;  %v988_v14 = vmax.f32 %v867_v22, 0.0  ;;  %v4704_v45 = vld [vmem:[#allocation22_spill] sm:$0xff]  ;;  %v2743_v0 = vld [vmem:[%s4670_s1 + $0x130] sm:$0xff] }
 0x201   : > { %1207 = vmatpush.msrb.mxu1 %v995_v48  ;;  %1269 = vmatpush.msrb.mxu2 %v1008_v61  ;;  %v719_v37 = vadd.f32 %v4701_v25, %v626_v51  ;;  %v926_v26 = vadd.f32 %v4702_v43, %v3718_v38  ;;  %v989_v2 = vmax.f32 %v932_v5, 0.0  ;;  %v970_v39 = vmax.f32 %v725_v3, 0.0  ;;  %v621_v46 = vpop.permute.xlu2 %620  ;;  %v4705_v48 = vld [vmem:[#allocation8_spill] sm:$0xff]  ;;  %v4712_v8 = vld [vmem:[#allocation14_spill] sm:$0xff]  ;;  %v4713_v3 = vld [vmem:[#allocation15_spill] sm:$0xff] }
 0x202   : > { %1334 = vmatpush.msrb.mxu3 %v1009_v53  ;;  %1143 = vmatpush.msrb.mxu0 %v990_v41  ;;  %v784_v40 = vadd.f32 %v4703_v19, %v626_v51  ;;  %v858_v47 = vadd.f32 %v4704_v45, %v3728_v44  ;;  %v971_v21 = vmax.f32 %v790_v4, 0.0  ;;  %v984_v34 = vmax.f32 %v864_v17, 0.0  ;;  %v4707_v41 = vld [vmem:[#allocation9_spill] sm:$0xff]  ;;  %v4715_v17 = vld [vmem:[#allocation11_spill] sm:$0xff]  ;;  %v2741_v59 = vld [vmem:[%s4670_s1 + $0x120] sm:$0xff] }
 0x203   : > { %1208 = vmatpush.msrb.mxu1 %v991_v56  ;;  %1270 = vmatpush.msrb.mxu2 %v1004_v55  ;;  %v716_v61 = vadd.f32 %v4705_v48, %v621_v46  ;;  %v923_v35 = vadd.f32 %v4706_v15, %v3728_v44  ;;  %v985_v38 = vmax.f32 %v929_v52, 0.0  ;;  %v966_v53 = vmax.f32 %v722_v63, 0.0  ;;  %v2747_v25 = vld [vmem:[%s4670_s1 + $0x150] sm:$0xff]  ;;  %v2749_v43 = vld [vmem:[%s4670_s1 + $0x160] sm:$0xff] }
 0x204   : > { %1335 = vmatpush.msrb.mxu3 %v1005_v54  ;;  %1144 = vmatpush.msrb.mxu0 %v986_v62  ;;  %v781_v16 = vadd.f32 %v4707_v41, %v621_v46  ;;  %v855_v56 = vadd.f32 %v4708_v30, %v3738_v42  ;;  %v967_v55 = vmax.f32 %v787_v28, 0.0  ;;  %v980_v11 = vmax.f32 %v861_v29, 0.0  ;;  %v2742_v28 = vld [vmem:[%s4670_s1 + $0x128] sm:$0xff]  ;;  %v2744_v29 = vld [vmem:[%s4670_s1 + $0x138] sm:$0xff] }
 0x205   : > { %1209 = vmatpush.msrb.mxu1 %v987_v20  ;;  %1271 = vmatpush.msrb.mxu2 %v1000_v36  ;;  %v920_v54 = vadd.f32 %v4709_v31, %v3738_v42  ;;  %v981_v62 = vmax.f32 %v926_v26, 0.0  ;;  %v962_v44 = vmax.f32 %v719_v37, 0.0  ;;  %v852_v23 = vadd.f32 %v4710_v12, %v631_v9  ;;  %v2748_v37 = vld [vmem:[%s4670_s1 + $0x158] sm:$0xff]  ;;  %v2750_v26 = vld [vmem:[%s4670_s1 + $0x168] sm:$0xff] }
 0x206   : > { %1336 = vmatpush.msrb.mxu3 %v1001_v27  ;;  %1145 = vmatpush.msrb.mxu0 %v982_v1  ;;  %v963_v20 = vmax.f32 %v784_v40, 0.0  ;;  %v976_v36 = vmax.f32 %v858_v47, 0.0  ;;  %v917_v58 = vadd.f32 %v4711_v7, %v631_v9  ;;  %v977_v27 = vmax.f32 %v923_v35, 0.0 }
 0x207   : > { %1210 = vmatpush.msrb.mxu1 %v983_v10  ;;  %1272 = vmatpush.msrb.mxu2 %v996_v32  ;;  %v958_v1 = vmax.f32 %v716_v61, 0.0  ;;  %v849_v22 = vadd.f32 %v4712_v8, %v626_v51  ;;  %v959_v42 = vmax.f32 %v781_v16, 0.0  ;;  %v972_v10 = vmax.f32 %v855_v56, 0.0  ;;  %v2737_v32 = vld [vmem:[%s4670_s1 + $0x100] sm:$0xff] }
 0x208   : > { %1337 = vmatpush.msrb.mxu3 %v997_v24  ;;  %1146 = vmatpush.msrb.mxu0 %v978_v6  ;;  %v914_v5 = vadd.f32 %v4713_v3, %v626_v51  ;;  %v973_v24 = vmax.f32 %v920_v54, 0.0  ;;  %v4714_v6 = vld [vmem:[#allocation10_spill] sm:$0xff]  ;;  %v968_v4 = vmax.f32 %v852_v23, 0.0  ;;  %v2740_v51 = vld [vmem:[%s4670_s1 + $0x118] sm:$0xff] }
 0x209   : > { %1211 = vmatpush.msrb.mxu1 %v979_v33  ;;  %1273 = vmatpush.msrb.mxu2 %v992_v57  ;;  %v846_v9 = vadd.f32 %v4714_v6, %v621_v46  ;;  %v911_v33 = vadd.f32 %v4715_v17, %v621_v46  ;;  %v969_v57 = vmax.f32 %v917_v58, 0.0  ;;  %v964_v50 = vmax.f32 %v849_v22, 0.0 }
 0x20a   : > { %1338 = vmatpush.msrb.mxu3 %v993_v18  ;;  %1147 = vmatpush.msrb.mxu0 %v974_v49  ;;  %v965_v63 = vmax.f32 %v914_v5, 0.0  ;;  %v2738_v18 = vld [vmem:[%s4670_s1 + $0x108] sm:$0xff]  ;;  %v2739_v49 = vld [vmem:[%s4670_s1 + $0x110] sm:$0xff] }
 0x20b   : > { %1212 = vmatpush.msrb.mxu1 %v975_v13  ;;  %1274 = vmatpush.msrb.mxu2 %v988_v14  ;;  %v960_v60 = vmax.f32 %v846_v9, 0.0  ;;  %v961_v52 = vmax.f32 %v911_v33, 0.0  ;;  %v2745_v13 = vld [vmem:[%s4670_s1 + $0x140] sm:$0xff]  ;;  %v2746_v14 = vld [vmem:[%s4670_s1 + $0x148] sm:$0xff] }
 0x20c   : > { %1339 = vmatpush.msrb.mxu3 %v989_v2  ;;  %1148 = vmatpush.msrb.mxu0 %v970_v39  ;;  %v2751_v2 = vld [vmem:[%s4670_s1 + $0x170] sm:$0xff]  ;;  %v2752_v39 = vld [vmem:[%s4670_s1 + $0x178] sm:$0xff] }
 0x20d   : > { %1213 = vmatpush.msrb.mxu1 %v971_v21  ;;  %1275 = vmatpush.msrb.mxu2 %v984_v34 }
 0x20e   : > { %1340 = vmatpush.msrb.mxu3 %v985_v38  ;;  %1149 = vmatpush.msrb.mxu0 %v966_v53 }
 0x20f   : > { %1214 = vmatpush.msrb.mxu1 %v967_v55  ;;  %1276 = vmatpush.msrb.mxu2 %v980_v11 }
 0x210   : > { %1341 = vmatpush.msrb.mxu3 %v981_v62  ;;  %1150 = vmatpush.msrb.mxu0 %v962_v44 }
 0x211   : > { %1215 = vmatpush.msrb.mxu1 %v963_v20  ;;  %1277 = vmatpush.msrb.mxu2 %v976_v36 }
 0x212   : > { %1342 = vmatpush.msrb.mxu3 %v977_v27  ;;  %1151 = vmatpush.msrb.mxu0 %v958_v1 }
 0x213   : > { %1216 = vmatpush.msrb.mxu1 %v959_v42  ;;  %1278 = vmatpush.msrb.mxu2 %v972_v10 }
 0x214   : > { %1343 = vmatpush.msrb.mxu3 %v973_v24  ;;  %1152 = vmatmul.f32.vlgmr.msrb.gmra.mxu0 %v2737_v32 }
 0x215   : > { %1217 = vmatmul.f32.vlgmr.msrb.gmra.mxu1 %v2737_v32  ;;  %1279 = vmatpush.msrb.mxu2 %v968_v4 }
 0x216   : > { %1344 = vmatpush.msrb.mxu3 %v969_v57 }
 0x217   : > { %1280 = vmatpush.msrb.mxu2 %v964_v50 }
 0x218   : > { %1345 = vmatpush.msrb.mxu3 %v965_v63 }
 0x219   : > { %1281 = vmatpush.msrb.mxu2 %v960_v60 }
 0x21a   : > { %1346 = vmatpush.msrb.mxu3 %v961_v52  ;;  %1282 = vmatmul.f32.vlgmr.msrb.gmra.mxu2 %v2737_v32  ;;  %v3926_v52 = vpop.permute.xlu0 %1133 }
 0x21b   : > { %1347 = vmatmul.f32.vlgmr.msrb.gmra.mxu3 %v2737_v32 }
 0x21c   : > { %1155 = vmatmul.f32.gmra.mxu0 %v2738_v18 }
 0x21d   : > { %1220 = vmatmul.f32.gmra.mxu1 %v2738_v18 }
 0x222   : > { %1285 = vmatmul.f32.gmra.mxu2 %v2738_v18 }
 0x223   : > { %1350 = vmatmul.f32.gmra.mxu3 %v2738_v18 }
 0x224   : > { %1158 = vmatmul.f32.gmra.mxu0 %v2739_v49 }
 0x225   : > { %1223 = vmatmul.f32.gmra.mxu1 %v2739_v49 }
 0x22a   : > { %1288 = vmatmul.f32.gmra.mxu2 %v2739_v49 }
 0x22b   : > { %1353 = vmatmul.f32.gmra.mxu3 %v2739_v49 }
 0x22c   : > { %1161 = vmatmul.f32.gmra.mxu0 %v2740_v51 }
 0x22d   : > { %1226 = vmatmul.f32.gmra.mxu1 %v2740_v51 }
 0x232   : > { %1291 = vmatmul.f32.gmra.mxu2 %v2740_v51 }
 0x233   : > { %1356 = vmatmul.f32.gmra.mxu3 %v2740_v51  ;;  %v3932_v51 = vpop.permute.xlu1 %1128 }
 0x234   : > { %1164 = vmatmul.f32.gmra.mxu0 %v2741_v59 }
 0x235   : > { %1229 = vmatmul.f32.gmra.mxu1 %v2741_v59 }
 0x23a   : > { %1294 = vmatmul.f32.gmra.mxu2 %v2741_v59 }
 0x23b   : > { %1359 = vmatmul.f32.gmra.mxu3 %v2741_v59 }
 0x23c   : > { %1167 = vmatmul.f32.gmra.mxu0 %v2742_v28 }
 0x23d   : > { %1232 = vmatmul.f32.gmra.mxu1 %v2742_v28 }
 0x242   : > { %1297 = vmatmul.f32.gmra.mxu2 %v2742_v28 }
 0x243   : > { %1362 = vmatmul.f32.gmra.mxu3 %v2742_v28 }
 0x244   : > { %1170 = vmatmul.f32.gmra.mxu0 %v2743_v0 }
 0x245   : > { %1235 = vmatmul.f32.gmra.mxu1 %v2743_v0 }
 0x24a   : > { %1300 = vmatmul.f32.gmra.mxu2 %v2743_v0 }
 0x24b   : > { %1365 = vmatmul.f32.gmra.mxu3 %v2743_v0  ;;  %v3934_v0 = vpop.permute.xlu2 %1123 }
 0x24c   : > { %1173 = vmatmul.f32.gmra.mxu0 %v2744_v29 }
 0x24d   : > { %1238 = vmatmul.f32.gmra.mxu1 %v2744_v29 }
 0x252   : > { %1303 = vmatmul.f32.gmra.mxu2 %v2744_v29 }
 0x253   : > { %1368 = vmatmul.f32.gmra.mxu3 %v2744_v29  ;;  %v3936_v29 = vpop.permute.xlu0 %1118 }
 0x254   : > { %1176 = vmatmul.f32.gmra.mxu0 %v2745_v13 }
 0x255   : > { %1241 = vmatmul.f32.gmra.mxu1 %v2745_v13 }
 0x25a   : > { %1306 = vmatmul.f32.gmra.mxu2 %v2745_v13 }
 0x25b   : > { %1371 = vmatmul.f32.gmra.mxu3 %v2745_v13 }
 0x25c   : > { %1179 = vmatmul.f32.gmra.mxu0 %v2746_v14 }
 0x25d   : > { %1244 = vmatmul.f32.gmra.mxu1 %v2746_v14 }
 0x262   : > { %1309 = vmatmul.f32.gmra.mxu2 %v2746_v14 }
 0x263   : > { %1374 = vmatmul.f32.gmra.mxu3 %v2746_v14 }
 0x264   : > { %1182 = vmatmul.f32.gmra.mxu0 %v2747_v25 }
 0x265   : > { %1247 = vmatmul.f32.gmra.mxu1 %v2747_v25 }
 0x26a   : > { %1312 = vmatmul.f32.gmra.mxu2 %v2747_v25 }
 0x26b   : > { %1377 = vmatmul.f32.gmra.mxu3 %v2747_v25 }
 0x26c   : > { %1185 = vmatmul.f32.gmra.mxu0 %v2748_v37 }
 0x26d   : > { %1250 = vmatmul.f32.gmra.mxu1 %v2748_v37 }
 0x272   : > { %1315 = vmatmul.f32.gmra.mxu2 %v2748_v37 }
 0x273   : > { %1380 = vmatmul.f32.gmra.mxu3 %v2748_v37 }
 0x274   : > { %1188 = vmatmul.f32.gmra.mxu0 %v2749_v43 }
 0x275   : > { %1253 = vmatmul.f32.gmra.mxu1 %v2749_v43 }
 0x27a   : > { %1318 = vmatmul.f32.gmra.mxu2 %v2749_v43 }
 0x27b   : > { %1383 = vmatmul.f32.gmra.mxu3 %v2749_v43  ;;  %v3942_v43 = vpop.permute.xlu1 %1113 }
 0x27c   : > { %1191 = vmatmul.f32.gmra.mxu0 %v2750_v26 }
 0x27d   : > { %1256 = vmatmul.f32.gmra.mxu1 %v2750_v26 }
 0x282   : > { %1321 = vmatmul.f32.gmra.mxu2 %v2750_v26 }
 0x283   : > { %1386 = vmatmul.f32.gmra.mxu3 %v2750_v26  ;;  %v3944_v26 = vpop.permute.xlu2 %1108 }
 0x284   : > { %1194 = vmatmul.f32.gmra.mxu0 %v2751_v2 }
 0x285   : > { %1259 = vmatmul.f32.gmra.mxu1 %v2751_v2 }
 0x28a   : > { %1324 = vmatmul.f32.gmra.mxu2 %v2751_v2 }
 0x28b   : > { %1389 = vmatmul.f32.gmra.mxu3 %v2751_v2 }
 0x28c   : > { %1197 = vmatmul.f32.gmra.mxu0 %v2752_v39 }
 0x28d   : > { %1262 = vmatmul.f32.gmra.mxu1 %v2752_v39 }
 0x291   : > { %v3842_v46 = vpop.f32.mrf.mxu0 }
 0x292   : > { %4716 = vst [vmem:[#allocation16_spill] sm:$0xff] %v3842_v46  ;;  %v3844_v19 = vpop.f32.mrf.mxu1  ;;  %1327 = vmatmul.f32.gmra.mxu2 %v2752_v39 }
 0x293   : > { %4717 = vst [vmem:[#allocation26_spill] sm:$0xff] %v3844_v19  ;;  %1392 = vmatmul.f32.gmra.mxu3 %v2752_v39 }
 0x299   : > { %v3846_v40 = vpop.f32.mrf.mxu0 }
 0x29a   : > { %v3848_v45 = vpop.f32.mrf.mxu1 }
 0x29d   : > { %v3850_v47 = vpop.f32.mrf.mxu2 }
 0x29e   : > { %4718 = vst [vmem:[#allocation17_spill] sm:$0xff] %v3850_v47  ;;  %v3852_v21 = vpop.f32.mrf.mxu3 }
 0x29f   : > { %4719 = vst [vmem:[#allocation24_spill] sm:$0xff] %v3852_v21  ;;  %v3946_v21 = vpop.permute.xlu0 %1103 }
 0x2a1   : > { %v3854_v34 = vpop.f32.mrf.mxu0 }
 0x2a2   : > { %v3856_v48 = vpop.f32.mrf.mxu1 }
 0x2a5   : > { %v3858_v61 = vpop.f32.mrf.mxu2 }
 0x2a6   : > { %4720 = vst [vmem:[#allocation12_spill] sm:$0xff] %v3858_v61  ;;  %v3860_v15 = vpop.f32.mrf.mxu3 }
 0x2a7   : > { %4721 = vst [vmem:[#allocation25_spill] sm:$0xff] %v3860_v15 }
 0x2a9   : > { %v3862_v35 = vpop.f32.mrf.mxu0 }
 0x2aa   : > { %v3864_v38 = vpop.f32.mrf.mxu1 }
 0x2ad   : > { %v3866_v53 = vpop.f32.mrf.mxu2 }
 0x2ae   : > { %4722 = vst [vmem:[#allocation13_spill] sm:$0xff] %v3866_v53  ;;  %v3868_v41 = vpop.f32.mrf.mxu3 }
 0x2af   : > { %4723 = vst [vmem:[#allocation22_spill] sm:$0xff] %v3868_v41 }
 0x2b1   : > { %v3870_v16 = vpop.f32.mrf.mxu0 }
 0x2b2   : > { %v3872_v30 = vpop.f32.mrf.mxu1 }
 0x2b5   : > { %v3874_v56 = vpop.f32.mrf.mxu2 }
 0x2b6   : > { %4724 = vst [vmem:[#allocation8_spill] sm:$0xff] %v3874_v56  ;;  %v3876_v55 = vpop.f32.mrf.mxu3 }
 0x2b7   : > { %4725 = vst [vmem:[#allocation23_spill] sm:$0xff] %v3876_v55 }
 0x2b9   : > { %v3878_v11 = vpop.f32.mrf.mxu0 }
 0x2ba   : > { %v3880_v31 = vpop.f32.mrf.mxu1 }
 0x2bd   : > { %v3882_v54 = vpop.f32.mrf.mxu2 }
 0x2be   : > { %4726 = vst [vmem:[#allocation9_spill] sm:$0xff] %v3882_v54  ;;  %v3884_v62 = vpop.f32.mrf.mxu3  ;;  %v3953_v54 = vpop.permute.xlu1 %1098 }
 0x2bf   : > { %4727 = vst [vmem:[#allocation20_spill] sm:$0xff] %v3884_v62 }
 0x2c1   : > { %v3886_v44 = vpop.f32.mrf.mxu0 }
 0x2c2   : > { %v3888_v12 = vpop.f32.mrf.mxu1 }
 0x2c5   : > { %v3890_v23 = vpop.f32.mrf.mxu2 }
 0x2c6   : > { %4728 = vst [vmem:[#allocation21_spill] sm:$0xff] %v3890_v23  ;;  %v3892_v20 = vpop.f32.mrf.mxu3 }
 0x2c7   : > { %4729 = vst [vmem:[#allocation18_spill] sm:$0xff] %v3892_v20 }
 0x2c9   : > { %v3894_v36 = vpop.f32.mrf.mxu0 }
 0x2ca   : > { %v3896_v7 = vpop.f32.mrf.mxu1 }
 0x2cd   : > { %v3898_v58 = vpop.f32.mrf.mxu2 }
 0x2ce   : > { %4730 = vst [vmem:[#allocation19_spill] sm:$0xff] %v3898_v58  ;;  %v3900_v27 = vpop.f32.mrf.mxu3 }
 0x2cf   : > { %4731 = vst [vmem:[#allocation14_spill] sm:$0xff] %v3900_v27 }
 0x2d1   : > { %v3902_v1 = vpop.f32.mrf.mxu0 }
 0x2d2   : > { %v3904_v8 = vpop.f32.mrf.mxu1 }
 0x2d5   : > { %v3906_v22 = vpop.f32.mrf.mxu2 }
 0x2d6   : > { %v3908_v42 = vpop.f32.mrf.mxu3 }
 0x2d7   : > { %4732 = vst [vmem:[#allocation15_spill] sm:$0xff] %v3908_v42 }
 0x2d9   : > { %v3910_v10 = vpop.f32.mrf.mxu0 }
 0x2da   : > { %v3912_v32 = vpop.f32.mrf.mxu1 }
 0x2dd   : > { %v3914_v3 = vpop.f32.mrf.mxu2 }
 0x2de   : > { %v3916_v5 = vpop.f32.mrf.mxu3 }
 0x2e1   : > { %v1183_v24 = vpop.f32.mrf.mxu0 }
 0x2e2   : > { %v1248_v6 = vpop.f32.mrf.mxu1 }
 0x2e5   : > { %v3918_v9 = vpop.f32.mrf.mxu2 }
 0x2e6   : > { %v3920_v4 = vpop.f32.mrf.mxu3 }
 0x2e9   : > { %v1186_v17 = vpop.f32.mrf.mxu0 }
 0x2ea   : > { %v1251_v33 = vpop.f32.mrf.mxu1 }
 0x2ed   : > { %v3922_v57 = vpop.f32.mrf.mxu2 }
 0x2ee   : > { %v3924_v50 = vpop.f32.mrf.mxu3 }
 0x2f1   : > { %v1189_v63 = vpop.f32.mrf.mxu0 }
 0x2f2   : > { %v1254_v60 = vpop.f32.mrf.mxu1  ;;  %v1190_v19 = vadd.f32 %v1189_v63, %v3936_v29 }
 0x2f4   : > { %v1444_v63 = vmax.f32 %v1190_v19, 0.0 }
 0x2f5   : > { %v3928_v18 = vpop.f32.mrf.mxu2 }
 0x2f6   : > { %v3930_v49 = vpop.f32.mrf.mxu3 }
 0x2f9   : > { %v1192_v59 = vpop.f32.mrf.mxu0 }
 0x2fa   : > { %v1257_v28 = vpop.f32.mrf.mxu1  ;;  %v1193_v56 = vadd.f32 %v1192_v59, %v3934_v0  ;;  %v3961_v59 = vpop.permute.xlu0 %1088 }
 0x2fb   : > { %v1258_v20 = vadd.f32 %v1257_v28, %v3934_v0 }
 0x2fd   : > { %v3938_v13 = vpop.f32.mrf.mxu2  ;;  %v1449_v28 = vmax.f32 %v1258_v20, 0.0 }
 0x2fe   : > { %v3940_v14 = vpop.f32.mrf.mxu3 }
 0x301   : > { %v1195_v25 = vpop.f32.mrf.mxu0 }
 0x302   : > { %v1260_v37 = vpop.f32.mrf.mxu1  ;;  %v1196_v15 = vadd.f32 %v1195_v25, %v3932_v51 }
 0x303   : > { %v1261_v53 = vadd.f32 %v1260_v37, %v3932_v51  ;;  %v1255_v37 = vadd.f32 %v1254_v60, %v3936_v29 }
 0x304   : > { %v1452_v58 = vmax.f32 %v1196_v15, 0.0  ;;  %v1184_v15 = vadd.f32 %v1183_v24, %v3944_v26 }
 0x305   : > { %v1322_v2 = vpop.f32.mrf.mxu2  ;;  %v1453_v46 = vmax.f32 %v1261_v53, 0.0  ;;  %v1445_v42 = vmax.f32 %v1255_v37, 0.0  ;;  %v1181_v53 = vadd.f32 %v3910_v10, %v3946_v21  ;;  %v1243_v10 = vadd.f32 %v3904_v8, %v3953_v54 }
 0x306   : > { %v1387_v39 = vpop.f32.mrf.mxu3  ;;  %v1436_v19 = vmax.f32 %v1184_v15, 0.0  ;;  %v3992_v15 = vpop.permute.xlu0 %1073 }
 0x307   : > { %v1432_v37 = vmax.f32 %v1181_v53, 0.0 }
 0x309   : > { %v1198_v47 = vpop.f32.mrf.mxu0 }
 0x30a   : > { %v1199_v61 = vadd.f32 %v1198_v47, %v3926_v52  ;;  %v1263_v41 = vpop.f32.mrf.mxu1  ;;  %v3957_v47 = vpop.permute.xlu2 %1093 }
 0x30b   : > { %v1264_v55 = vadd.f32 %v1263_v41, %v3926_v52  ;;  %v1187_v41 = vadd.f32 %v1186_v17, %v3942_v43 }
 0x30c   : > { %v1456_v62 = vmax.f32 %v1199_v61, 0.0  ;;  %v1448_v61 = vmax.f32 %v1193_v56, 0.0  ;;  %v1246_v56 = vadd.f32 %v3912_v32, %v3946_v21 }
 0x30d   : > { %v1457_v23 = vmax.f32 %v1264_v55, 0.0  ;;  %v1325_v27 = vpop.f32.mrf.mxu2  ;;  %v1252_v55 = vadd.f32 %v1251_v33, %v3942_v43  ;;  %v3974_v33 = vpop.permute.xlu1 %1083 }
 0x30e   : > { %v1390_v25 = vpop.f32.mrf.mxu3  ;;  %1574 = vmatpush.msra.mxu0 %v1456_v62  ;;  %v1249_v62 = vadd.f32 %v1248_v6, %v3944_v26  ;;  %v1326_v24 = vadd.f32 %v1325_v27, %v3932_v51  ;;  %v1323_v27 = vadd.f32 %v1322_v2, %v3934_v0  ;;  %v1433_v8 = vmax.f32 %v1246_v56, 0.0 }
 0x30f   : > { %1639 = vmatpush.msra.mxu1 %v1457_v23  ;;  %v1440_v23 = vmax.f32 %v1187_v41, 0.0  ;;  %v1391_v32 = vadd.f32 %v1390_v25, %v3932_v51 }
 0x310   : > { %1575 = vmatpush.msra.mxu0 %v1452_v58  ;;  %v1441_v58 = vmax.f32 %v1252_v55, 0.0  ;;  %v1437_v60 = vmax.f32 %v1249_v62, 0.0  ;;  %v1240_v55 = vadd.f32 %v3896_v7, %v3957_v47  ;;  %v1454_v2 = vmax.f32 %v1326_v24, 0.0 }
 0x311   : > { %1640 = vmatpush.msra.mxu1 %v1453_v46  ;;  %v1178_v46 = vadd.f32 %v3902_v1, %v3953_v54  ;;  %v1175_v1 = vadd.f32 %v3894_v36, %v3957_v47  ;;  %v1320_v36 = vadd.f32 %v3938_v13, %v3936_v29  ;;  %v1237_v7 = vadd.f32 %v3888_v12, %v3961_v59 }
 0x312   : > { %1576 = vmatpush.msra.mxu0 %v1448_v61  ;;  %v3983_v61 = vpop.permute.xlu2 %1078  ;;  %v1317_v13 = vadd.f32 %v3928_v18, %v3942_v43  ;;  %v1450_v53 = vmax.f32 %v1323_v27, 0.0  ;;  %v1234_v12 = vadd.f32 %v3880_v31, %v3974_v33  ;;  %v1314_v18 = vadd.f32 %v3922_v57, %v3944_v26 }
 0x313   : > { %1641 = vmatpush.msra.mxu1 %v1449_v28  ;;  %v1388_v28 = vadd.f32 %v1387_v39, %v3934_v0  ;;  %v1428_v25 = vmax.f32 %v1178_v46, 0.0  ;;  %v1385_v0 = vadd.f32 %v3940_v14, %v3936_v29  ;;  %v1455_v39 = vmax.f32 %v1391_v32, 0.0 }
 0x314   : > { %1577 = vmatpush.msra.mxu0 %v1444_v63  ;;  %v1429_v63 = vmax.f32 %v1243_v10, 0.0  ;;  %v1424_v62 = vmax.f32 %v1175_v1, 0.0  ;;  %v1382_v29 = vadd.f32 %v3930_v49, %v3942_v43  ;;  %v1231_v31 = vadd.f32 %v3872_v30, %v3983_v61 }
 0x315   : > { %1642 = vmatpush.msra.mxu1 %v1445_v42  ;;  %v1328_v20 = vpop.f32.mrf.mxu2  ;;  %v1451_v14 = vmax.f32 %v1388_v28, 0.0  ;;  %v1379_v49 = vadd.f32 %v3924_v50, %v3944_v26  ;;  %v1447_v43 = vmax.f32 %v1385_v0, 0.0  ;;  %v1311_v57 = vadd.f32 %v3918_v9, %v3946_v21  ;;  %v4018_v24 = vpop.permute.xlu1 %1068 }
 0x316   : > { %v1329_v6 = vadd.f32 %v1328_v20, %v3926_v52  ;;  %v1393_v17 = vpop.f32.mrf.mxu3  ;;  %1578 = vmatpush.msra.mxu0 %v1440_v23  ;;  %v1425_v23 = vmax.f32 %v1240_v55, 0.0  ;;  %v1421_v20 = vmax.f32 %v1237_v7, 0.0  ;;  %v1228_v30 = vadd.f32 %v3864_v38, %v3992_v15 }
 0x317   : > { %v1394_v42 = vadd.f32 %v1393_v17, %v3926_v52  ;;  %1643 = vmatpush.msra.mxu1 %v1441_v58  ;;  %v1172_v52 = vadd.f32 %v3886_v44, %v3961_v59  ;;  %v1169_v44 = vadd.f32 %v3878_v11, %v3974_v33  ;;  %v1166_v11 = vadd.f32 %v3870_v16, %v3983_v61 }
 0x318   : > { %v1458_v41 = vmax.f32 %v1329_v6, 0.0  ;;  %1579 = vmatpush.msra.mxu0 %v1436_v19  ;;  %v1446_v58 = vmax.f32 %v1320_v36, 0.0  ;;  %v1163_v16 = vadd.f32 %v3862_v35, %v3992_v15  ;;  %v1442_v19 = vmax.f32 %v1317_v13, 0.0  ;;  %v4737_v36 = vld [vmem:[#allocation14_spill] sm:$0xff] }
 0x319   : > { %v1459_v51 = vmax.f32 %v1394_v42, 0.0  ;;  %1644 = vmatpush.msra.mxu1 %v1437_v60  ;;  %v1420_v56 = vmax.f32 %v1172_v52, 0.0  ;;  %v1416_v46 = vmax.f32 %v1169_v44, 0.0  ;;  %v1417_v6 = vmax.f32 %v1234_v12, 0.0  ;;  %v4736_v52 = vld [vmem:[#allocation26_spill] sm:$0xff] }
 0x31a   : > { %1580 = vmatpush.msra.mxu0 %v1432_v37  ;;  %1704 = vmatpush.msra.mxu2 %v1458_v41  ;;  %v1376_v50 = vadd.f32 %v3920_v4, %v3946_v21  ;;  %v1443_v26 = vmax.f32 %v1382_v29, 0.0  ;;  %v1160_v35 = vadd.f32 %v3854_v34, %v4018_v24  ;;  %v1412_v17 = vmax.f32 %v1166_v11, 0.0  ;;  %v4028_v60 = vpop.permute.xlu2 %1063  ;;  %v4038_v37 = vpop.permute.xlu0 %1058  ;;  %v4740_v29 = vld [vmem:[#allocation9_spill] sm:$0xff]  ;;  %v4741_v11 = vld [vmem:[#allocation20_spill] sm:$0xff] }
 0x31b   : > { %1645 = vmatpush.msra.mxu1 %v1433_v8  ;;  %1769 = vmatpush.msra.mxu3 %v1459_v51  ;;  %v1308_v9 = vadd.f32 %v3914_v3, %v3953_v54  ;;  %v1438_v10 = vmax.f32 %v1314_v18, 0.0  ;;  %v1225_v38 = vadd.f32 %v3856_v48, %v4018_v24  ;;  %v1413_v32 = vmax.f32 %v1231_v31, 0.0 }
 0x31c   : > { %1581 = vmatpush.msra.mxu0 %v1428_v25  ;;  %1705 = vmatpush.msra.mxu2 %v1454_v2  ;;  %v1373_v21 = vadd.f32 %v3916_v5, %v3953_v54  ;;  %v1439_v4 = vmax.f32 %v1379_v49, 0.0  ;;  %v1157_v34 = vadd.f32 %v3846_v40, %v4028_v60  ;;  %v1408_v42 = vmax.f32 %v1163_v16, 0.0  ;;  %v4733_v54 = vld [vmem:[#allocation15_spill] sm:$0xff]  ;;  %v4734_v40 = vld [vmem:[#allocation16_spill] sm:$0xff] }
 0x31d   : > { %1646 = vmatpush.msra.mxu1 %v1429_v63  ;;  %1770 = vmatpush.msra.mxu3 %v1455_v39  ;;  %v1305_v3 = vadd.f32 %v3906_v22, %v3957_v47  ;;  %v1434_v1 = vmax.f32 %v1311_v57, 0.0  ;;  %v1222_v48 = vadd.f32 %v3848_v45, %v4028_v60  ;;  %v1409_v27 = vmax.f32 %v1228_v30, 0.0  ;;  %v4735_v22 = vld [vmem:[#allocation19_spill] sm:$0xff]  ;;  %v4738_v39 = vld [vmem:[#allocation21_spill] sm:$0xff]  ;;  %v4745_v57 = vld [vmem:[#allocation22_spill] sm:$0xff] }
 0x31e   : > { %1582 = vmatpush.msra.mxu0 %v1424_v62  ;;  %1706 = vmatpush.msra.mxu2 %v1450_v53  ;;  %v1370_v5 = vadd.f32 %v4733_v54, %v3957_v47  ;;  %v1435_v41 = vmax.f32 %v1376_v50, 0.0  ;;  %v1154_v55 = vadd.f32 %v4734_v40, %v4038_v37  ;;  %v1404_v8 = vmax.f32 %v1160_v35, 0.0  ;;  %v4739_v62 = vld [vmem:[#allocation18_spill] sm:$0xff]  ;;  %v4746_v50 = vld [vmem:[#allocation12_spill] sm:$0xff]  ;;  %v2774_v54 = vld [vmem:[%s4670_s1 + $0x1a8] sm:$0xff] }
 0x31f   : > { %1647 = vmatpush.msra.mxu1 %v1425_v23  ;;  %1771 = vmatpush.msra.mxu3 %v1451_v14  ;;  %v1302_v28 = vadd.f32 %v4735_v22, %v3961_v59  ;;  %v1430_v51 = vmax.f32 %v1308_v9, 0.0  ;;  %v1219_v45 = vadd.f32 %v4736_v52, %v4038_v37  ;;  %v1405_v25 = vmax.f32 %v1225_v38, 0.0  ;;  %v2777_v40 = vld [vmem:[%s4670_s1 + $0x1c0] sm:$0xff]  ;;  %v2780_v22 = vld [vmem:[%s4670_s1 + $0x1d8] sm:$0xff]  ;;  %v2783_v52 = vld [vmem:[%s4670_s1 + $0x1f0] sm:$0xff] }
 0x320   : > { %1583 = vmatpush.msra.mxu0 %v1420_v56  ;;  %1707 = vmatpush.msra.mxu2 %v1446_v58  ;;  %v1367_v47 = vadd.f32 %v4737_v36, %v3961_v59  ;;  %v1431_v2 = vmax.f32 %v1373_v21, 0.0  ;;  %v1400_v7 = vmax.f32 %v1157_v34, 0.0  ;;  %v1426_v63 = vmax.f32 %v1305_v3, 0.0  ;;  %v4742_v58 = vld [vmem:[#allocation8_spill] sm:$0xff]  ;;  %v2770_v34 = vld [vmem:[%s4670_s1 + $0x188] sm:$0xff] }
 0x321   : > { %1648 = vmatpush.msra.mxu1 %v1421_v20  ;;  %1772 = vmatpush.msra.mxu3 %v1447_v43  ;;  %v1401_v0 = vmax.f32 %v1222_v48, 0.0  ;;  %v1299_v44 = vadd.f32 %v4738_v39, %v3974_v33  ;;  %v1364_v13 = vadd.f32 %v4739_v62, %v3974_v33  ;;  %v1427_v53 = vmax.f32 %v1370_v5, 0.0  ;;  %v2769_v33 = vld [vmem:[%s4670_s1 + $0x180] sm:$0xff]  ;;  %v4743_v20 = vld [vmem:[#allocation23_spill] sm:$0xff]  ;;  %v2772_v48 = vld [vmem:[%s4670_s1 + $0x198] sm:$0xff] }
 0x322   : > { %1584 = vmatpush.msra.mxu0 %v1416_v46  ;;  %1708 = vmatpush.msra.mxu2 %v1442_v19  ;;  %v1396_v12 = vmax.f32 %v1154_v55, 0.0  ;;  %v1422_v23 = vmax.f32 %v1302_v28, 0.0  ;;  %v1397_v59 = vmax.f32 %v1219_v45, 0.0  ;;  %v1296_v14 = vadd.f32 %v4740_v29, %v3983_v61  ;;  %v2775_v5 = vld [vmem:[%s4670_s1 + $0x1b0] sm:$0xff]  ;;  %v2778_v55 = vld [vmem:[%s4670_s1 + $0x1c8] sm:$0xff]  ;;  %v2781_v28 = vld [vmem:[%s4670_s1 + $0x1e0] sm:$0xff] }
 0x323   : > { %1649 = vmatpush.msra.mxu1 %v1417_v6  ;;  %1773 = vmatpush.msra.mxu3 %v1443_v26  ;;  %v1361_v56 = vadd.f32 %v4741_v11, %v3983_v61  ;;  %v1423_v18 = vmax.f32 %v1367_v47, 0.0  ;;  %v1293_v31 = vadd.f32 %v4742_v58, %v3992_v15  ;;  %v1358_v49 = vadd.f32 %v4743_v20, %v3992_v15  ;;  %v4744_v61 = vld [vmem:[#allocation13_spill] sm:$0xff] }
 0x324   : > { %1585 = vmatpush.msra.mxu0 %v1412_v17  ;;  %1709 = vmatpush.msra.mxu2 %v1438_v10  ;;  %v1418_v43 = vmax.f32 %v1299_v44, 0.0  ;;  %v1419_v16 = vmax.f32 %v1364_v13, 0.0  ;;  %v1290_v46 = vadd.f32 %v4744_v61, %v4018_v24  ;;  %v1355_v19 = vadd.f32 %v4745_v57, %v4018_v24  ;;  %v4747_v15 = vld [vmem:[#allocation25_spill] sm:$0xff] }
 0x325   : > { %1650 = vmatpush.msra.mxu1 %v1413_v32  ;;  %1774 = vmatpush.msra.mxu3 %v1439_v4  ;;  %v1414_v30 = vmax.f32 %v1296_v14, 0.0  ;;  %v1415_v6 = vmax.f32 %v1361_v56, 0.0  ;;  %v1287_v26 = vadd.f32 %v4746_v50, %v4028_v60  ;;  %v1352_v35 = vadd.f32 %v4747_v15, %v4028_v60  ;;  %v4748_v10 = vld [vmem:[#allocation17_spill] sm:$0xff]  ;;  %v4749_v32 = vld [vmem:[#allocation24_spill] sm:$0xff] }
 0x326   : > { %1586 = vmatpush.msra.mxu0 %v1408_v42  ;;  %1710 = vmatpush.msra.mxu2 %v1434_v1  ;;  %v1410_v17 = vmax.f32 %v1293_v31, 0.0  ;;  %v1411_v9 = vmax.f32 %v1358_v49, 0.0  ;;  %v1284_v38 = vadd.f32 %v4748_v10, %v4038_v37  ;;  %v1349_v24 = vadd.f32 %v4749_v32, %v4038_v37  ;;  %v2771_v37 = vld [vmem:[%s4670_s1 + $0x190] sm:$0xff]  ;;  %v2784_v45 = vld [vmem:[%s4670_s1 + $0x1f8] sm:$0xff] }
 0x327   : > { %1651 = vmatpush.msra.mxu1 %v1409_v27  ;;  %1775 = vmatpush.msra.mxu3 %v1435_v41  ;;  %v1406_v21 = vmax.f32 %v1290_v46, 0.0  ;;  %v1407_v4 = vmax.f32 %v1355_v19, 0.0  ;;  %v1402_v42 = vmax.f32 %v1287_v26, 0.0  ;;  %v1403_v60 = vmax.f32 %v1352_v35, 0.0  ;;  %v2773_v27 = vld [vmem:[%s4670_s1 + $0x1a0] sm:$0xff]  ;;  %v2776_v41 = vld [vmem:[%s4670_s1 + $0x1b8] sm:$0xff] }
 0x328   : > { %1587 = vmatpush.msra.mxu0 %v1404_v8  ;;  %1711 = vmatpush.msra.mxu2 %v1430_v51  ;;  %v1398_v3 = vmax.f32 %v1284_v38, 0.0  ;;  %v1399_v1 = vmax.f32 %v1349_v24, 0.0  ;;  %v2779_v8 = vld [vmem:[%s4670_s1 + $0x1d0] sm:$0xff]  ;;  %v2782_v51 = vld [vmem:[%s4670_s1 + $0x1e8] sm:$0xff] }
 0x329   : > { %1652 = vmatpush.msra.mxu1 %v1405_v25  ;;  %1776 = vmatpush.msra.mxu3 %v1431_v2 }
 0x32a   : > { %1588 = vmatpush.msra.mxu0 %v1400_v7  ;;  %1712 = vmatpush.msra.mxu2 %v1426_v63 }
 0x32b   : > { %1653 = vmatpush.msra.mxu1 %v1401_v0  ;;  %1777 = vmatpush.msra.mxu3 %v1427_v53 }
 0x32c   : > { %1589 = vmatpush.msra.mxu0 %v1396_v12  ;;  %1713 = vmatpush.msra.mxu2 %v1422_v23 }
 0x32d   : > { %1654 = vmatpush.msra.mxu1 %v1397_v59  ;;  %1778 = vmatpush.msra.mxu3 %v1423_v18 }
 0x32e   : > { %1590 = vmatmul.f32.vlgmr.msra.gmra.mxu0 %v2769_v33  ;;  %1655 = vmatmul.f32.vlgmr.msra.gmra.mxu1 %v2769_v33 }
 0x32f   : > { %1714 = vmatpush.msra.mxu2 %v1418_v43  ;;  %1779 = vmatpush.msra.mxu3 %v1419_v16 }
 0x331   : > { %1715 = vmatpush.msra.mxu2 %v1414_v30  ;;  %1780 = vmatpush.msra.mxu3 %v1415_v6 }
 0x333   : > { %1716 = vmatpush.msra.mxu2 %v1410_v17  ;;  %1781 = vmatpush.msra.mxu3 %v1411_v9 }
 0x335   : > { %1717 = vmatpush.msra.mxu2 %v1406_v21  ;;  %1782 = vmatpush.msra.mxu3 %v1407_v4 }
 0x336   : > { %1593 = vmatmul.f32.gmra.mxu0 %v2770_v34  ;;  %1658 = vmatmul.f32.gmra.mxu1 %v2770_v34 }
 0x337   : > { %1718 = vmatpush.msra.mxu2 %v1402_v42  ;;  %1783 = vmatpush.msra.mxu3 %v1403_v60  ;;  %v4204_v42 = vpop.permute.xlu1 %1571 }
 0x339   : > { %1719 = vmatpush.msra.mxu2 %v1398_v3  ;;  %1784 = vmatpush.msra.mxu3 %v1399_v1  ;;  %v4210_v1 = vpop.permute.xlu2 %1566 }
 0x33a   : > { %1720 = vmatmul.f32.vlgmr.msra.gmra.mxu2 %v2769_v33  ;;  %1785 = vmatmul.f32.vlgmr.msra.gmra.mxu3 %v2769_v33 }
 0x33e   : > { %1596 = vmatmul.f32.gmra.mxu0 %v2771_v37  ;;  %1661 = vmatmul.f32.gmra.mxu1 %v2771_v37 }
 0x342   : > { %1723 = vmatmul.f32.gmra.mxu2 %v2770_v34  ;;  %1788 = vmatmul.f32.gmra.mxu3 %v2770_v34 }
 0x346   : > { %1599 = vmatmul.f32.gmra.mxu0 %v2772_v48  ;;  %1664 = vmatmul.f32.gmra.mxu1 %v2772_v48 }
 0x34a   : > { %1726 = vmatmul.f32.gmra.mxu2 %v2771_v37  ;;  %1791 = vmatmul.f32.gmra.mxu3 %v2771_v37 }
 0x34e   : > { %1602 = vmatmul.f32.gmra.mxu0 %v2773_v27  ;;  %1667 = vmatmul.f32.gmra.mxu1 %v2773_v27 }
 0x352   : > { %1729 = vmatmul.f32.gmra.mxu2 %v2772_v48  ;;  %1794 = vmatmul.f32.gmra.mxu3 %v2772_v48 }
 0x356   : > { %1605 = vmatmul.f32.gmra.mxu0 %v2774_v54  ;;  %1670 = vmatmul.f32.gmra.mxu1 %v2774_v54 }
 0x35a   : > { %1732 = vmatmul.f32.gmra.mxu2 %v2773_v27  ;;  %1797 = vmatmul.f32.gmra.mxu3 %v2773_v27  ;;  %v4212_v27 = vpop.permute.xlu0 %1561 }
 0x35e   : > { %1608 = vmatmul.f32.gmra.mxu0 %v2775_v5  ;;  %1673 = vmatmul.f32.gmra.mxu1 %v2775_v5 }
 0x362   : > { %1735 = vmatmul.f32.gmra.mxu2 %v2774_v54  ;;  %1800 = vmatmul.f32.gmra.mxu3 %v2774_v54 }
 0x366   : > { %1611 = vmatmul.f32.gmra.mxu0 %v2776_v41  ;;  %1676 = vmatmul.f32.gmra.mxu1 %v2776_v41 }
 0x36a   : > { %1738 = vmatmul.f32.gmra.mxu2 %v2775_v5  ;;  %1803 = vmatmul.f32.gmra.mxu3 %v2775_v5 }
 0x36e   : > { %1614 = vmatmul.f32.gmra.mxu0 %v2777_v40  ;;  %1679 = vmatmul.f32.gmra.mxu1 %v2777_v40 }
 0x372   : > { %1741 = vmatmul.f32.gmra.mxu2 %v2776_v41  ;;  %1806 = vmatmul.f32.gmra.mxu3 %v2776_v41  ;;  %v4218_v41 = vpop.permute.xlu1 %1556 }
 0x376   : > { %1617 = vmatmul.f32.gmra.mxu0 %v2778_v55  ;;  %1682 = vmatmul.f32.gmra.mxu1 %v2778_v55 }
 0x37a   : > { %1744 = vmatmul.f32.gmra.mxu2 %v2777_v40  ;;  %1809 = vmatmul.f32.gmra.mxu3 %v2777_v40 }
 0x37e   : > { %1620 = vmatmul.f32.gmra.mxu0 %v2779_v8  ;;  %1685 = vmatmul.f32.gmra.mxu1 %v2779_v8 }
 0x382   : > { %1747 = vmatmul.f32.gmra.mxu2 %v2778_v55  ;;  %1812 = vmatmul.f32.gmra.mxu3 %v2778_v55 }
 0x386   : > { %1623 = vmatmul.f32.gmra.mxu0 %v2780_v22  ;;  %1688 = vmatmul.f32.gmra.mxu1 %v2780_v22 }
 0x38a   : > { %1750 = vmatmul.f32.gmra.mxu2 %v2779_v8  ;;  %1815 = vmatmul.f32.gmra.mxu3 %v2779_v8  ;;  %v4220_v8 = vpop.permute.xlu2 %1551 }
 0x38e   : > { %1626 = vmatmul.f32.gmra.mxu0 %v2781_v28  ;;  %1691 = vmatmul.f32.gmra.mxu1 %v2781_v28 }
 0x392   : > { %1753 = vmatmul.f32.gmra.mxu2 %v2780_v22  ;;  %1818 = vmatmul.f32.gmra.mxu3 %v2780_v22 }
 0x396   : > { %1629 = vmatmul.f32.gmra.mxu0 %v2782_v51  ;;  %1694 = vmatmul.f32.gmra.mxu1 %v2782_v51 }
 0x39a   : > { %1756 = vmatmul.f32.gmra.mxu2 %v2781_v28  ;;  %1821 = vmatmul.f32.gmra.mxu3 %v2781_v28 }
 0x39e   : > { %1632 = vmatmul.f32.gmra.mxu0 %v2783_v52  ;;  %1697 = vmatmul.f32.gmra.mxu1 %v2783_v52 }
 0x3a2   : > { %1759 = vmatmul.f32.gmra.mxu2 %v2782_v51  ;;  %1824 = vmatmul.f32.gmra.mxu3 %v2782_v51  ;;  %v4226_v51 = vpop.permute.xlu0 %1546 }
 0x3a6   : > { %1635 = vmatmul.f32.gmra.mxu0 %v2784_v45  ;;  %1700 = vmatmul.f32.gmra.mxu1 %v2784_v45 }
 0x3aa   : > { %1762 = vmatmul.f32.gmra.mxu2 %v2783_v52  ;;  %1827 = vmatmul.f32.gmra.mxu3 %v2783_v52  ;;  %v4228_v52 = vpop.permute.xlu1 %1541 }
 0x3ab   : > { %v4124_v25 = vpop.f32.mrf.mxu0  ;;  %v4126_v36 = vpop.f32.mrf.mxu1 }
 0x3b2   : > { %1765 = vmatmul.f32.gmra.mxu2 %v2784_v45  ;;  %1830 = vmatmul.f32.gmra.mxu3 %v2784_v45 }
 0x3b3   : > { %v4128_v47 = vpop.f32.mrf.mxu0  ;;  %v4130_v2 = vpop.f32.mrf.mxu1 }
 0x3bb   : > { %v4132_v7 = vpop.f32.mrf.mxu0  ;;  %v4134_v63 = vpop.f32.mrf.mxu1 }
 0x3bd   : > { %v4136_v0 = vpop.f32.mrf.mxu2  ;;  %v4138_v39 = vpop.f32.mrf.mxu3 }
 0x3be   : > { %4750 = vst [vmem:[#allocation10_spill] sm:$0xff] %v4136_v0 }
 0x3bf   : > { %4751 = vst [vmem:[#allocation11_spill] sm:$0xff] %v4138_v39 }
 0x3c3   : > { %v4140_v44 = vpop.f32.mrf.mxu0  ;;  %v4142_v62 = vpop.f32.mrf.mxu1 }
 0x3c5   : > { %v4144_v13 = vpop.f32.mrf.mxu2  ;;  %v4146_v53 = vpop.f32.mrf.mxu3 }
 0x3c6   : > { %4752 = vst [vmem:[#allocation15_spill] sm:$0xff] %v4144_v13 }
 0x3c7   : > { %4753 = vst [vmem:[#allocation16_spill] sm:$0xff] %v4146_v53 }
 0x3cb   : > { %v4148_v12 = vpop.f32.mrf.mxu0  ;;  %v4150_v23 = vpop.f32.mrf.mxu1 }
 0x3cd   : > { %v4152_v59 = vpop.f32.mrf.mxu2  ;;  %v4154_v29 = vpop.f32.mrf.mxu3 }
 0x3ce   : > { %4754 = vst [vmem:[#allocation19_spill] sm:$0xff] %v4152_v59 }
 0x3cf   : > { %4755 = vst [vmem:[#allocation26_spill] sm:$0xff] %v4154_v29 }
 0x3d3   : > { %v4156_v14 = vpop.f32.mrf.mxu0  ;;  %v4158_v11 = vpop.f32.mrf.mxu1 }
 0x3d5   : > { %v4160_v56 = vpop.f32.mrf.mxu2  ;;  %v4162_v18 = vpop.f32.mrf.mxu3 }
 0x3d6   : > { %4756 = vst [vmem:[#allocation14_spill] sm:$0xff] %v4160_v56 }
 0x3d7   : > { %4757 = vst [vmem:[#allocation21_spill] sm:$0xff] %v4162_v18 }
 0x3db   : > { %v4164_v33 = vpop.f32.mrf.mxu0  ;;  %v4166_v58 = vpop.f32.mrf.mxu1 }
 0x3dd   : > { %v4168_v31 = vpop.f32.mrf.mxu2  ;;  %v4170_v20 = vpop.f32.mrf.mxu3 }
 0x3de   : > { %4758 = vst [vmem:[#allocation18_spill] sm:$0xff] %v4168_v31 }
 0x3df   : > { %4759 = vst [vmem:[#allocation9_spill] sm:$0xff] %v4170_v20 }
 0x3e3   : > { %v4172_v49 = vpop.f32.mrf.mxu0  ;;  %v4174_v43 = vpop.f32.mrf.mxu1 }
 0x3e5   : > { %v4176_v16 = vpop.f32.mrf.mxu2  ;;  %v4178_v61 = vpop.f32.mrf.mxu3 }
 0x3e6   : > { %4760 = vst [vmem:[#allocation20_spill] sm:$0xff] %v4176_v16  ;;  %v4240_v16 = vpop.permute.xlu2 %1536 }
 0x3e7   : > { %4761 = vst [vmem:[#allocation8_spill] sm:$0xff] %v4178_v61 }
 0x3eb   : > { %v4180_v46 = vpop.f32.mrf.mxu0  ;;  %v4182_v57 = vpop.f32.mrf.mxu1 }
 0x3ed   : > { %v4184_v19 = vpop.f32.mrf.mxu2  ;;  %v4186_v30 = vpop.f32.mrf.mxu3 }
 0x3ee   : > { %4762 = vst [vmem:[#allocation23_spill] sm:$0xff] %v4184_v19  ;;  %v4246_v19 = vpop.permute.xlu1 %1526 }
 0x3ef   : > { %4763 = vst [vmem:[#allocation13_spill] sm:$0xff] %v4186_v30 }
 0x3f3   : > { %v4188_v6 = vpop.f32.mrf.mxu0  ;;  %v4190_v50 = vpop.f32.mrf.mxu1 }
 0x3f5   : > { %v4192_v26 = vpop.f32.mrf.mxu2  ;;  %v4194_v15 = vpop.f32.mrf.mxu3 }
 0x3f6   : > { %4764 = vst [vmem:[#allocation22_spill] sm:$0xff] %v4194_v15  ;;  %v1619_v15 = vadd.f32 %v4188_v6, %v4228_v52 }
 0x3fb   : > { %v1621_v35 = vpop.f32.mrf.mxu0  ;;  %v1686_v17 = vpop.f32.mrf.mxu1 }
 0x3fd   : > { %v4196_v9 = vpop.f32.mrf.mxu2  ;;  %v4198_v10 = vpop.f32.mrf.mxu3 }
 0x403   : > { %v1624_v38 = vpop.f32.mrf.mxu0  ;;  %v1689_v32 = vpop.f32.mrf.mxu1 }
 0x405   : > { %v4200_v24 = vpop.f32.mrf.mxu2  ;;  %v4202_v21 = vpop.f32.mrf.mxu3 }
 0x40b   : > { %v1627_v4 = vpop.f32.mrf.mxu0  ;;  %v1692_v34 = vpop.f32.mrf.mxu1 }
 0x40d   : > { %v4206_v60 = vpop.f32.mrf.mxu2  ;;  %v4208_v3 = vpop.f32.mrf.mxu3 }
 0x413   : > { %v1630_v37 = vpop.f32.mrf.mxu0  ;;  %v1695_v48 = vpop.f32.mrf.mxu1 }
 0x414   : > { %v1631_v56 = vadd.f32 %v1630_v37, %v4212_v27  ;;  %v1696_v20 = vadd.f32 %v1695_v48, %v4212_v27  ;;  %v1625_v37 = vadd.f32 %v1624_v38, %v4220_v8  ;;  %v1690_v48 = vadd.f32 %v1689_v32, %v4220_v8 }
 0x415   : > { %v4214_v54 = vpop.f32.mrf.mxu2  ;;  %v4216_v5 = vpop.f32.mrf.mxu3  ;;  %v1684_v38 = vadd.f32 %v4190_v50, %v4228_v52 }
 0x41b   : > { %v1633_v40 = vpop.f32.mrf.mxu0  ;;  %v1698_v55 = vpop.f32.mrf.mxu1 }
 0x41c   : > { %v1634_v0 = vadd.f32 %v1633_v40, %v4210_v1  ;;  %v1699_v53 = vadd.f32 %v1698_v55, %v4210_v1  ;;  %v1628_v40 = vadd.f32 %v1627_v4, %v4218_v41  ;;  %v1693_v55 = vadd.f32 %v1692_v34, %v4218_v41 }
 0x41d   : > { %v4222_v22 = vpop.f32.mrf.mxu2  ;;  %v4224_v28 = vpop.f32.mrf.mxu3  ;;  %v1622_v4 = vadd.f32 %v1621_v35, %v4226_v51  ;;  %v1687_v34 = vadd.f32 %v1686_v17, %v4226_v51  ;;  %v1681_v35 = vadd.f32 %v4182_v57, %v4240_v16  ;;  %v1610_v57 = vadd.f32 %v4164_v33, %v4246_v19 }
 0x41e   : > { %v1890_v30 = vmax.f32 %v1634_v0, 0.0  ;;  %v1882_v0 = vmax.f32 %v1628_v40, 0.0  ;;  %v4260_v40 = vpop.permute.xlu2 %1521 }
 0x41f   : > { %v1874_v17 = vmax.f32 %v1622_v4, 0.0  ;;  %v1875_v32 = vmax.f32 %v1687_v34, 0.0 }
 0x423   : > { %v1636_v45 = vpop.f32.mrf.mxu0  ;;  %v1701_v39 = vpop.f32.mrf.mxu1 }
 0x424   : > { %v1637_v13 = vadd.f32 %v1636_v45, %v4204_v42  ;;  %v1702_v29 = vadd.f32 %v1701_v39, %v4204_v42  ;;  %v1891_v45 = vmax.f32 %v1699_v53, 0.0  ;;  %v4244_v39 = vpop.permute.xlu0 %1531  ;;  %v1883_v53 = vmax.f32 %v1693_v55, 0.0 }
 0x425   : > { %v4234_v59 = vpop.f32.mrf.mxu2  ;;  %v4236_v18 = vpop.f32.mrf.mxu3  ;;  %v1613_v6 = vadd.f32 %v4172_v49, %v4244_v39  ;;  %v1678_v50 = vadd.f32 %v4174_v43, %v4244_v39  ;;  %v1870_v55 = vmax.f32 %v1619_v15, 0.0  ;;  %v1607_v49 = vadd.f32 %v4156_v14, %v4260_v40 }
 0x426   : > { %v1894_v31 = vmax.f32 %v1637_v13, 0.0  ;;  %v1895_v61 = vmax.f32 %v1702_v29, 0.0  ;;  %v1886_v13 = vmax.f32 %v1631_v56, 0.0  ;;  %v1887_v29 = vmax.f32 %v1696_v20, 0.0 }
 0x427   : > { %v1878_v56 = vmax.f32 %v1625_v37, 0.0  ;;  %v1879_v20 = vmax.f32 %v1690_v48, 0.0  ;;  %v4268_v37 = vpop.permute.xlu1 %1511  ;;  %v1675_v48 = vadd.f32 %v4166_v58, %v4246_v19  ;;  %v1672_v43 = vadd.f32 %v4158_v11, %v4260_v40 }
 0x428   : > { %2012 = vmatpush.msrb.mxu0 %v1894_v31  ;;  %2077 = vmatpush.msrb.mxu1 %v1895_v61  ;;  %v1862_v34 = vmax.f32 %v1613_v6, 0.0 }
 0x42a   : > { %2013 = vmatpush.msrb.mxu0 %v1890_v30  ;;  %2078 = vmatpush.msrb.mxu1 %v1891_v45  ;;  %v1616_v30 = vadd.f32 %v4180_v46, %v4240_v16  ;;  %v1871_v45 = vmax.f32 %v1684_v38, 0.0 }
 0x42c   : > { %2014 = vmatpush.msrb.mxu0 %v1886_v13  ;;  %2079 = vmatpush.msrb.mxu1 %v1887_v29  ;;  %v4266_v46 = vpop.permute.xlu0 %1516  ;;  %v1866_v13 = vmax.f32 %v1616_v30, 0.0  ;;  %v1867_v29 = vmax.f32 %v1681_v35, 0.0 }
 0x42d   : > { %v1763_v31 = vpop.f32.mrf.mxu2  ;;  %v1828_v61 = vpop.f32.mrf.mxu3  ;;  %v1604_v58 = vadd.f32 %v4148_v12, %v4266_v46  ;;  %v1669_v38 = vadd.f32 %v4150_v23, %v4266_v46  ;;  %v1601_v12 = vadd.f32 %v4140_v44, %v4268_v37  ;;  %v1666_v23 = vadd.f32 %v4142_v62, %v4268_v37 }
 0x42e   : > { %2015 = vmatpush.msrb.mxu0 %v1882_v0  ;;  %2080 = vmatpush.msrb.mxu1 %v1883_v53  ;;  %v1863_v0 = vmax.f32 %v1678_v50, 0.0  ;;  %v1764_v14 = vadd.f32 %v1763_v31, %v4210_v1  ;;  %v1829_v11 = vadd.f32 %v1828_v61, %v4210_v1  ;;  %v1854_v31 = vmax.f32 %v1607_v49, 0.0  ;;  %v4294_v61 = vpop.permute.xlu2 %1506 }
 0x42f   : > { %v1855_v1 = vmax.f32 %v1672_v43, 0.0  ;;  %v1598_v44 = vadd.f32 %v4132_v7, %v4294_v61  ;;  %v1663_v62 = vadd.f32 %v4134_v63, %v4294_v61  ;;  %v1851_v50 = vmax.f32 %v1669_v38, 0.0 }
 0x430   : > { %2016 = vmatpush.msrb.mxu0 %v1878_v56  ;;  %2081 = vmatpush.msrb.mxu1 %v1879_v20  ;;  %v1858_v56 = vmax.f32 %v1610_v57, 0.0  ;;  %v1859_v20 = vmax.f32 %v1675_v48, 0.0  ;;  %v1892_v6 = vmax.f32 %v1764_v14, 0.0  ;;  %v1846_v57 = vmax.f32 %v1601_v12, 0.0 }
 0x431   : > { %v1847_v48 = vmax.f32 %v1666_v23, 0.0  ;;  %v1842_v49 = vmax.f32 %v1598_v44, 0.0  ;;  %v1843_v43 = vmax.f32 %v1663_v62, 0.0  ;;  %v4773_v44 = vld [vmem:[#allocation21_spill] sm:$0xff] }
 0x432   : > { %2017 = vmatpush.msrb.mxu0 %v1874_v17  ;;  %2082 = vmatpush.msrb.mxu1 %v1875_v32  ;;  %v1826_v17 = vadd.f32 %v4236_v18, %v4212_v27  ;;  %v1758_v32 = vadd.f32 %v4222_v22, %v4218_v41  ;;  %v1893_v18 = vmax.f32 %v1829_v11, 0.0  ;;  %v1755_v22 = vadd.f32 %v4214_v54, %v4220_v8  ;;  %v4767_v11 = vld [vmem:[#allocation13_spill] sm:$0xff] }
 0x433   : > { %v1752_v54 = vadd.f32 %v4206_v60, %v4226_v51  ;;  %v1749_v60 = vadd.f32 %v4200_v24, %v4228_v52 }
 0x434   : > { %2018 = vmatpush.msrb.mxu0 %v1870_v55  ;;  %2083 = vmatpush.msrb.mxu1 %v1871_v45  ;;  %v4304_v55 = vpop.permute.xlu0 %1501  ;;  %v1889_v45 = vmax.f32 %v1826_v17, 0.0 }
 0x435   : > { %v1766_v15 = vpop.f32.mrf.mxu2  ;;  %v1831_v4 = vpop.f32.mrf.mxu3  ;;  %v1595_v7 = vadd.f32 %v4128_v47, %v4304_v55  ;;  %v1660_v63 = vadd.f32 %v4130_v2, %v4304_v55  ;;  %v1872_v38 = vmax.f32 %v1749_v60, 0.0 }
 0x436   : > { %v1767_v53 = vadd.f32 %v1766_v15, %v4204_v42  ;;  %v1832_v33 = vadd.f32 %v1831_v4, %v4204_v42  ;;  %2019 = vmatpush.msrb.mxu0 %v1866_v13  ;;  %2084 = vmatpush.msrb.mxu1 %v1867_v29  ;;  %v1761_v42 = vadd.f32 %v4234_v59, %v4212_v27  ;;  %v1850_v27 = vmax.f32 %v1604_v58, 0.0  ;;  %v4314_v13 = vpop.permute.xlu1 %1496 }
 0x437   : > { %v1823_v59 = vadd.f32 %v4224_v28, %v4218_v41  ;;  %v1820_v41 = vadd.f32 %v4216_v5, %v4220_v8  ;;  %v1817_v5 = vadd.f32 %v4208_v3, %v4226_v51  ;;  %v1884_v8 = vmax.f32 %v1758_v32, 0.0 }
 0x438   : > { %v1896_v30 = vmax.f32 %v1767_v53, 0.0  ;;  %v1897_v35 = vmax.f32 %v1832_v33, 0.0  ;;  %2020 = vmatpush.msrb.mxu0 %v1862_v34  ;;  %2085 = vmatpush.msrb.mxu1 %v1863_v0  ;;  %v1888_v28 = vmax.f32 %v1761_v42, 0.0  ;;  %v1592_v47 = vadd.f32 %v4124_v25, %v4314_v13  ;;  %v4765_v33 = vld [vmem:[#allocation22_spill] sm:$0xff] }
 0x439   : > { %v1885_v29 = vmax.f32 %v1823_v59, 0.0  ;;  %v1657_v2 = vadd.f32 %v4126_v36, %v4314_v13  ;;  %v1814_v3 = vadd.f32 %v4202_v21, %v4228_v52  ;;  %v1880_v51 = vmax.f32 %v1755_v22, 0.0 }
 0x43a   : > { %2021 = vmatpush.msrb.mxu0 %v1858_v56  ;;  %2086 = vmatpush.msrb.mxu1 %v1859_v20  ;;  %v1881_v15 = vmax.f32 %v1820_v41, 0.0  ;;  %v1838_v4 = vmax.f32 %v1595_v7, 0.0  ;;  %v1839_v34 = vmax.f32 %v1660_v63, 0.0  ;;  %v1746_v25 = vadd.f32 %v4196_v9, %v4240_v16  ;;  %v4766_v9 = vld [vmem:[#allocation23_spill] sm:$0xff]  ;;  %v4775_v41 = vld [vmem:[#allocation26_spill] sm:$0xff] }
 0x43b   : > { %2142 = vmatpush.msrb.mxu2 %v1896_v30  ;;  %2207 = vmatpush.msrb.mxu3 %v1897_v35  ;;  %v1811_v36 = vadd.f32 %v4198_v10, %v4240_v16  ;;  %v1876_v0 = vmax.f32 %v1752_v54, 0.0  ;;  %v1877_v53 = vmax.f32 %v1817_v5, 0.0  ;;  %v1834_v24 = vmax.f32 %v1592_v47, 0.0  ;;  %v4339_v16 = vld [vmem:[%s4670_s1 + $0x200] sm:$0xff]  ;;  %v4769_v35 = vld [vmem:[#allocation8_spill] sm:$0xff] }
 0x43c   : > { %2022 = vmatpush.msrb.mxu0 %v1854_v31  ;;  %2087 = vmatpush.msrb.mxu1 %v1855_v1  ;;  %v1835_v21 = vmax.f32 %v1657_v2, 0.0  ;;  %v1743_v52 = vadd.f32 %v4192_v26, %v4244_v39  ;;  %v1808_v58 = vadd.f32 %v4765_v33, %v4244_v39  ;;  %v1873_v14 = vmax.f32 %v1814_v3, 0.0  ;;  %v4768_v39 = vld [vmem:[#allocation20_spill] sm:$0xff]  ;;  %v4771_v31 = vld [vmem:[#allocation9_spill] sm:$0xff] }
 0x43d   : > { %2143 = vmatpush.msrb.mxu2 %v1892_v6  ;;  %2208 = vmatpush.msrb.mxu3 %v1893_v18  ;;  %v1740_v10 = vadd.f32 %v4766_v9, %v4246_v19  ;;  %v1805_v26 = vadd.f32 %v4767_v11, %v4246_v19  ;;  %v1868_v56 = vmax.f32 %v1746_v25, 0.0  ;;  %v1869_v20 = vmax.f32 %v1811_v36, 0.0  ;;  %v4770_v19 = vld [vmem:[#allocation18_spill] sm:$0xff]  ;;  %v2808_v25 = vld [vmem:[%s4670_s1 + $0x238] sm:$0xff]  ;;  %v2814_v9 = vld [vmem:[%s4670_s1 + $0x268] sm:$0xff] }
 0x43e   : > { %2023 = vmatpush.msrb.mxu0 %v1850_v27  ;;  %2088 = vmatpush.msrb.mxu1 %v1851_v50  ;;  %v1737_v30 = vadd.f32 %v4768_v39, %v4260_v40  ;;  %v1802_v42 = vadd.f32 %v4769_v35, %v4260_v40  ;;  %v1864_v17 = vmax.f32 %v1743_v52, 0.0  ;;  %v1865_v12 = vmax.f32 %v1808_v58, 0.0  ;;  %v4772_v6 = vld [vmem:[#allocation14_spill] sm:$0xff]  ;;  %v2802_v50 = vld [vmem:[%s4670_s1 + $0x208] sm:$0xff]  ;;  %v4408_v52 = vpop.permute.xlu0 %1939  ;;  %v4410_v33 = vpop.permute.xlu1 %1944  ;;  %v2816_v35 = vld [vmem:[%s4670_s1 + $0x278] sm:$0xff] }
 0x43f   : > { %2144 = vmatpush.msrb.mxu2 %v1888_v28  ;;  %2209 = vmatpush.msrb.mxu3 %v1889_v45  ;;  %v1734_v23 = vadd.f32 %v4770_v19, %v4266_v46  ;;  %v1799_v1 = vadd.f32 %v4771_v31, %v4266_v46  ;;  %v1860_v32 = vmax.f32 %v1740_v10, 0.0  ;;  %v1861_v59 = vmax.f32 %v1805_v26, 0.0  ;;  %v4774_v46 = vld [vmem:[#allocation19_spill] sm:$0xff]  ;;  %v2809_v36 = vld [vmem:[%s4670_s1 + $0x240] sm:$0xff] }
 0x440   : > { %2024 = vmatpush.msrb.mxu0 %v1846_v57  ;;  %2089 = vmatpush.msrb.mxu1 %v1847_v48  ;;  %v1731_v18 = vadd.f32 %v4772_v6, %v4268_v37  ;;  %v1796_v40 = vadd.f32 %v4773_v44, %v4268_v37  ;;  %v1856_v62 = vmax.f32 %v1737_v30, 0.0  ;;  %v1857_v27 = vmax.f32 %v1802_v42, 0.0  ;;  %v4776_v37 = vld [vmem:[#allocation15_spill] sm:$0xff]  ;;  %v4777_v57 = vld [vmem:[#allocation16_spill] sm:$0xff]  ;;  %v2813_v58 = vld [vmem:[%s4670_s1 + $0x260] sm:$0xff] }
 0x441   : > { %2145 = vmatpush.msrb.mxu2 %v1884_v8  ;;  %2210 = vmatpush.msrb.mxu3 %v1885_v29  ;;  %v1728_v22 = vadd.f32 %v4774_v46, %v4294_v61  ;;  %v1793_v28 = vadd.f32 %v4775_v41, %v4294_v61  ;;  %v1852_v45 = vmax.f32 %v1734_v23, 0.0  ;;  %v1853_v7 = vmax.f32 %v1799_v1, 0.0  ;;  %v4778_v8 = vld [vmem:[#allocation10_spill] sm:$0xff]  ;;  %v4779_v61 = vld [vmem:[#allocation11_spill] sm:$0xff] }
 0x442   : > { %2025 = vmatpush.msrb.mxu0 %v1842_v49  ;;  %2090 = vmatpush.msrb.mxu1 %v1843_v43  ;;  %v1725_v63 = vadd.f32 %v4776_v37, %v4304_v55  ;;  %v1790_v48 = vadd.f32 %v4777_v57, %v4304_v55  ;;  %v1848_v54 = vmax.f32 %v1731_v18, 0.0  ;;  %v1849_v5 = vmax.f32 %v1796_v40, 0.0  ;;  %v2803_v55 = vld [vmem:[%s4670_s1 + $0x210] sm:$0xff] }
 0x443   : > { %2146 = vmatpush.msrb.mxu2 %v1880_v51  ;;  %2211 = vmatpush.msrb.mxu3 %v1881_v15  ;;  %v1722_v29 = vadd.f32 %v4778_v8, %v4314_v13  ;;  %v1787_v47 = vadd.f32 %v4779_v61, %v4314_v13  ;;  %v1844_v2 = vmax.f32 %v1728_v22, 0.0  ;;  %v1845_v49 = vmax.f32 %v1793_v28, 0.0  ;;  %v2804_v13 = vld [vmem:[%s4670_s1 + $0x218] sm:$0xff]  ;;  %v2805_v15 = vld [vmem:[%s4670_s1 + $0x220] sm:$0xff] }
 0x444   : > { %2026 = vmatpush.msrb.mxu0 %v1838_v4  ;;  %2091 = vmatpush.msrb.mxu1 %v1839_v34  ;;  %v1840_v43 = vmax.f32 %v1725_v63, 0.0  ;;  %v1841_v60 = vmax.f32 %v1790_v48, 0.0  ;;  %v2806_v4 = vld [vmem:[%s4670_s1 + $0x228] sm:$0xff]  ;;  %v2807_v34 = vld [vmem:[%s4670_s1 + $0x230] sm:$0xff] }
 0x445   : > { %2147 = vmatpush.msrb.mxu2 %v1876_v0  ;;  %2212 = vmatpush.msrb.mxu3 %v1877_v53  ;;  %v1836_v3 = vmax.f32 %v1722_v29, 0.0  ;;  %v1837_v51 = vmax.f32 %v1787_v47, 0.0  ;;  %v2810_v0 = vld [vmem:[%s4670_s1 + $0x248] sm:$0xff]  ;;  %v2811_v53 = vld [vmem:[%s4670_s1 + $0x250] sm:$0xff] }
 0x446   : > { %2027 = vmatpush.msrb.mxu0 %v1834_v24  ;;  %2092 = vmatpush.msrb.mxu1 %v1835_v21  ;;  %v4403_v24 = vpop.permute.xlu2 %1934  ;;  %v2812_v21 = vld [vmem:[%s4670_s1 + $0x258] sm:$0xff] }
 0x447   : > { %2148 = vmatpush.msrb.mxu2 %v1872_v38  ;;  %2213 = vmatpush.msrb.mxu3 %v1873_v14  ;;  %v4417_v14 = vpop.permute.xlu0 %1954 }
 0x448   : > { %2028 = vmatmul.f32.vlgmr.msrb.gmra.mxu0 %v4339_v16  ;;  %2093 = vmatmul.f32.vlgmr.msrb.gmra.mxu1 %v4339_v16 }
 0x449   : > { %2149 = vmatpush.msrb.mxu2 %v1868_v56  ;;  %2214 = vmatpush.msrb.mxu3 %v1869_v20  ;;  %v2815_v56 = vld [vmem:[%s4670_s1 + $0x270] sm:$0xff] }
 0x44b   : > { %2150 = vmatpush.msrb.mxu2 %v1864_v17  ;;  %2215 = vmatpush.msrb.mxu3 %v1865_v12 }
 0x44d   : > { %2151 = vmatpush.msrb.mxu2 %v1860_v32  ;;  %2216 = vmatpush.msrb.mxu3 %v1861_v59 }
 0x44e   : > { %v4415_v38 = vpop.permute.xlu2 %1949 }
 0x44f   : > { %2152 = vmatpush.msrb.mxu2 %v1856_v62  ;;  %2217 = vmatpush.msrb.mxu3 %v1857_v27  ;;  %v4426_v11 = vpop.permute.xlu0 %1969 }
 0x450   : > { %2031 = vmatmul.f32.gmra.mxu0 %v2802_v50  ;;  %2096 = vmatmul.f32.gmra.mxu1 %v2802_v50 }
 0x451   : > { %2153 = vmatpush.msrb.mxu2 %v1852_v45  ;;  %2218 = vmatpush.msrb.mxu3 %v1853_v7 }
 0x453   : > { %2154 = vmatpush.msrb.mxu2 %v1848_v54  ;;  %2219 = vmatpush.msrb.mxu3 %v1849_v5 }
 0x455   : > { %2155 = vmatpush.msrb.mxu2 %v1844_v2  ;;  %2220 = vmatpush.msrb.mxu3 %v1845_v49 }
 0x456   : > { %v4424_v10 = vpop.permute.xlu2 %1964 }
 0x457   : > { %2156 = vmatpush.msrb.mxu2 %v1840_v43  ;;  %2221 = vmatpush.msrb.mxu3 %v1841_v60  ;;  %v4435_v39 = vpop.permute.xlu0 %1984 }
 0x458   : > { %2034 = vmatmul.f32.gmra.mxu0 %v2803_v55  ;;  %2099 = vmatmul.f32.gmra.mxu1 %v2803_v55 }
 0x459   : > { %2157 = vmatpush.msrb.mxu2 %v1836_v3  ;;  %2222 = vmatpush.msrb.mxu3 %v1837_v51 }
 0x45a   : > { %2158 = vmatmul.f32.vlgmr.msrb.gmra.mxu2 %v4339_v16  ;;  %2223 = vmatmul.f32.vlgmr.msrb.gmra.mxu3 %v4339_v16  ;;  %v4419_v16 = vpop.permute.xlu1 %1959 }
 0x45e   : > { %v4433_v20 = vpop.permute.xlu2 %1979 }
 0x45f   : > { %v4444_v19 = vpop.permute.xlu0 %1999 }
 0x460   : > { %2037 = vmatmul.f32.gmra.mxu0 %v2804_v13  ;;  %2102 = vmatmul.f32.gmra.mxu1 %v2804_v13 }
 0x462   : > { %2161 = vmatmul.f32.gmra.mxu2 %v2802_v50  ;;  %2226 = vmatmul.f32.gmra.mxu3 %v2802_v50  ;;  %v4428_v26 = vpop.permute.xlu1 %1974 }
 0x466   : > { %v4442_v42 = vpop.permute.xlu2 %1994 }
 0x467   : > { %v2356_v27 = vpop.permute.xlu0 %2355 }
 0x468   : > { %2040 = vmatmul.f32.gmra.mxu0 %v2805_v15  ;;  %2105 = vmatmul.f32.gmra.mxu1 %v2805_v15 }
 0x46a   : > { %2164 = vmatmul.f32.gmra.mxu2 %v2803_v55  ;;  %2229 = vmatmul.f32.gmra.mxu3 %v2803_v55  ;;  %v4437_v30 = vpop.permute.xlu1 %1989 }
 0x46e   : > { %v4452_v62 = vpop.permute.xlu2 %2009 }
 0x470   : > { %2043 = vmatmul.f32.gmra.mxu0 %v2806_v4  ;;  %2108 = vmatmul.f32.gmra.mxu1 %v2806_v4 }
 0x472   : > { %2167 = vmatmul.f32.gmra.mxu2 %v2804_v13  ;;  %2232 = vmatmul.f32.gmra.mxu3 %v2804_v13  ;;  %v4446_v23 = vpop.permute.xlu1 %2004 }
 0x476   : > { %v2366_v61 = vpop.permute.xlu2 %2365 }
 0x478   : > { %2046 = vmatmul.f32.gmra.mxu0 %v2807_v34  ;;  %2111 = vmatmul.f32.gmra.mxu1 %v2807_v34 }
 0x47a   : > { %2170 = vmatmul.f32.gmra.mxu2 %v2805_v15  ;;  %2235 = vmatmul.f32.gmra.mxu3 %v2805_v15  ;;  %v2361_v22 = vpop.permute.xlu1 %2360 }
 0x480   : > { %2049 = vmatmul.f32.gmra.mxu0 %v2808_v25  ;;  %2114 = vmatmul.f32.gmra.mxu1 %v2808_v25 }
 0x482   : > { %2173 = vmatmul.f32.gmra.mxu2 %v2806_v4  ;;  %2238 = vmatmul.f32.gmra.mxu3 %v2806_v4 }
 0x488   : > { %2052 = vmatmul.f32.gmra.mxu0 %v2809_v36  ;;  %2117 = vmatmul.f32.gmra.mxu1 %v2809_v36 }
 0x48a   : > { %2176 = vmatmul.f32.gmra.mxu2 %v2807_v34  ;;  %2241 = vmatmul.f32.gmra.mxu3 %v2807_v34 }
 0x490   : > { %2055 = vmatmul.f32.gmra.mxu0 %v2810_v0  ;;  %2120 = vmatmul.f32.gmra.mxu1 %v2810_v0 }
 0x492   : > { %2179 = vmatmul.f32.gmra.mxu2 %v2808_v25  ;;  %2244 = vmatmul.f32.gmra.mxu3 %v2808_v25  ;;  %v2371_v25 = vpop.permute.xlu0 %2370 }
 0x498   : > { %2058 = vmatmul.f32.gmra.mxu0 %v2811_v53  ;;  %2123 = vmatmul.f32.gmra.mxu1 %v2811_v53 }
 0x49a   : > { %2182 = vmatmul.f32.gmra.mxu2 %v2809_v36  ;;  %2247 = vmatmul.f32.gmra.mxu3 %v2809_v36 }
 0x4a0   : > { %2061 = vmatmul.f32.gmra.mxu0 %v2812_v21  ;;  %2126 = vmatmul.f32.gmra.mxu1 %v2812_v21 }
 0x4a2   : > { %2185 = vmatmul.f32.gmra.mxu2 %v2810_v0  ;;  %2250 = vmatmul.f32.gmra.mxu3 %v2810_v0 }
 0x4a8   : > { %2064 = vmatmul.f32.gmra.mxu0 %v2813_v58  ;;  %2129 = vmatmul.f32.gmra.mxu1 %v2813_v58 }
 0x4aa   : > { %2188 = vmatmul.f32.gmra.mxu2 %v2811_v53  ;;  %2253 = vmatmul.f32.gmra.mxu3 %v2811_v53 }
 0x4b0   : > { %2067 = vmatmul.f32.gmra.mxu0 %v2814_v9  ;;  %2132 = vmatmul.f32.gmra.mxu1 %v2814_v9 }
 0x4b2   : > { %2191 = vmatmul.f32.gmra.mxu2 %v2812_v21  ;;  %2256 = vmatmul.f32.gmra.mxu3 %v2812_v21 }
 0x4b8   : > { %2070 = vmatmul.f32.gmra.mxu0 %v2815_v56  ;;  %2135 = vmatmul.f32.gmra.mxu1 %v2815_v56 }
 0x4ba   : > { %2194 = vmatmul.f32.gmra.mxu2 %v2813_v58  ;;  %2259 = vmatmul.f32.gmra.mxu3 %v2813_v58 }
 0x4c0   : > { %2073 = vmatmul.f32.gmra.mxu0 %v2816_v35  ;;  %2138 = vmatmul.f32.gmra.mxu1 %v2816_v35 }
 0x4c2   : > { %2197 = vmatmul.f32.gmra.mxu2 %v2814_v9  ;;  %2262 = vmatmul.f32.gmra.mxu3 %v2814_v9 }
 0x4c5   : > { %v2029_v17 = vpop.f32.mrf.mxu0  ;;  %v2094_v12 = vpop.f32.mrf.mxu1 }
 0x4c6   : > { %v2030_v31 = vadd.f32 %v2029_v17, %v4403_v24  ;;  %v2095_v1 = vadd.f32 %v2094_v12, %v4403_v24 }
 0x4c8   : > { %v2272_v32 = vmax.f32 %v2030_v31, 0.0  ;;  %v2273_v18 = vmax.f32 %v2095_v1, 0.0 }
 0x4ca   : > { %2200 = vmatmul.f32.gmra.mxu2 %v2815_v56  ;;  %2265 = vmatmul.f32.gmra.mxu3 %v2815_v56  ;;  %v2433_v41 = vmul.f32 %v2356_v27, %v2272_v32  ;;  %v2434_v28 = vmul.f32 %v2356_v27, %v2273_v18 }
 0x4cd   : > { %v2032_v59 = vpop.f32.mrf.mxu0  ;;  %v2097_v6 = vpop.f32.mrf.mxu1 }
 0x4ce   : > { %v2033_v44 = vadd.f32 %v2032_v59, %v4408_v52  ;;  %v2098_v40 = vadd.f32 %v2097_v6, %v4408_v52 }
 0x4d0   : > { %v2276_v50 = vmax.f32 %v2033_v44, 0.0  ;;  %v2277_v46 = vmax.f32 %v2098_v40, 0.0 }
 0x4d2   : > { %v2437_v45 = vmul.f32 %v2361_v22, %v2276_v50  ;;  %v2438_v7 = vmul.f32 %v2361_v22, %v2277_v46  ;;  %2203 = vmatmul.f32.gmra.mxu2 %v2816_v35  ;;  %2268 = vmatmul.f32.gmra.mxu3 %v2816_v35  ;;  %v2376_v50 = vpop.permute.xlu1 %2375 }
 0x4d4   : > { %v2497_v37 = vadd.f32 %v2437_v45, %v2433_v41  ;;  %v2518_v63 = vadd.f32 %v2438_v7, %v2434_v28 }
 0x4d5   : > { %v2035_v57 = vpop.f32.mrf.mxu0  ;;  %v2100_v48 = vpop.f32.mrf.mxu1 }
 0x4d6   : > { %v2036_v54 = vadd.f32 %v2035_v57, %v4410_v33  ;;  %v2101_v5 = vadd.f32 %v2100_v48, %v4410_v33 }
 0x4d8   : > { %v2280_v8 = vmax.f32 %v2036_v54, 0.0  ;;  %v2281_v29 = vmax.f32 %v2101_v5, 0.0 }
 0x4da   : > { %v2441_v47 = vmul.f32 %v2366_v61, %v2280_v8  ;;  %v2442_v2 = vmul.f32 %v2366_v61, %v2281_v29 }
 0x4dc   : > { %v2498_v49 = vadd.f32 %v2497_v37, %v2441_v47  ;;  %v2519_v43 = vadd.f32 %v2518_v63, %v2442_v2 }
 0x4dd   : > { %v2038_v60 = vpop.f32.mrf.mxu0  ;;  %v2103_v55 = vpop.f32.mrf.mxu1 }
 0x4de   : > { %v2039_v3 = vadd.f32 %v2038_v60, %v4415_v38  ;;  %v2104_v51 = vadd.f32 %v2103_v55, %v4415_v38  ;;  %v2159_v13 = vpop.f32.mrf.mxu2  ;;  %v2224_v15 = vpop.f32.mrf.mxu3 }
 0x4df   : > { %v2160_v53 = vadd.f32 %v2159_v13, %v4403_v24  ;;  %v2225_v21 = vadd.f32 %v2224_v15, %v4403_v24 }
 0x4e0   : > { %v2284_v4 = vmax.f32 %v2039_v3, 0.0  ;;  %v2285_v34 = vmax.f32 %v2104_v51, 0.0 }
 0x4e1   : > { %v2274_v32 = vmax.f32 %v2160_v53, 0.0  ;;  %v2275_v59 = vmax.f32 %v2225_v21, 0.0 }
 0x4e2   : > { %v2445_v36 = vmul.f32 %v2371_v25, %v2284_v4  ;;  %v2446_v0 = vmul.f32 %v2371_v25, %v2285_v34 }
 0x4e3   : > { %v2435_v45 = vmul.f32 %v2356_v27, %v2274_v32  ;;  %v2436_v7 = vmul.f32 %v2356_v27, %v2275_v59 }
 0x4e4   : > { %v2499_v58 = vadd.f32 %v2498_v49, %v2445_v36  ;;  %v2520_v9 = vadd.f32 %v2519_v43, %v2446_v0 }
 0x4e5   : > { %v2041_v56 = vpop.f32.mrf.mxu0  ;;  %v2106_v35 = vpop.f32.mrf.mxu1 }
 0x4e6   : > { %v2042_v17 = vadd.f32 %v2041_v56, %v4417_v14  ;;  %v2107_v12 = vadd.f32 %v2106_v35, %v4417_v14  ;;  %v2162_v31 = vpop.f32.mrf.mxu2  ;;  %v2227_v1 = vpop.f32.mrf.mxu3 }
 0x4e7   : > { %v2163_v6 = vadd.f32 %v2162_v31, %v4408_v52  ;;  %v2228_v18 = vadd.f32 %v2227_v1, %v4408_v52 }
 0x4e8   : > { %v2288_v44 = vmax.f32 %v2042_v17, 0.0  ;;  %v2289_v40 = vmax.f32 %v2107_v12, 0.0 }
 0x4e9   : > { %v2278_v24 = vmax.f32 %v2163_v6, 0.0  ;;  %v2279_v46 = vmax.f32 %v2228_v18, 0.0 }
 0x4ea   : > { %v2449_v41 = vmul.f32 %v2376_v50, %v2288_v44  ;;  %v2450_v28 = vmul.f32 %v2376_v50, %v2289_v40 }
 0x4eb   : > { %v2439_v37 = vmul.f32 %v2361_v22, %v2278_v24  ;;  %v2440_v63 = vmul.f32 %v2361_v22, %v2279_v46 }
 0x4ec   : > { %v4464_v57 = vadd.f32 %v2499_v58, %v2449_v41  ;;  %v4466_v48 = vadd.f32 %v2520_v9, %v2450_v28 }
 0x4ed   : > { %v2539_v54 = vadd.f32 %v2439_v37, %v2435_v45  ;;  %v2560_v5 = vadd.f32 %v2440_v63, %v2436_v7  ;;  %v2044_v8 = vpop.f32.mrf.mxu0  ;;  %v2109_v29 = vpop.f32.mrf.mxu1 }
 0x4ee   : > { %v2165_v52 = vpop.f32.mrf.mxu2  ;;  %v2230_v47 = vpop.f32.mrf.mxu3 }
 0x4ef   : > { %v2166_v2 = vadd.f32 %v2165_v52, %v4410_v33  ;;  %v2231_v49 = vadd.f32 %v2230_v47, %v4410_v33  ;;  %v4490_v63 = vpop.permute.xlu2 %2380 }
 0x4f1   : > { %v2282_v43 = vmax.f32 %v2166_v2, 0.0  ;;  %v2283_v60 = vmax.f32 %v2231_v49, 0.0  ;;  %v4496_v2 = vpop.permute.xlu0 %2385  ;;  %v2045_v49 = vadd.f32 %v2044_v8, %v4419_v16 }
 0x4f3   : > { %v2443_v55 = vmul.f32 %v2366_v61, %v2282_v43  ;;  %v2444_v27 = vmul.f32 %v2366_v61, %v2283_v60  ;;  %v2110_v43 = vadd.f32 %v2109_v29, %v4419_v16 }
 0x4f5   : > { %v2540_v3 = vadd.f32 %v2539_v54, %v2443_v55  ;;  %v2561_v22 = vadd.f32 %v2560_v5, %v2444_v27  ;;  %v2047_v51 = vpop.f32.mrf.mxu0  ;;  %v2112_v13 = vpop.f32.mrf.mxu1 }
 0x4f6   : > { %v2168_v15 = vpop.f32.mrf.mxu2  ;;  %v2233_v4 = vpop.f32.mrf.mxu3  ;;  %v2048_v60 = vadd.f32 %v2047_v51, %v4424_v10  ;;  %v2113_v55 = vadd.f32 %v2112_v13, %v4424_v10 }
 0x4f7   : > { %v2169_v34 = vadd.f32 %v2168_v15, %v4415_v38  ;;  %v2234_v36 = vadd.f32 %v2233_v4, %v4415_v38  ;;  %v2293_v15 = vmax.f32 %v2110_v43, 0.0  ;;  %v4510_v8 = vpop.permute.xlu2 %2395 }
 0x4f8   : > { %v2296_v29 = vmax.f32 %v2048_v60, 0.0  ;;  %v2297_v51 = vmax.f32 %v2113_v55, 0.0 }
 0x4f9   : > { %v2286_v0 = vmax.f32 %v2169_v34, 0.0  ;;  %v2287_v53 = vmax.f32 %v2234_v36, 0.0 }
 0x4fb   : > { %v2447_v21 = vmul.f32 %v2371_v25, %v2286_v0  ;;  %v2448_v58 = vmul.f32 %v2371_v25, %v2287_v53  ;;  %v4508_v53 = vpop.permute.xlu1 %2390 }
 0x4fd   : > { %v2541_v9 = vadd.f32 %v2540_v3, %v2447_v21  ;;  %v2562_v33 = vadd.f32 %v2561_v22, %v2448_v58  ;;  %v2050_v56 = vpop.f32.mrf.mxu0  ;;  %v2115_v35 = vpop.f32.mrf.mxu1  ;;  %v2292_v22 = vmax.f32 %v2045_v49, 0.0 }
 0x4fe   : > { %v2171_v17 = vpop.f32.mrf.mxu2  ;;  %v2236_v61 = vpop.f32.mrf.mxu3  ;;  %v2051_v4 = vadd.f32 %v2050_v56, %v4426_v11  ;;  %v2116_v34 = vadd.f32 %v2115_v35, %v4426_v11 }
 0x4ff   : > { %v2172_v12 = vadd.f32 %v2171_v17, %v4417_v14  ;;  %v2237_v31 = vadd.f32 %v2236_v61, %v4417_v14  ;;  %v2453_v58 = vmul.f32 %v4490_v63, %v2292_v22  ;;  %v4518_v61 = vpop.permute.xlu0 %2400 }
 0x500   : > { %v2301_v56 = vmax.f32 %v2116_v34, 0.0 }
 0x501   : > { %v2290_v1 = vmax.f32 %v2172_v12, 0.0  ;;  %v2291_v32 = vmax.f32 %v2237_v31, 0.0  ;;  %v2457_v12 = vmul.f32 %v4496_v2, %v2296_v29  ;;  %v2458_v31 = vmul.f32 %v4496_v2, %v2297_v51 }
 0x502   : > { %v2501_v49 = vadd.f32 %v4464_v57, %v2453_v58  ;;  %v2462_v43 = vmul.f32 %v4508_v53, %v2301_v56 }
 0x503   : > { %v2451_v59 = vmul.f32 %v2376_v50, %v2290_v1  ;;  %v2452_v6 = vmul.f32 %v2376_v50, %v2291_v32  ;;  %v4536_v29 = vpop.permute.xlu1 %2405 }
 0x505   : > { %v4474_v18 = vadd.f32 %v2541_v9, %v2451_v59  ;;  %v4476_v38 = vadd.f32 %v2562_v33, %v2452_v6  ;;  %v2053_v44 = vpop.f32.mrf.mxu0  ;;  %v2118_v25 = vpop.f32.mrf.mxu1  ;;  %v2454_v9 = vmul.f32 %v4490_v63, %v2293_v15  ;;  %v2300_v33 = vmax.f32 %v2051_v4, 0.0 }
 0x506   : > { %v4478_v40 = vpop.f32.mrf.mxu2  ;;  %v4480_v24 = vpop.f32.mrf.mxu3  ;;  %v2054_v13 = vadd.f32 %v2053_v44, %v4428_v26  ;;  %v2119_v21 = vadd.f32 %v2118_v25, %v4428_v26  ;;  %v2502_v4 = vadd.f32 %v2501_v49, %v2457_v12 }
 0x508   : > { %v2304_v1 = vmax.f32 %v2054_v13, 0.0  ;;  %v2305_v32 = vmax.f32 %v2119_v21, 0.0 }
 0x50a   : > { %v2465_v57 = vmul.f32 %v4510_v8, %v2304_v1 }
 0x50d   : > { %v2056_v46 = vpop.f32.mrf.mxu0  ;;  %v2121_v41 = vpop.f32.mrf.mxu1 }
 0x50e   : > { %v4482_v28 = vpop.f32.mrf.mxu2  ;;  %v4484_v45 = vpop.f32.mrf.mxu3  ;;  %v2057_v35 = vadd.f32 %v2056_v46, %v4433_v20  ;;  %v2122_v17 = vadd.f32 %v2121_v41, %v4433_v20  ;;  %v2522_v46 = vadd.f32 %v4466_v48, %v2454_v9  ;;  %v2461_v41 = vmul.f32 %v4508_v53, %v2300_v33 }
 0x50f   : > { %v2466_v48 = vmul.f32 %v4510_v8, %v2305_v32  ;;  %v4540_v9 = vpop.permute.xlu2 %2410 }
 0x510   : > { %v2308_v22 = vmax.f32 %v2057_v35, 0.0  ;;  %v2309_v15 = vmax.f32 %v2122_v17, 0.0  ;;  %v2523_v34 = vadd.f32 %v2522_v46, %v2458_v31  ;;  %v2503_v33 = vadd.f32 %v2502_v4, %v2461_v41 }
 0x511   : > { %v2175_v41 = vadd.f32 %v4478_v40, %v4419_v16  ;;  %v2178_v40 = vadd.f32 %v4482_v28, %v4424_v10 }
 0x512   : > { %v2470_v56 = vmul.f32 %v4518_v61, %v2309_v15  ;;  %v2504_v12 = vadd.f32 %v2503_v33, %v2465_v57 }
 0x515   : > { %v2059_v14 = vpop.f32.mrf.mxu0  ;;  %v2124_v7 = vpop.f32.mrf.mxu1 }
 0x516   : > { %v4486_v37 = vpop.f32.mrf.mxu2  ;;  %v4488_v50 = vpop.f32.mrf.mxu3  ;;  %v2060_v59 = vadd.f32 %v2059_v14, %v4435_v39  ;;  %v2125_v6 = vadd.f32 %v2124_v7, %v4435_v39 }
 0x517   : > { %v4570_v28 = vpop.permute.xlu2 %2425 }
 0x518   : > { %v2312_v51 = vmax.f32 %v2060_v59, 0.0  ;;  %v2313_v13 = vmax.f32 %v2125_v6, 0.0 }
 0x51d   : > { %v2062_v54 = vpop.f32.mrf.mxu0  ;;  %v2127_v5 = vpop.f32.mrf.mxu1 }
 0x51e   : > { %v4492_v52 = vpop.f32.mrf.mxu2  ;;  %v4494_v47 = vpop.f32.mrf.mxu3  ;;  %v2063_v14 = vadd.f32 %v2062_v54, %v4437_v30  ;;  %v2128_v7 = vadd.f32 %v2127_v5, %v4437_v30  ;;  %v2524_v54 = vadd.f32 %v2523_v34, %v2462_v43  ;;  %v2469_v5 = vmul.f32 %v4518_v61, %v2308_v22 }
 0x51f   : > { %v2240_v43 = vadd.f32 %v4480_v24, %v4419_v16  ;;  %v2243_v16 = vadd.f32 %v4484_v45, %v4424_v10 }
 0x520   : > { %v2316_v35 = vmax.f32 %v2063_v14, 0.0  ;;  %v2317_v17 = vmax.f32 %v2128_v7, 0.0  ;;  %v2525_v31 = vadd.f32 %v2524_v54, %v2466_v48  ;;  %v4558_v14 = vpop.permute.xlu0 %2415  ;;  %v2505_v7 = vadd.f32 %v2504_v12, %v2469_v5  ;;  %v4568_v5 = vpop.permute.xlu1 %2420 }
 0x521   : > { %v2299_v10 = vmax.f32 %v2243_v16, 0.0 }
 0x522   : > { %v2526_v4 = vadd.f32 %v2525_v31, %v2470_v56  ;;  %v2477_v34 = vmul.f32 %v4540_v9, %v2316_v35  ;;  %v2478_v57 = vmul.f32 %v4540_v9, %v2317_v17  ;;  %v2294_v56 = vmax.f32 %v2175_v41, 0.0 }
 0x523   : > { %v2295_v35 = vmax.f32 %v2240_v43, 0.0  ;;  %v2298_v31 = vmax.f32 %v2178_v40, 0.0 }
 0x525   : > { %v2065_v27 = vpop.f32.mrf.mxu0  ;;  %v2130_v3 = vpop.f32.mrf.mxu1 }
 0x526   : > { %v4504_v36 = vpop.f32.mrf.mxu2  ;;  %v4506_v0 = vpop.f32.mrf.mxu3  ;;  %v2066_v21 = vadd.f32 %v2065_v27, %v4442_v42  ;;  %v2131_v58 = vadd.f32 %v2130_v3, %v4442_v42  ;;  %v2473_v27 = vmul.f32 %v4536_v29, %v2312_v51  ;;  %v2474_v3 = vmul.f32 %v4536_v29, %v2313_v13 }
 0x528   : > { %v2320_v59 = vmax.f32 %v2066_v21, 0.0  ;;  %v2321_v6 = vmax.f32 %v2131_v58, 0.0  ;;  %v2506_v51 = vadd.f32 %v2505_v7, %v2473_v27  ;;  %v2527_v13 = vadd.f32 %v2526_v4, %v2474_v3 }
 0x529   : > { %v2246_v27 = vadd.f32 %v4488_v50, %v4426_v11  ;;  %v2455_v4 = vmul.f32 %v4490_v63, %v2294_v56  ;;  %v2249_v50 = vadd.f32 %v4494_v47, %v4428_v26  ;;  %v2187_v47 = vadd.f32 %v4504_v36, %v4433_v20 }
 0x52a   : > { %v2481_v21 = vmul.f32 %v4558_v14, %v2320_v59  ;;  %v2482_v58 = vmul.f32 %v4558_v14, %v2321_v6  ;;  %v2507_v17 = vadd.f32 %v2506_v51, %v2477_v34  ;;  %v2528_v12 = vadd.f32 %v2527_v13, %v2478_v57 }
 0x52b   : > { %v2460_v51 = vmul.f32 %v4496_v2, %v2299_v10  ;;  %v2252_v56 = vadd.f32 %v4506_v0, %v4433_v20 }
 0x52c   : > { %v2508_v3 = vadd.f32 %v2507_v17, %v2481_v21  ;;  %v2529_v59 = vadd.f32 %v2528_v12, %v2482_v58  ;;  %v2303_v21 = vmax.f32 %v2246_v27, 0.0 }
 0x52d   : > { %v2068_v44 = vpop.f32.mrf.mxu0  ;;  %v2133_v25 = vpop.f32.mrf.mxu1 }
 0x52e   : > { %v4528_v60 = vpop.f32.mrf.mxu2  ;;  %v4530_v55 = vpop.f32.mrf.mxu3  ;;  %v2069_v1 = vadd.f32 %v2068_v44, %v4444_v19  ;;  %v2134_v32 = vadd.f32 %v2133_v25, %v4444_v19  ;;  %v2464_v10 = vmul.f32 %v4508_v53, %v2303_v21 }
 0x530   : > { %v2324_v24 = vmax.f32 %v2069_v1, 0.0  ;;  %v2325_v48 = vmax.f32 %v2134_v32, 0.0  ;;  %v2181_v32 = vadd.f32 %v4486_v37, %v4426_v11  ;;  %v2456_v37 = vmul.f32 %v4490_v63, %v2295_v35 }
 0x531   : > { %v2184_v11 = vadd.f32 %v4492_v52, %v4428_v26  ;;  %v2307_v26 = vmax.f32 %v2249_v50, 0.0  ;;  %v2543_v35 = vadd.f32 %v4474_v18, %v2455_v4 }
 0x532   : > { %v2485_v45 = vmul.f32 %v4568_v5, %v2324_v24  ;;  %v2486_v1 = vmul.f32 %v4568_v5, %v2325_v48  ;;  %v4588_v24 = vpop.permute.xlu0 %2430  ;;  %v2459_v48 = vmul.f32 %v4496_v2, %v2298_v31  ;;  %v2302_v13 = vmax.f32 %v2181_v32, 0.0 }
 0x533   : > { %v2564_v2 = vadd.f32 %v4476_v38, %v2456_v37 }
 0x534   : > { %v2509_v34 = vadd.f32 %v2508_v3, %v2485_v45  ;;  %v2530_v57 = vadd.f32 %v2529_v59, %v2486_v1  ;;  %v2463_v31 = vmul.f32 %v4508_v53, %v2302_v13  ;;  %v2190_v45 = vadd.f32 %v4528_v60, %v4435_v39 }
 0x535   : > { %v2071_v49 = vpop.f32.mrf.mxu0  ;;  %v2136_v46 = vpop.f32.mrf.mxu1  ;;  %v2255_v1 = vadd.f32 %v4530_v55, %v4435_v39  ;;  %v2544_v36 = vadd.f32 %v2543_v35, %v2459_v48  ;;  %v2565_v32 = vadd.f32 %v2564_v2, %v2460_v51  ;;  %v2468_v3 = vmul.f32 %v4510_v8, %v2307_v26 }
 0x536   : > { %v2072_v22 = vadd.f32 %v2071_v49, %v4446_v23  ;;  %v2137_v44 = vadd.f32 %v2136_v46, %v4446_v23  ;;  %v4554_v15 = vpop.f32.mrf.mxu2  ;;  %v4556_v25 = vpop.f32.mrf.mxu3  ;;  %v2310_v59 = vmax.f32 %v2187_v47, 0.0 }
 0x537   : > { %v2193_v53 = vadd.f32 %v4554_v15, %v4437_v30  ;;  %v2258_v60 = vadd.f32 %v4556_v25, %v4437_v30  ;;  %v2545_v55 = vadd.f32 %v2544_v36, %v2463_v31  ;;  %v2586_v35 = vpop.permute.xlu1 %2585 }
 0x538   : > { %v2328_v33 = vmax.f32 %v2072_v22, 0.0  ;;  %v2329_v54 = vmax.f32 %v2137_v44, 0.0 }
 0x539   : > { %v2319_v30 = vmax.f32 %v2258_v60, 0.0 }
 0x53a   : > { %v2489_v46 = vmul.f32 %v4570_v28, %v2328_v33  ;;  %v2490_v41 = vmul.f32 %v4570_v28, %v2329_v54  ;;  %v2306_v54 = vmax.f32 %v2184_v11, 0.0 }
 0x53c   : > { %v2510_v58 = vadd.f32 %v2509_v34, %v2489_v46  ;;  %v2531_v63 = vadd.f32 %v2530_v57, %v2490_v41  ;;  %v2467_v38 = vmul.f32 %v4510_v8, %v2306_v54  ;;  %v2566_v46 = vadd.f32 %v2565_v32, %v2464_v10 }
 0x53d   : > { %v2074_v6 = vpop.f32.mrf.mxu0  ;;  %v2139_v49 = vpop.f32.mrf.mxu1  ;;  %v2314_v41 = vmax.f32 %v2190_v45, 0.0  ;;  %v2471_v34 = vmul.f32 %v4518_v61, %v2310_v59  ;;  %v2318_v57 = vmax.f32 %v2193_v53, 0.0 }
 0x53e   : > { %v2075_v43 = vadd.f32 %v2074_v6, %v4452_v62  ;;  %v2140_v22 = vadd.f32 %v2139_v49, %v4452_v62  ;;  %v2195_v44 = vpop.f32.mrf.mxu2  ;;  %v2260_v7 = vpop.f32.mrf.mxu3  ;;  %v2311_v6 = vmax.f32 %v2252_v56, 0.0  ;;  %v2546_v11 = vadd.f32 %v2545_v55, %v2467_v38 }
 0x53f   : > { %v2196_v37 = vadd.f32 %v2195_v44, %v4442_v42  ;;  %v2261_v8 = vadd.f32 %v2260_v7, %v4442_v42  ;;  %v2567_v50 = vadd.f32 %v2566_v46, %v2468_v3  ;;  %v2479_v26 = vmul.f32 %v4540_v9, %v2318_v57 }
 0x540   : > { %v2332_v40 = vmax.f32 %v2075_v43, 0.0  ;;  %v2333_v16 = vmax.f32 %v2140_v22, 0.0  ;;  %v2315_v43 = vmax.f32 %v2255_v1, 0.0  ;;  %v2472_v15 = vmul.f32 %v4518_v61, %v2311_v6 }
 0x541   : > { %v2322_v7 = vmax.f32 %v2196_v37, 0.0  ;;  %v2323_v21 = vmax.f32 %v2261_v8, 0.0 }
 0x542   : > { %v2493_v33 = vmul.f32 %v4588_v24, %v2332_v40  ;;  %v2494_v52 = vmul.f32 %v4588_v24, %v2333_v16  ;;  %v2475_v16 = vmul.f32 %v4536_v29, %v2314_v41  ;;  %v2476_v48 = vmul.f32 %v4536_v29, %v2315_v43 }
 0x543   : > { %v2568_v61 = vadd.f32 %v2567_v50, %v2472_v15  ;;  %v2480_v29 = vmul.f32 %v4540_v9, %v2319_v30  ;;  %v2483_v10 = vmul.f32 %v4558_v14, %v2322_v7  ;;  %v2484_v45 = vmul.f32 %v4558_v14, %v2323_v21 }
 0x544   : > { %v2511_v17 = vadd.f32 %v2510_v58, %v2493_v33  ;;  %v2532_v12 = vadd.f32 %v2531_v63, %v2494_v52  ;;  %v2547_v33 = vadd.f32 %v2546_v11, %v2471_v34 }
 0x546   : > { %v2512_v27 = vrot.slane %v2511_v17, 4  ;;  %v2533_v20 = vrot.slane %v2532_v12, 4  ;;  %v2198_v0 = vpop.f32.mrf.mxu2  ;;  %v2263_v18 = vpop.f32.mrf.mxu3 }
 0x547   : > { %v2199_v51 = vadd.f32 %v2198_v0, %v4444_v19  ;;  %v2264_v44 = vadd.f32 %v2263_v18, %v4444_v19  ;;  %v2548_v19 = vadd.f32 %v2547_v33, %v2475_v16 }
 0x548   : > { %v2513_v49 = vadd.f32 %v2512_v27, %v2511_v17  ;;  %v2534_v39 = vadd.f32 %v2533_v20, %v2532_v12  ;;  %v2569_v12 = vadd.f32 %v2568_v61, %v2476_v48 }
 0x549   : > { %v2326_v2 = vmax.f32 %v2199_v51, 0.0  ;;  %v2327_v17 = vmax.f32 %v2264_v44, 0.0 }
 0x54a   : > { %v2514_v22 = vrot.slane %v2513_v49, 2  ;;  %v2535_v4 = vrot.slane %v2534_v39, 2  ;;  %v2570_v32 = vadd.f32 %v2569_v12, %v2480_v29 }
 0x54b   : > { %v2487_v9 = vmul.f32 %v4568_v5, %v2326_v2  ;;  %v2488_v0 = vmul.f32 %v4568_v5, %v2327_v17 }
 0x54c   : > { %v2515_v25 = vadd.f32 %v2514_v22, %v2513_v49  ;;  %v2536_v40 = vadd.f32 %v2535_v4, %v2534_v39  ;;  %v2571_v38 = vadd.f32 %v2570_v32, %v2484_v45 }
 0x54e   : > { %v2516_v13 = vrot.slane %v2515_v25, 1  ;;  %v2537_v42 = vrot.slane %v2536_v40, 1  ;;  %v2201_v58 = vpop.f32.mrf.mxu2  ;;  %v2266_v63 = vpop.f32.mrf.mxu3  ;;  %v2572_v55 = vadd.f32 %v2571_v38, %v2488_v0 }
 0x54f   : > { %v2202_v52 = vadd.f32 %v2201_v58, %v4446_v23  ;;  %v2267_v54 = vadd.f32 %v2266_v63, %v4446_v23  ;;  %v2549_v23 = vadd.f32 %v2548_v19, %v2479_v26 }
 0x550   : > { %v2517_v47 = vadd.f32 %v2516_v13, %v2515_v25  ;;  %v2538_v56 = vadd.f32 %v2537_v42, %v2536_v40 }
 0x551   : > { %v2330_v1 = vmax.f32 %v2202_v52, 0.0  ;;  %v2331_v36 = vmax.f32 %v2267_v54, 0.0  ;;  %v2550_v18 = vadd.f32 %v2549_v23, %v2483_v10 }
 0x552   : > { %v2589_v31 = vadd.f32 %v2586_v35, %v2538_v56  ;;  %v2588_v27 = vadd.f32 %v2586_v35, %v2517_v47 }
 0x553   : > { %v2491_v53 = vmul.f32 %v4570_v28, %v2330_v1  ;;  %v2492_v14 = vmul.f32 %v4570_v28, %v2331_v36  ;;  %v2551_v39 = vadd.f32 %v2550_v18, %v2487_v9 }
 0x554   : > { %v2596_v20 = vrot.slane %v2589_v31, 7 }
 0x555   : > { %v2552_v43 = vadd.f32 %v2551_v39, %v2491_v53  ;;  %v2573_v5 = vadd.f32 %v2572_v55, %v2492_v14 }
 0x556   : > { %v2204_v3 = vpop.f32.mrf.mxu2  ;;  %v2269_v59 = vpop.f32.mrf.mxu3  ;;  %v2600_v6 = vsel %vm2599_vm0, %v2588_v27, %v2596_v20 }
 0x557   : > { %v2205_v60 = vadd.f32 %v2204_v3, %v4452_v62  ;;  %v2270_v49 = vadd.f32 %v2269_v59, %v4452_v62 }
 0x559   : > { %v2334_v46 = vmax.f32 %v2205_v60, 0.0  ;;  %v2335_v41 = vmax.f32 %v2270_v49, 0.0 }
 0x55b   : > { %v2495_v22 = vmul.f32 %v4588_v24, %v2334_v46  ;;  %v2496_v4 = vmul.f32 %v4588_v24, %v2335_v41  ;;  %v2606_v24 = vlaneseq }
 0x55d   : > { %v2553_v37 = vadd.f32 %v2552_v43, %v2495_v22  ;;  %v2574_v8 = vadd.f32 %v2573_v5, %v2496_v4  ;;  %vm2608_vm3 = vcmp.lt.s32.totalorder %v2606_v24, 512 }
 0x55f   : > { %v2554_v11 = vrot.slane %v2553_v37, 4  ;;  %v2575_v50 = vrot.slane %v2574_v8, 4 }
 0x561   : > { %v2555_v28 = vadd.f32 %v2554_v11, %v2553_v37  ;;  %v2576_v34 = vadd.f32 %v2575_v50, %v2574_v8 }
 0x563   : > { %v2556_v15 = vrot.slane %v2555_v28, 2  ;;  %v2577_v62 = vrot.slane %v2576_v34, 2 }
 0x565   : > { %v2557_v57 = vadd.f32 %v2556_v15, %v2555_v28  ;;  %v2578_v30 = vadd.f32 %v2577_v62, %v2576_v34 }
 0x567   : > { %v2558_v25 = vrot.slane %v2557_v57, 1  ;;  %v2579_v40 = vrot.slane %v2578_v30, 1 }
 0x569   : > { %v2559_v16 = vadd.f32 %v2558_v25, %v2557_v57  ;;  %v2580_v48 = vadd.f32 %v2579_v40, %v2578_v30 }
 0x56b   : > { %v2590_v51 = vadd.f32 %v2586_v35, %v2559_v16  ;;  %v2591_v44 = vadd.f32 %v2586_v35, %v2580_v48 }
 0x56d   : > { %v2597_v13 = vrot.slane %v2590_v51, 6  ;;  %v2598_v42 = vrot.slane %v2591_v44, 5 }
 0x56f   : > { %v2602_v7 = vsel %vm2601_vm1, %v2597_v13, %v2598_v42 }
 0x570   : > { %v2604_v21 = vsel %vm2603_vm2, %v2600_v6, %v2602_v7 }
 0x571   : > { %2610 = vst.msk [vmem:[%s187_s20] sm:$0xf] %vm2608_vm3, %v2604_v21 }
 0x572   : > { %2961 = shalt.err (!%p2958_p4)
}
 0x573   : > { %2856 = dma.vmem_to_hbm [thread:$0]  (%p3073_p11), %s2625_s22, 64, %s2627_s27, %s2612_s16  }
 0x574 PF: > { %s2638_s26 = sand.u32 1, %s2988_s12   ;;  %p4780_p7 = scmp.ge.s32.totalorder %s3000_s15, 2 }
 0x575   : > { %s2639_s8 = scalar_lea.sflag [#allocation4], %s2638_s26 }
 0x576   : > { %p2863_p5 = pnand %p4780_p7, %p3077_p12 }
 0x578   : > { %p2864_p8 = pneg %p2863_p5 }
 0x57a   : > { %2983 = dma.done.wait (%p2864_p8), %s2639_s8, 64  }
 0x57b   : > { %2985 = vsyncadd (%p2864_p8), %s2639_s8, 4294967232  ;;  %p16_p10 = scmp.ge.s32.totalorder %s3048_s18, 4   ;;  %s4781_s12 = smov %s2992_s13 }
 0x57c   : > { %s4782_s13 = smov %s2996_s14  ;;  %s4783_s14 = smov %s3060_s21 }
 0x57d   : > { %s4784_s15 = smov %s3048_s18  ;;  %18 = sbr.rel (!%p16_p10) target bundleno = 5 (0x5), region = 87 }
 0x582   :  { %2645 = vsyncpa [#allocation3], 1 }
 0x583   :  { %2647 = vsyncpa [#allocation3 + $0x1], 1 }
 0x584   :  { %2648 = vsyncpa [#allocation4], 1 }
 0x585   :  { %2650 = vsyncpa [#allocation4 + $0x1], 1 }

</bundles_post_ra>
